<compile_context>
chip_gen: v7x
topology: tpu7x:2x2x1
jax: 0.10.0
libtpu: 0.0.40
codegen_flags: <defaults>
</compile_context>

<pallas_src>
import functools

import jax
import jax.numpy as jnp
from jax.experimental import pallas as pl
from jax.experimental.pallas import tpu as pltpu

BN_EPS = 1e-5
LANE = 128
SUBLANE = 8


def _round_up(x, m):
    return (x + m - 1) // m * m


# ------------------------------ Pallas kernel ------------------------------ #
def _resblock_kernel(x_ref, mask_ref, w1_ref, b1_ref, w2_ref, b2_ref, *rest,
                     stride, row_stride, m1, m2, m1s, has_shortcut):
    """Fused ResBlock for one image.

    x_ref   : (1, Lx, Cpi)  flat zero-padded NHWC input, row stride = row_stride
    mask_ref: (m1, 1)       1.0 on the interior of the conv1 output grid, 0 on the
                            ring that plays the role of conv2's zero padding
    w*_ref  : (9, Cin_p, Cout_p) per-tap conv weights with BN scale folded in
    b*_ref  : (1, Cout_p)   folded BN bias
    o_ref   : (1, m2, Cout_p)
    h_ref   : VMEM scratch holding the conv1 activation (flat, row stride Wx)
    """
    if has_shortcut:
        wsc_ref, bsc_ref, o_ref, h_ref = rest
    else:
        o_ref, h_ref = rest
    s = stride
    wx = row_stride
    f32 = jnp.float32
    cpo = w1_ref.shape[2]

    # ---- conv1 (3x3) as 9 row-shifted matmuls, + folded BN1 bias + ReLU ----
    acc1 = jnp.zeros((m1, cpo), f32)
    for i in range(3):
        for j in range(3):
            xs = x_ref[0, pl.ds(i * wx + j, m1), :]
            acc1 = acc1 + jnp.dot(xs, w1_ref[3 * i + j],
                                  preferred_element_type=f32)
    h1 = jnp.maximum(acc1 + b1_ref[...], 0.0) * mask_ref[...]

    # stash the activation in VMEM (never round-trips HBM); zero the read-slack tail
    h_ref[pl.ds(0, m1), :] = h1.astype(h_ref.dtype)
    h_ref[pl.ds(m1, m1s - m1), :] = jnp.zeros((m1s - m1, cpo), h_ref.dtype)

    # ---- conv2 (3x3, stride 1 on the (possibly decimated) grid) + BN2 bias ----
    acc2 = jnp.zeros((m2, cpo), f32)
    for i in range(3):
        for j in range(3):
            start = s * (i * wx + j)
            if s == 1:
                hs = h_ref[pl.ds(start, m2), :]
            else:
                hs = h_ref[pl.ds(start, m2, stride=s), :]
            acc2 = acc2 + jnp.dot(hs, w2_ref[3 * i + j],
                                  preferred_element_type=f32)
    acc2 = acc2 + b2_ref[...]

    # ---- shortcut branch (1x1 conv + BN, or identity) ----
    p = s + 1                       # halo width of the padded input
    sc_start = p * (wx + 1)
    if has_shortcut:
        if s == 1:
            xsc = x_ref[0, pl.ds(sc_start, m2), :]
        else:
            xsc = x_ref[0, pl.ds(sc_start, m2, stride=s), :]
        res = jnp.dot(xsc, wsc_ref[...], preferred_element_type=f32)
        res = res + bsc_ref[...]
    else:
        # identity shortcut (stride == 1, Cin == Cout); residual added in f32
        res = x_ref[0, pl.ds(sc_start, m2), :].astype(f32)

    o_ref[0] = jnp.maximum(acc2 + res, 0.0).astype(o_ref.dtype)


# -------------------------------- host glue -------------------------------- #
def _fold_bn(gamma, beta, mean, var):
    scale = gamma / jnp.sqrt(var + BN_EPS)
    return scale, beta - mean * scale


def _prep_conv(w_oihw, bn, cpi, cpo, dtype):
    """PyTorch [Cout,Cin,KH,KW] -> per-tap [KH*KW, Cpi, Cpo] with BN scale folded."""
    cout, cin, kh, kw = w_oihw.shape
    scale, bias = _fold_bn(*bn)
    w = jnp.transpose(w_oihw, (2, 3, 1, 0)).reshape(kh * kw, cin, cout)
    w = w * scale[None, None, :]
    w = jnp.pad(w, ((0, 0), (0, cpi - cin), (0, cpo - cout))).astype(dtype)
    bias = jnp.pad(bias, (0, cpo - cout)).reshape(1, cpo).astype(jnp.float32)
    return w, bias


def res_block_forward(x_nchw, params, stride=1, *,
                      compute_dtype=jnp.bfloat16, out_dtype=jnp.float32):
    """Forward pass matching ResBlock.forward (eval-mode BN). NCHW in/out."""
    w1, bn1, w2, bn2, shortcut = (params["w1"], params["bn1"], params["w2"],
                                  params["bn2"], params.get("shortcut"))
    B, Cin, H, W = x_nchw.shape
    Cout = w1.shape[0]
    s = int(stride)
    if s > 1 and (H % s or W % s):
        raise ValueError("stride must divide H and W")
    has_sc = shortcut is not None
    if not has_sc and (s != 1 or Cin != Cout):
        raise ValueError("identity shortcut requires stride == 1 and Cin == Cout")

    Ho, Wo = H // s, W // s                   # conv output spatial dims (k=3, pad=1)
    P = s + 1                                 # input halo: conv1 halo + conv2 zero-pad
    Hx = H + 2 * P
    Wx = _round_up(W + 2 * P, SUBLANE)        # flat row stride (8-aligned)
    He = H + 2 * s                            # stride-1 "extended" conv1 output rows
    M1 = He * Wx                              # rows of the extended conv1 activation
    M2 = Ho * Wx                              # rows of conv2 / output activation
    M1s = _round_up(M1 + s + 1, SUBLANE)      # scratch rows incl. read-slack tail
    Lx = _round_up(Hx * Wx + 2, SUBLANE)      # flat input rows incl. read-slack tail
    Cpi = max(LANE, _round_up(Cin, LANE))     # lane-dense padded channel counts
    Cpo = max(LANE, _round_up(Cout, LANE))

    # NCHW -> NHWC, zero-pad spatial halo + channels, flatten rows.
    x = jnp.transpose(x_nchw, (0, 2, 3, 1))
    x = jnp.pad(x, ((0, 0), (P, P), (P, Wx - W - P), (0, Cpi - Cin)))
    x = x.reshape(B, Hx * Wx, Cpi)
    x = jnp.pad(x, ((0, 0), (0, Lx - Hx * Wx), (0, 0))).astype(compute_dtype)

    # Border mask: 1 on the interior of the extended conv1 grid (the ring acts as
    # conv2's zero padding), 0 elsewhere (also kills the layout's slack columns).
    q = jnp.arange(He)[:, None]
    r = jnp.arange(Wx)[None, :]
    mask = ((q >= s) & (q <= s * Ho) & (r >= s) & (r <= s * Wo))
    mask = mask.astype(jnp.float32).reshape(M1, 1)

    w1m, b1v = _prep_conv(w1, bn1, Cpi, Cpo, compute_dtype)
    w2m, b2v = _prep_conv(w2, bn2, Cpo, Cpo, compute_dtype)

    inputs = [x, mask, w1m, b1v, w2m, b2v]
    in_specs = [
        pl.BlockSpec((1, Lx, Cpi), lambda b: (b, 0, 0)),
        pl.BlockSpec((M1, 1), lambda b: (0, 0)),
        pl.BlockSpec((9, Cpi, Cpo), lambda b: (0, 0, 0)),
        pl.BlockSpec((1, Cpo), lambda b: (0, 0)),
        pl.BlockSpec((9, Cpo, Cpo), lambda b: (0, 0, 0)),
        pl.BlockSpec((1, Cpo), lambda b: (0, 0)),
    ]
    if has_sc:
        wsc, bnsc = shortcut
        wscm, bscv = _prep_conv(wsc, bnsc, Cpi, Cpo, compute_dtype)
        inputs += [wscm[0], bscv]
        in_specs += [pl.BlockSpec((Cpi, Cpo), lambda b: (0, 0)),
                     pl.BlockSpec((1, Cpo), lambda b: (0, 0))]

    kernel = functools.partial(
        _resblock_kernel, stride=s, row_stride=Wx,
        m1=M1, m2=M2, m1s=M1s, has_shortcut=has_sc)

    # Explicit VMEM budget (double-buffered I/O blocks + weights + scratch + f32
    # temporaries), capped at 64 MiB so the same tiling fits v7x.
    bpe = jnp.dtype(compute_dtype).itemsize
    est = (2 * Lx * Cpi * bpe
           + 2 * M2 * Cpo * jnp.dtype(out_dtype).itemsize
           + (18 * Cpi * Cpo + 9 * Cpo * Cpo) * bpe
           + M1s * Cpo * bpe
           + 8 * M1 * Cpo * 4
           + (2 << 20))
    vmem_limit = int(min(64 * 2 ** 20, max(est, 32 * 2 ** 20)))

    out = pl.pallas_call(
        kernel,
        out_shape=jax.ShapeDtypeStruct((B, M2, Cpo), out_dtype),
        grid=(B,),
        in_specs=in_specs,
        out_specs=pl.BlockSpec((1, M2, Cpo), lambda b: (b, 0, 0)),
        scratch_shapes=[pltpu.VMEM((M1s, Cpo), compute_dtype)],
        compiler_params=pltpu.CompilerParams(
            dimension_semantics=("parallel",),
            vmem_limit_bytes=vmem_limit),
    )(*inputs)

    # Drop layout slack columns / padded channels, back to NCHW at the boundary.
    out = out.reshape(B, Ho, Wx, Cpo)[:, :, :Wo, :Cout]
    return jnp.transpose(out, (0, 3, 1, 2))


# ---------------------------- pure-JAX reference ---------------------------- #
def _ref_resblock(x, params, stride):
    def conv(a, w, s, p):
        return jax.lax.conv_general_dilated(
            a, w, (s, s), [(p, p), (p, p)],
            dimension_numbers=("NCHW", "OIHW", "NCHW"))

    def bn(a, stats):
        g, b, m, v = stats
        return (g[None, :, None, None] * (a - m[None, :, None, None])
                / jnp.sqrt(v[None, :, None, None] + BN_EPS)
                + b[None, :, None, None])

    out = jax.nn.relu(bn(conv(x, params["w1"], stride, 1), params["bn1"]))
    out = bn(conv(out, params["w2"], 1, 1), params["bn2"])
    if params.get("shortcut") is not None:
        wsc, bnsc = params["shortcut"]
        sc = bn(conv(x, wsc, stride, 0), bnsc)
    else:
        sc = x
    return jax.nn.relu(out + sc)


# ----------------------------------- main ----------------------------------- #
def _init_params(key, cin, cout, stride):
    ks = jax.random.split(key, 12)

    def bn_stats(k0, k1, k2, k3, c):
        return (jax.random.uniform(k0, (c,), jnp.float32, 0.5, 1.5),   # gamma
                jax.random.normal(k1, (c,), jnp.float32) * 0.1,        # beta
                jax.random.normal(k2, (c,), jnp.float32) * 0.1,        # running mean
                jax.random.uniform(k3, (c,), jnp.float32, 0.5, 1.5))   # running var

    params = {
        "w1": jax.random.normal(ks[0], (cout, cin, 3, 3), jnp.float32) * 0.1,
        "bn1": bn_stats(ks[1], ks[2], ks[3], ks[4], cout),
        "w2": jax.random.normal(ks[5], (cout, cout, 3, 3), jnp.float32) * 0.1,
        "bn2": bn_stats(ks[6], ks[7], ks[8], ks[9], cout),
        "shortcut": None,
    }
    if stride != 1 or cin != cout:
        params["shortcut"] = (
            jax.random.normal(ks[10], (cout, cin, 1, 1), jnp.float32) * 0.1,
            bn_stats(*jax.random.split(ks[11], 4), cout),
        )
    return params


if __name__ == "__main__":
    key = jax.random.PRNGKey(0)
    kx, kp = jax.random.split(key)

    B, Cin, Cout, H, W, stride = 2, 4, 8, 16, 16, 1
    x = jax.random.normal(kx, (B, Cin, H, W), jnp.float32)
    params = _init_params(kp, Cin, Cout, stride)

    ref = jax.block_until_ready(_ref_resblock(x, params, stride))

    # float32 compute path: tight check against the module-semantics reference.
    out_f32 = jax.block_until_ready(
        res_block_forward(x, params, stride=stride, compute_dtype=jnp.float32))
    assert out_f32.shape == ref.shape, (out_f32.shape, ref.shape)
    err32 = float(jnp.max(jnp.abs(out_f32 - ref)))
    assert jnp.allclose(out_f32, ref, atol=5e-3, rtol=5e-3), err32

    # bfloat16 compute path (default, MXU-friendly): looser sanity check.
    out_bf16 = jax.block_until_ready(
        res_block_forward(x, params, stride=stride))
    errbf = float(jnp.max(jnp.abs(out_bf16 - ref)))
    assert jnp.allclose(out_bf16, ref, atol=1e-1, rtol=1e-1), errbf

    print("KERNEL_OK")
</pallas_src>

<mosaic_0001>
module attributes {stable_mosaic.version = 11 : i64} {
  func.func @_resblock_kernel(%arg0: i32, %arg1: memref<1x488x128xf32, #tpu.memory_space<vmem>>, %arg2: memref<432x1xf32, #tpu.memory_space<vmem>>, %arg3: memref<9x128x128xf32, #tpu.memory_space<vmem>>, %arg4: memref<1x128xf32, #tpu.memory_space<vmem>>, %arg5: memref<9x128x128xf32, #tpu.memory_space<vmem>>, %arg6: memref<1x128xf32, #tpu.memory_space<vmem>>, %arg7: memref<128x128xf32, #tpu.memory_space<vmem>>, %arg8: memref<1x128xf32, #tpu.memory_space<vmem>>, %arg9: memref<1x384x128xf32, #tpu.memory_space<vmem>>, %arg10: memref<440x128xf32, #tpu.memory_space<vmem>>) attributes {dimension_semantics = [#tpu.dimension_semantics<parallel>], iteration_bounds = array<i64: 2>, scalar_prefetch = 0 : i64, scratch_operands = 1 : i64, tpu.core_type = #tpu.core_type<tc>, window_params = [{transform_indices = @transform_0, window_bounds = array<i64: 1, 488, 128>}, {pipeline_mode = #tpu.pipeline_mode<synchronous>, transform_indices = @transform_1, window_bounds = array<i64: 432, 1>}, {pipeline_mode = #tpu.pipeline_mode<synchronous>, transform_indices = @transform_2, window_bounds = array<i64: 9, 128, 128>}, {pipeline_mode = #tpu.pipeline_mode<synchronous>, transform_indices = @transform_3, window_bounds = array<i64: 1, 128>}, {pipeline_mode = #tpu.pipeline_mode<synchronous>, transform_indices = @transform_4, window_bounds = array<i64: 9, 128, 128>}, {pipeline_mode = #tpu.pipeline_mode<synchronous>, transform_indices = @transform_5, window_bounds = array<i64: 1, 128>}, {pipeline_mode = #tpu.pipeline_mode<synchronous>, transform_indices = @transform_6, window_bounds = array<i64: 128, 128>}, {pipeline_mode = #tpu.pipeline_mode<synchronous>, transform_indices = @transform_7, window_bounds = array<i64: 1, 128>}, {transform_indices = @transform_8, window_bounds = array<i64: 1, 384, 128>}]} {
    %cst = arith.constant 0.000000e+00 : f32
    %0 = vector.broadcast %cst : f32 to vector<432x128xf32>
    %c0 = arith.constant 0 : index
    %c0_0 = arith.constant 0 : index
    %c0_1 = arith.constant 0 : index
    %1 = vector.load %arg1[%c0, %c0_0, %c0_1] : memref<1x488x128xf32, #tpu.memory_space<vmem>>, vector<1x432x128xf32>
    %2 = vector.shape_cast %1 : vector<1x432x128xf32> to vector<432x128xf32>
    %c0_2 = arith.constant 0 : index
    %c0_3 = arith.constant 0 : index
    %c0_4 = arith.constant 0 : index
    %3 = vector.load %arg3[%c0_2, %c0_3, %c0_4] : memref<9x128x128xf32, #tpu.memory_space<vmem>>, vector<1x128x128xf32>
    %4 = vector.shape_cast %3 : vector<1x128x128xf32> to vector<128x128xf32>
    %cst_5 = arith.constant dense<0.000000e+00> : vector<432x128xf32>
    %5 = tpu.matmul %2, %4, %cst_5 {dimension_numbers = #tpu.dot_dimension_numbers<[1], [0], [0], [1], [0, 0, 1, 1], [], []>} : vector<432x128xf32>, vector<128x128xf32>, vector<432x128xf32> -> vector<432x128xf32>
    %6 = arith.addf %0, %5 : vector<432x128xf32>
    %c0_6 = arith.constant 0 : index
    %c1 = arith.constant 1 : index
    %c0_7 = arith.constant 0 : index
    %7 = vector.load %arg1[%c0_6, %c1, %c0_7] : memref<1x488x128xf32, #tpu.memory_space<vmem>>, vector<1x432x128xf32>
    %8 = vector.shape_cast %7 : vector<1x432x128xf32> to vector<432x128xf32>
    %c1_8 = arith.constant 1 : index
    %c0_9 = arith.constant 0 : index
    %c0_10 = arith.constant 0 : index
    %9 = vector.load %arg3[%c1_8, %c0_9, %c0_10] : memref<9x128x128xf32, #tpu.memory_space<vmem>>, vector<1x128x128xf32>
    %10 = vector.shape_cast %9 : vector<1x128x128xf32> to vector<128x128xf32>
    %cst_11 = arith.constant dense<0.000000e+00> : vector<432x128xf32>
    %11 = tpu.matmul %8, %10, %cst_11 {dimension_numbers = #tpu.dot_dimension_numbers<[1], [0], [0], [1], [0, 0, 1, 1], [], []>} : vector<432x128xf32>, vector<128x128xf32>, vector<432x128xf32> -> vector<432x128xf32>
    %12 = arith.addf %6, %11 : vector<432x128xf32>
    %c0_12 = arith.constant 0 : index
    %c2 = arith.constant 2 : index
    %c0_13 = arith.constant 0 : index
    %13 = vector.load %arg1[%c0_12, %c2, %c0_13] : memref<1x488x128xf32, #tpu.memory_space<vmem>>, vector<1x432x128xf32>
    %14 = vector.shape_cast %13 : vector<1x432x128xf32> to vector<432x128xf32>
    %c2_14 = arith.constant 2 : index
    %c0_15 = arith.constant 0 : index
    %c0_16 = arith.constant 0 : index
    %15 = vector.load %arg3[%c2_14, %c0_15, %c0_16] : memref<9x128x128xf32, #tpu.memory_space<vmem>>, vector<1x128x128xf32>
    %16 = vector.shape_cast %15 : vector<1x128x128xf32> to vector<128x128xf32>
    %cst_17 = arith.constant dense<0.000000e+00> : vector<432x128xf32>
    %17 = tpu.matmul %14, %16, %cst_17 {dimension_numbers = #tpu.dot_dimension_numbers<[1], [0], [0], [1], [0, 0, 1, 1], [], []>} : vector<432x128xf32>, vector<128x128xf32>, vector<432x128xf32> -> vector<432x128xf32>
    %18 = arith.addf %12, %17 : vector<432x128xf32>
    %c0_18 = arith.constant 0 : index
    %c24 = arith.constant 24 : index
    %c0_19 = arith.constant 0 : index
    %19 = vector.load %arg1[%c0_18, %c24, %c0_19] : memref<1x488x128xf32, #tpu.memory_space<vmem>>, vector<1x432x128xf32>
    %20 = vector.shape_cast %19 : vector<1x432x128xf32> to vector<432x128xf32>
    %c3 = arith.constant 3 : index
    %c0_20 = arith.constant 0 : index
    %c0_21 = arith.constant 0 : index
    %21 = vector.load %arg3[%c3, %c0_20, %c0_21] : memref<9x128x128xf32, #tpu.memory_space<vmem>>, vector<1x128x128xf32>
    %22 = vector.shape_cast %21 : vector<1x128x128xf32> to vector<128x128xf32>
    %cst_22 = arith.constant dense<0.000000e+00> : vector<432x128xf32>
    %23 = tpu.matmul %20, %22, %cst_22 {dimension_numbers = #tpu.dot_dimension_numbers<[1], [0], [0], [1], [0, 0, 1, 1], [], []>} : vector<432x128xf32>, vector<128x128xf32>, vector<432x128xf32> -> vector<432x128xf32>
    %24 = arith.addf %18, %23 : vector<432x128xf32>
    %c0_23 = arith.constant 0 : index
    %c25 = arith.constant 25 : index
    %c0_24 = arith.constant 0 : index
    %25 = vector.load %arg1[%c0_23, %c25, %c0_24] : memref<1x488x128xf32, #tpu.memory_space<vmem>>, vector<1x432x128xf32>
    %26 = vector.shape_cast %25 : vector<1x432x128xf32> to vector<432x128xf32>
    %c4 = arith.constant 4 : index
    %c0_25 = arith.constant 0 : index
    %c0_26 = arith.constant 0 : index
    %27 = vector.load %arg3[%c4, %c0_25, %c0_26] : memref<9x128x128xf32, #tpu.memory_space<vmem>>, vector<1x128x128xf32>
    %28 = vector.shape_cast %27 : vector<1x128x128xf32> to vector<128x128xf32>
    %cst_27 = arith.constant dense<0.000000e+00> : vector<432x128xf32>
    %29 = tpu.matmul %26, %28, %cst_27 {dimension_numbers = #tpu.dot_dimension_numbers<[1], [0], [0], [1], [0, 0, 1, 1], [], []>} : vector<432x128xf32>, vector<128x128xf32>, vector<432x128xf32> -> vector<432x128xf32>
    %30 = arith.addf %24, %29 : vector<432x128xf32>
    %c0_28 = arith.constant 0 : index
    %c26 = arith.constant 26 : index
    %c0_29 = arith.constant 0 : index
    %31 = vector.load %arg1[%c0_28, %c26, %c0_29] : memref<1x488x128xf32, #tpu.memory_space<vmem>>, vector<1x432x128xf32>
    %32 = vector.shape_cast %31 : vector<1x432x128xf32> to vector<432x128xf32>
    %c5 = arith.constant 5 : index
    %c0_30 = arith.constant 0 : index
    %c0_31 = arith.constant 0 : index
    %33 = vector.load %arg3[%c5, %c0_30, %c0_31] : memref<9x128x128xf32, #tpu.memory_space<vmem>>, vector<1x128x128xf32>
    %34 = vector.shape_cast %33 : vector<1x128x128xf32> to vector<128x128xf32>
    %cst_32 = arith.constant dense<0.000000e+00> : vector<432x128xf32>
    %35 = tpu.matmul %32, %34, %cst_32 {dimension_numbers = #tpu.dot_dimension_numbers<[1], [0], [0], [1], [0, 0, 1, 1], [], []>} : vector<432x128xf32>, vector<128x128xf32>, vector<432x128xf32> -> vector<432x128xf32>
    %36 = arith.addf %30, %35 : vector<432x128xf32>
    %c0_33 = arith.constant 0 : index
    %c48 = arith.constant 48 : index
    %c0_34 = arith.constant 0 : index
    %37 = vector.load %arg1[%c0_33, %c48, %c0_34] : memref<1x488x128xf32, #tpu.memory_space<vmem>>, vector<1x432x128xf32>
    %38 = vector.shape_cast %37 : vector<1x432x128xf32> to vector<432x128xf32>
    %c6 = arith.constant 6 : index
    %c0_35 = arith.constant 0 : index
    %c0_36 = arith.constant 0 : index
    %39 = vector.load %arg3[%c6, %c0_35, %c0_36] : memref<9x128x128xf32, #tpu.memory_space<vmem>>, vector<1x128x128xf32>
    %40 = vector.shape_cast %39 : vector<1x128x128xf32> to vector<128x128xf32>
    %cst_37 = arith.constant dense<0.000000e+00> : vector<432x128xf32>
    %41 = tpu.matmul %38, %40, %cst_37 {dimension_numbers = #tpu.dot_dimension_numbers<[1], [0], [0], [1], [0, 0, 1, 1], [], []>} : vector<432x128xf32>, vector<128x128xf32>, vector<432x128xf32> -> vector<432x128xf32>
    %42 = arith.addf %36, %41 : vector<432x128xf32>
    %c0_38 = arith.constant 0 : index
    %c49 = arith.constant 49 : index
    %c0_39 = arith.constant 0 : index
    %43 = vector.load %arg1[%c0_38, %c49, %c0_39] : memref<1x488x128xf32, #tpu.memory_space<vmem>>, vector<1x432x128xf32>
    %44 = vector.shape_cast %43 : vector<1x432x128xf32> to vector<432x128xf32>
    %c7 = arith.constant 7 : index
    %c0_40 = arith.constant 0 : index
    %c0_41 = arith.constant 0 : index
    %45 = vector.load %arg3[%c7, %c0_40, %c0_41] : memref<9x128x128xf32, #tpu.memory_space<vmem>>, vector<1x128x128xf32>
    %46 = vector.shape_cast %45 : vector<1x128x128xf32> to vector<128x128xf32>
    %cst_42 = arith.constant dense<0.000000e+00> : vector<432x128xf32>
    %47 = tpu.matmul %44, %46, %cst_42 {dimension_numbers = #tpu.dot_dimension_numbers<[1], [0], [0], [1], [0, 0, 1, 1], [], []>} : vector<432x128xf32>, vector<128x128xf32>, vector<432x128xf32> -> vector<432x128xf32>
    %48 = arith.addf %42, %47 : vector<432x128xf32>
    %c0_43 = arith.constant 0 : index
    %c50 = arith.constant 50 : index
    %c0_44 = arith.constant 0 : index
    %49 = vector.load %arg1[%c0_43, %c50, %c0_44] : memref<1x488x128xf32, #tpu.memory_space<vmem>>, vector<1x432x128xf32>
    %50 = vector.shape_cast %49 : vector<1x432x128xf32> to vector<432x128xf32>
    %c8 = arith.constant 8 : index
    %c0_45 = arith.constant 0 : index
    %c0_46 = arith.constant 0 : index
    %51 = vector.load %arg3[%c8, %c0_45, %c0_46] : memref<9x128x128xf32, #tpu.memory_space<vmem>>, vector<1x128x128xf32>
    %52 = vector.shape_cast %51 : vector<1x128x128xf32> to vector<128x128xf32>
    %cst_47 = arith.constant dense<0.000000e+00> : vector<432x128xf32>
    %53 = tpu.matmul %50, %52, %cst_47 {dimension_numbers = #tpu.dot_dimension_numbers<[1], [0], [0], [1], [0, 0, 1, 1], [], []>} : vector<432x128xf32>, vector<128x128xf32>, vector<432x128xf32> -> vector<432x128xf32>
    %54 = arith.addf %48, %53 : vector<432x128xf32>
    %c0_48 = arith.constant 0 : index
    %c0_49 = arith.constant 0 : index
    %55 = vector.load %arg4[%c0_48, %c0_49] : memref<1x128xf32, #tpu.memory_space<vmem>>, vector<1x128xf32>
    %56 = vector.broadcast %55 : vector<1x128xf32> to vector<432x128xf32>
    %57 = arith.addf %54, %56 : vector<432x128xf32>
    %cst_50 = arith.constant 0.000000e+00 : f32
    %58 = vector.broadcast %cst_50 : f32 to vector<432x128xf32>
    %59 = arith.maximumf %57, %58 : vector<432x128xf32>
    %c0_51 = arith.constant 0 : index
    %c0_52 = arith.constant 0 : index
    %60 = vector.load %arg2[%c0_51, %c0_52] : memref<432x1xf32, #tpu.memory_space<vmem>>, vector<432x1xf32>
    %61 = vector.broadcast %60 : vector<432x1xf32> to vector<432x128xf32>
    %62 = arith.mulf %59, %61 : vector<432x128xf32>
    %c0_53 = arith.constant 0 : index
    %c0_54 = arith.constant 0 : index
    %63 = vector.load %arg10[%c0_53, %c0_54] : memref<440x128xf32, #tpu.memory_space<vmem>>, vector<432x128xf32>
    tpu.vector_store %arg10[%c0_53, %c0_54], %62 {strides = array<i32>} : memref<440x128xf32, #tpu.memory_space<vmem>>, vector<432x128xf32>,
    %cst_55 = arith.constant 0.000000e+00 : f32
    %64 = vector.broadcast %cst_55 : f32 to vector<8x128xf32>
    %c432 = arith.constant 432 : index
    %c0_56 = arith.constant 0 : index
    %65 = vector.load %arg10[%c432, %c0_56] : memref<440x128xf32, #tpu.memory_space<vmem>>, vector<8x128xf32>
    tpu.vector_store %arg10[%c432, %c0_56], %64 {strides = array<i32>} : memref<440x128xf32, #tpu.memory_space<vmem>>, vector<8x128xf32>,
    %cst_57 = arith.constant 0.000000e+00 : f32
    %66 = vector.broadcast %cst_57 : f32 to vector<384x128xf32>
    %c0_58 = arith.constant 0 : index
    %c0_59 = arith.constant 0 : index
    %67 = vector.load %arg10[%c0_58, %c0_59] : memref<440x128xf32, #tpu.memory_space<vmem>>, vector<384x128xf32>
    %c0_60 = arith.constant 0 : index
    %c0_61 = arith.constant 0 : index
    %c0_62 = arith.constant 0 : index
    %68 = vector.load %arg5[%c0_60, %c0_61, %c0_62] : memref<9x128x128xf32, #tpu.memory_space<vmem>>, vector<1x128x128xf32>
    %69 = vector.shape_cast %68 : vector<1x128x128xf32> to vector<128x128xf32>
    %cst_63 = arith.constant dense<0.000000e+00> : vector<384x128xf32>
    %70 = tpu.matmul %67, %69, %cst_63 {dimension_numbers = #tpu.dot_dimension_numbers<[1], [0], [0], [1], [0, 0, 1, 1], [], []>} : vector<384x128xf32>, vector<128x128xf32>, vector<384x128xf32> -> vector<384x128xf32>
    %71 = arith.addf %66, %70 : vector<384x128xf32>
    %c1_64 = arith.constant 1 : index
    %c0_65 = arith.constant 0 : index
    %72 = vector.load %arg10[%c1_64, %c0_65] : memref<440x128xf32, #tpu.memory_space<vmem>>, vector<384x128xf32>
    %c1_66 = arith.constant 1 : index
    %c0_67 = arith.constant 0 : index
    %c0_68 = arith.constant 0 : index
    %73 = vector.load %arg5[%c1_66, %c0_67, %c0_68] : memref<9x128x128xf32, #tpu.memory_space<vmem>>, vector<1x128x128xf32>
    %74 = vector.shape_cast %73 : vector<1x128x128xf32> to vector<128x128xf32>
    %cst_69 = arith.constant dense<0.000000e+00> : vector<384x128xf32>
    %75 = tpu.matmul %72, %74, %cst_69 {dimension_numbers = #tpu.dot_dimension_numbers<[1], [0], [0], [1], [0, 0, 1, 1], [], []>} : vector<384x128xf32>, vector<128x128xf32>, vector<384x128xf32> -> vector<384x128xf32>
    %76 = arith.addf %71, %75 : vector<384x128xf32>
    %c2_70 = arith.constant 2 : index
    %c0_71 = arith.constant 0 : index
    %77 = vector.load %arg10[%c2_70, %c0_71] : memref<440x128xf32, #tpu.memory_space<vmem>>, vector<384x128xf32>
    %c2_72 = arith.constant 2 : index
    %c0_73 = arith.constant 0 : index
    %c0_74 = arith.constant 0 : index
    %78 = vector.load %arg5[%c2_72, %c0_73, %c0_74] : memref<9x128x128xf32, #tpu.memory_space<vmem>>, vector<1x128x128xf32>
    %79 = vector.shape_cast %78 : vector<1x128x128xf32> to vector<128x128xf32>
    %cst_75 = arith.constant dense<0.000000e+00> : vector<384x128xf32>
    %80 = tpu.matmul %77, %79, %cst_75 {dimension_numbers = #tpu.dot_dimension_numbers<[1], [0], [0], [1], [0, 0, 1, 1], [], []>} : vector<384x128xf32>, vector<128x128xf32>, vector<384x128xf32> -> vector<384x128xf32>
    %81 = arith.addf %76, %80 : vector<384x128xf32>
    %c24_76 = arith.constant 24 : index
    %c0_77 = arith.constant 0 : index
    %82 = vector.load %arg10[%c24_76, %c0_77] : memref<440x128xf32, #tpu.memory_space<vmem>>, vector<384x128xf32>
    %c3_78 = arith.constant 3 : index
    %c0_79 = arith.constant 0 : index
    %c0_80 = arith.constant 0 : index
    %83 = vector.load %arg5[%c3_78, %c0_79, %c0_80] : memref<9x128x128xf32, #tpu.memory_space<vmem>>, vector<1x128x128xf32>
    %84 = vector.shape_cast %83 : vector<1x128x128xf32> to vector<128x128xf32>
    %cst_81 = arith.constant dense<0.000000e+00> : vector<384x128xf32>
    %85 = tpu.matmul %82, %84, %cst_81 {dimension_numbers = #tpu.dot_dimension_numbers<[1], [0], [0], [1], [0, 0, 1, 1], [], []>} : vector<384x128xf32>, vector<128x128xf32>, vector<384x128xf32> -> vector<384x128xf32>
    %86 = arith.addf %81, %85 : vector<384x128xf32>
    %c25_82 = arith.constant 25 : index
    %c0_83 = arith.constant 0 : index
    %87 = vector.load %arg10[%c25_82, %c0_83] : memref<440x128xf32, #tpu.memory_space<vmem>>, vector<384x128xf32>
    %c4_84 = arith.constant 4 : index
    %c0_85 = arith.constant 0 : index
    %c0_86 = arith.constant 0 : index
    %88 = vector.load %arg5[%c4_84, %c0_85, %c0_86] : memref<9x128x128xf32, #tpu.memory_space<vmem>>, vector<1x128x128xf32>
    %89 = vector.shape_cast %88 : vector<1x128x128xf32> to vector<128x128xf32>
    %cst_87 = arith.constant dense<0.000000e+00> : vector<384x128xf32>
    %90 = tpu.matmul %87, %89, %cst_87 {dimension_numbers = #tpu.dot_dimension_numbers<[1], [0], [0], [1], [0, 0, 1, 1], [], []>} : vector<384x128xf32>, vector<128x128xf32>, vector<384x128xf32> -> vector<384x128xf32>
    %91 = arith.addf %86, %90 : vector<384x128xf32>
    %c26_88 = arith.constant 26 : index
    %c0_89 = arith.constant 0 : index
    %92 = vector.load %arg10[%c26_88, %c0_89] : memref<440x128xf32, #tpu.memory_space<vmem>>, vector<384x128xf32>
    %c5_90 = arith.constant 5 : index
    %c0_91 = arith.constant 0 : index
    %c0_92 = arith.constant 0 : index
    %93 = vector.load %arg5[%c5_90, %c0_91, %c0_92] : memref<9x128x128xf32, #tpu.memory_space<vmem>>, vector<1x128x128xf32>
    %94 = vector.shape_cast %93 : vector<1x128x128xf32> to vector<128x128xf32>
    %cst_93 = arith.constant dense<0.000000e+00> : vector<384x128xf32>
    %95 = tpu.matmul %92, %94, %cst_93 {dimension_numbers = #tpu.dot_dimension_numbers<[1], [0], [0], [1], [0, 0, 1, 1], [], []>} : vector<384x128xf32>, vector<128x128xf32>, vector<384x128xf32> -> vector<384x128xf32>
    %96 = arith.addf %91, %95 : vector<384x128xf32>
    %c48_94 = arith.constant 48 : index
    %c0_95 = arith.constant 0 : index
    %97 = vector.load %arg10[%c48_94, %c0_95] : memref<440x128xf32, #tpu.memory_space<vmem>>, vector<384x128xf32>
    %c6_96 = arith.constant 6 : index
    %c0_97 = arith.constant 0 : index
    %c0_98 = arith.constant 0 : index
    %98 = vector.load %arg5[%c6_96, %c0_97, %c0_98] : memref<9x128x128xf32, #tpu.memory_space<vmem>>, vector<1x128x128xf32>
    %99 = vector.shape_cast %98 : vector<1x128x128xf32> to vector<128x128xf32>
    %cst_99 = arith.constant dense<0.000000e+00> : vector<384x128xf32>
    %100 = tpu.matmul %97, %99, %cst_99 {dimension_numbers = #tpu.dot_dimension_numbers<[1], [0], [0], [1], [0, 0, 1, 1], [], []>} : vector<384x128xf32>, vector<128x128xf32>, vector<384x128xf32> -> vector<384x128xf32>
    %101 = arith.addf %96, %100 : vector<384x128xf32>
    %c49_100 = arith.constant 49 : index
    %c0_101 = arith.constant 0 : index
    %102 = vector.load %arg10[%c49_100, %c0_101] : memref<440x128xf32, #tpu.memory_space<vmem>>, vector<384x128xf32>
    %c7_102 = arith.constant 7 : index
    %c0_103 = arith.constant 0 : index
    %c0_104 = arith.constant 0 : index
    %103 = vector.load %arg5[%c7_102, %c0_103, %c0_104] : memref<9x128x128xf32, #tpu.memory_space<vmem>>, vector<1x128x128xf32>
    %104 = vector.shape_cast %103 : vector<1x128x128xf32> to vector<128x128xf32>
    %cst_105 = arith.constant dense<0.000000e+00> : vector<384x128xf32>
    %105 = tpu.matmul %102, %104, %cst_105 {dimension_numbers = #tpu.dot_dimension_numbers<[1], [0], [0], [1], [0, 0, 1, 1], [], []>} : vector<384x128xf32>, vector<128x128xf32>, vector<384x128xf32> -> vector<384x128xf32>
    %106 = arith.addf %101, %105 : vector<384x128xf32>
    %c50_106 = arith.constant 50 : index
    %c0_107 = arith.constant 0 : index
    %107 = vector.load %arg10[%c50_106, %c0_107] : memref<440x128xf32, #tpu.memory_space<vmem>>, vector<384x128xf32>
    %c8_108 = arith.constant 8 : index
    %c0_109 = arith.constant 0 : index
    %c0_110 = arith.constant 0 : index
    %108 = vector.load %arg5[%c8_108, %c0_109, %c0_110] : memref<9x128x128xf32, #tpu.memory_space<vmem>>, vector<1x128x128xf32>
    %109 = vector.shape_cast %108 : vector<1x128x128xf32> to vector<128x128xf32>
    %cst_111 = arith.constant dense<0.000000e+00> : vector<384x128xf32>
    %110 = tpu.matmul %107, %109, %cst_111 {dimension_numbers = #tpu.dot_dimension_numbers<[1], [0], [0], [1], [0, 0, 1, 1], [], []>} : vector<384x128xf32>, vector<128x128xf32>, vector<384x128xf32> -> vector<384x128xf32>
    %111 = arith.addf %106, %110 : vector<384x128xf32>
    %c0_112 = arith.constant 0 : index
    %c0_113 = arith.constant 0 : index
    %112 = vector.load %arg6[%c0_112, %c0_113] : memref<1x128xf32, #tpu.memory_space<vmem>>, vector<1x128xf32>
    %113 = vector.broadcast %112 : vector<1x128xf32> to vector<384x128xf32>
    %114 = arith.addf %111, %113 : vector<384x128xf32>
    %c0_114 = arith.constant 0 : index
    %c50_115 = arith.constant 50 : index
    %c0_116 = arith.constant 0 : index
    %115 = vector.load %arg1[%c0_114, %c50_115, %c0_116] : memref<1x488x128xf32, #tpu.memory_space<vmem>>, vector<1x384x128xf32>
    %116 = vector.shape_cast %115 : vector<1x384x128xf32> to vector<384x128xf32>
    %c0_117 = arith.constant 0 : index
    %c0_118 = arith.constant 0 : index
    %117 = vector.load %arg7[%c0_117, %c0_118] : memref<128x128xf32, #tpu.memory_space<vmem>>, vector<128x128xf32>
    %cst_119 = arith.constant dense<0.000000e+00> : vector<384x128xf32>
    %118 = tpu.matmul %116, %117, %cst_119 {dimension_numbers = #tpu.dot_dimension_numbers<[1], [0], [0], [1], [0, 0, 1, 1], [], []>} : vector<384x128xf32>, vector<128x128xf32>, vector<384x128xf32> -> vector<384x128xf32>
    %c0_120 = arith.constant 0 : index
    %c0_121 = arith.constant 0 : index
    %119 = vector.load %arg8[%c0_120, %c0_121] : memref<1x128xf32, #tpu.memory_space<vmem>>, vector<1x128xf32>
    %120 = vector.broadcast %119 : vector<1x128xf32> to vector<384x128xf32>
    %121 = arith.addf %118, %120 : vector<384x128xf32>
    %122 = arith.addf %114, %121 : vector<384x128xf32>
    %cst_122 = arith.constant 0.000000e+00 : f32
    %123 = vector.broadcast %cst_122 : f32 to vector<384x128xf32>
    %124 = arith.maximumf %122, %123 : vector<384x128xf32>
    %c0_123 = arith.constant 0 : index
    %c0_124 = arith.constant 0 : index
    %c0_125 = arith.constant 0 : index
    %125 = vector.load %arg9[%c0_123, %c0_124, %c0_125] : memref<1x384x128xf32, #tpu.memory_space<vmem>>, vector<1x384x128xf32>
    %126 = vector.shape_cast %125 : vector<1x384x128xf32> to vector<384x128xf32>
    %127 = vector.shape_cast %124 : vector<384x128xf32> to vector<1x384x128xf32>
    tpu.vector_store %arg9[%c0_123, %c0_124, %c0_125], %127 {strides = array<i32>} : memref<1x384x128xf32, #tpu.memory_space<vmem>>, vector<1x384x128xf32>,
    return
  }
  func.func @transform_0(%arg0: i32) -> (i32, i32, i32) {
    %c0_i32 = arith.constant 0 : i32
    %c0_i32_0 = arith.constant 0 : i32
    %c0_i32_1 = arith.constant 0 : i32
    return %arg0, %c0_i32, %c0_i32_0 : i32, i32, i32
  }
  func.func @transform_1(%arg0: i32) -> (i32, i32) {
    %c0_i32 = arith.constant 0 : i32
    %c0_i32_0 = arith.constant 0 : i32
    %c0_i32_1 = arith.constant 0 : i32
    return %c0_i32, %c0_i32_0 : i32, i32
  }
  func.func @transform_2(%arg0: i32) -> (i32, i32, i32) {
    %c0_i32 = arith.constant 0 : i32
    %c0_i32_0 = arith.constant 0 : i32
    %c0_i32_1 = arith.constant 0 : i32
    %c0_i32_2 = arith.constant 0 : i32
    return %c0_i32, %c0_i32_0, %c0_i32_1 : i32, i32, i32
  }
  func.func @transform_3(%arg0: i32) -> (i32, i32) {
    %c0_i32 = arith.constant 0 : i32
    %c0_i32_0 = arith.constant 0 : i32
    %c0_i32_1 = arith.constant 0 : i32
    return %c0_i32, %c0_i32_0 : i32, i32
  }
  func.func @transform_4(%arg0: i32) -> (i32, i32, i32) {
    %c0_i32 = arith.constant 0 : i32
    %c0_i32_0 = arith.constant 0 : i32
    %c0_i32_1 = arith.constant 0 : i32
    %c0_i32_2 = arith.constant 0 : i32
    return %c0_i32, %c0_i32_0, %c0_i32_1 : i32, i32, i32
  }
  func.func @transform_5(%arg0: i32) -> (i32, i32) {
    %c0_i32 = arith.constant 0 : i32
    %c0_i32_0 = arith.constant 0 : i32
    %c0_i32_1 = arith.constant 0 : i32
    return %c0_i32, %c0_i32_0 : i32, i32
  }
  func.func @transform_6(%arg0: i32) -> (i32, i32) {
    %c0_i32 = arith.constant 0 : i32
    %c0_i32_0 = arith.constant 0 : i32
    %c0_i32_1 = arith.constant 0 : i32
    return %c0_i32, %c0_i32_0 : i32, i32
  }
  func.func @transform_7(%arg0: i32) -> (i32, i32) {
    %c0_i32 = arith.constant 0 : i32
    %c0_i32_0 = arith.constant 0 : i32
    %c0_i32_1 = arith.constant 0 : i32
    return %c0_i32, %c0_i32_0 : i32, i32
  }
  func.func @transform_8(%arg0: i32) -> (i32, i32, i32) {
    %c0_i32 = arith.constant 0 : i32
    %c0_i32_0 = arith.constant 0 : i32
    %c0_i32_1 = arith.constant 0 : i32
    return %arg0, %c0_i32, %c0_i32_0 : i32, i32, i32
  }
}

</mosaic_0001>

<bundles_post_ra>
// kernel: tpu_custom_call.1
= control target key start
LH: loop header
LB: loop body
LE: loop exit
PB: predicated region body
PF: predicated region fallthrough
CT: control target
= control target key end

     0   :  { %s16953_s0 = inlined_call_operand.hbm [shape: f32[2,488,128], index: 0, kind: input, shape index: {}]   ;;  %s16954_s1 = inlined_call_operand.vmem [shape: f32[432,1], index: 1, kind: input, shape index: {}]   ;;  %s16955_s2 = inlined_call_operand.hbm [shape: f32[9,128,128], index: 2, kind: input, shape index: {}]   ;;  %s16956_s3 = inlined_call_operand.vmem [shape: f32[1,128], index: 3, kind: input, shape index: {}]   ;;  %s16957_s4 = inlined_call_operand.hbm [shape: f32[9,128,128], index: 4, kind: input, shape index: {}]   ;;  %s16958_s5 = inlined_call_operand.vmem [shape: f32[1,128], index: 5, kind: input, shape index: {}]   ;;  %s16959_s6 = inlined_call_operand.vmem [shape: f32[128,128], index: 6, kind: input, shape index: {}]   ;;  %s16960_s7 = inlined_call_operand.vmem [shape: f32[1,128], index: 7, kind: input, shape index: {}]   ;;  %s16961_s8 = inlined_call_operand.hbm [shape: f32[2,384,128], index: 8, kind: output, shape index: {}]  }
   0x1   :  { %17098 = sst [smem:[#allocation78_spill]] %s16955_s2 }
   0x2   :  { %17099 = sst [smem:[#allocation79_spill]] %s16957_s4 }
   0x3   :  { %13 = vsyncpa [#allocation4], 0 }
   0x4   :  { %15 = vsyncpa [#allocation4 + $0x1], 0 }
   0x5   :  { %16 = vsyncpa [#allocation7], 0 }
   0x6   :  { %17 = vsyncpa [#allocation5], 0 }
   0x7   :  { %19 = vsyncpa [#allocation5 + $0x1], 0  ;;  %s14481_s27 = smov 0   ;;  %s14483_s28 = smov 0  }
   0x8   :  { %s14485_s29 = smov 0   ;;  %s14487_s30 = smov 0  }
   0x9 LB: > { %s14502_s9 = sadd.s32 4294967295, %s14424_s30   ;;  %s9278_s10 = sadd.s32 4294967294, %s14424_s30   ;;  %s14424_s30 = sphi %s14487_s30, %s17374_s30   ;;  %s14420_s29 = sphi %s14485_s29, %s17373_s29   ;;  %s14416_s28 = sphi %s14483_s28, %s17372_s28   ;;  %s14412_s27 = sphi %s14481_s27, %s17371_s27  }
   0xa   : > { %p45_p0 = scmp.ne.s32.totalorder %s14416_s28, %s14412_s27  ;;  %p16962_p1 = scmp.eq.s32.totalorder %s14502_s9, 0 }
   0xb   : > { %p222_p3 = scmp.eq.s32.totalorder %s9278_s10, 1  ;;  %p9279_p5 = scmp.ge.s32.totalorder %s14424_s30, 1 }
   0xc   : > { %p14511_p4 = por %p16962_p1, %p45_p0  ;;  %p229_p7 = scmp.lt.s32.totalorder %s14424_s30, 3 }
   0xd   : > { %p14516_p6 = por %p222_p3, %p45_p0  ;;  %s14426_s14 = smov [#allocation6]  }
   0xe   : > { %s17100_s11 = scalar_select %p14511_p4, 1, 0 }
   0xf   : > { %s17101_s12 = scalar_select %p14516_p6, 1, 0 }
  0x10   : > { %p14521_p8 = pnand %p9279_p5, %p229_p7  ;;  %s244_s15 = sshll.u32 %s14426_s14, 4  ;;  %s14525_s15 = int_to_ptr.vmem [resolvable:$true] %s244_s15 }
  0x11   : > { %s14427_s17 = smov [#allocation8]   ;;  %s17104_s2 = sld [smem:[#allocation78_spill]] }
  0x12   : > { %p14205_p9 = pneg %p14521_p8  ;;  %s260_s18 = sshll.u32 %s14427_s17, 4  ;;  %s14536_s18 = int_to_ptr.vmem [resolvable:$true] %s260_s18 }
  0x14   : > { %p14532_p11 = pnand %p14205_p9, %p16962_p1 }
  0x16   : > { %p14270_p13 = pneg %p14532_p11 }
  0x17   : > { %s14268_s21 = scalar_lea.hbm %s17104_s2, 18432 }
  0x18   : > { %p14269_p12 = scmp.ne.s32.totalorder %s17104_s2, %s14268_s21  ;;  %p14275_p5 = scmp.lt.u32.totalorder %s14268_s21, %s17104_s2 }
  0x1a   : > { %p14271_p0 = pnand %p14270_p13, %p14269_p12 }
  0x1c   : > { %p14272_p3 = pneg %p14271_p0 }
  0x1e   : > { %p14277_p7 = pnand %p14275_p5, %p14272_p3 }
  0x20   : > { %14280 = shalt.err (!%p14277_p7)
}
  0x21   : > { %s14281_s26 = scalar_lea.vmem %s14525_s15, 18432  ;;  %p14289_p2 = scmp.lt.s32.totalorder %s14525_s15, %s14525_s15 }
  0x22   : > { %p14282_p9 = scmp.ne.s32.totalorder %s14525_s15, %s14281_s26  ;;  %p14290_p12 = scmp.lt.s32.totalorder %s14281_s26, %s14281_s26 }
  0x24   : > { %p14284_p10 = pnand %p14282_p9, %p14270_p13  ;;  %p14291_p0 = por %p14290_p12, %p14289_p2 }
  0x26   : > { %p14285_p1 = pneg %p14284_p10 }
  0x28   : > { %p14292_p6 = pnand %p14291_p0, %p14285_p1 }
  0x2a   : > { %14295 = shalt.err (!%p14292_p6)
}
  0x2b   : > { %s16963_s10 = smov 128   ;;  %s16964_s14 = smov 8  }
  0x2c   : > { %14208 = dma.hbm_to_vmem [thread:$0]  (!%p14532_p11), %s17104_s2, 18432, %s14525_s15, [#allocation7], %s16963_s10, %s16963_s10, %s16964_s14  }
  0x2d   : > { %s17105_s4 = sld [smem:[#allocation79_spill]] }
  0x33   : > { %s14296_s22 = scalar_lea.hbm %s17105_s4, 18432 }
  0x34   : > { %p14297_p1 = scmp.ne.s32.totalorder %s17105_s4, %s14296_s22  ;;  %p14303_p10 = scmp.lt.u32.totalorder %s14296_s22, %s17105_s4 }
  0x36   : > { %p14299_p2 = pnand %p14297_p1, %p14270_p13 }
  0x38   : > { %p14300_p6 = pneg %p14299_p2 }
  0x3a   : > { %p14305_p3 = pnand %p14303_p10, %p14300_p6 }
  0x3c   : > { %14308 = shalt.err (!%p14305_p3)
}
  0x3d   : > { %s14309_s15 = scalar_lea.vmem %s14536_s18, 18432  ;;  %p14317_p12 = scmp.lt.s32.totalorder %s14536_s18, %s14536_s18 }
  0x3e   : > { %p14310_p5 = scmp.ne.s32.totalorder %s14536_s18, %s14309_s15  ;;  %p14318_p0 = scmp.lt.s32.totalorder %s14309_s15, %s14309_s15 }
  0x40   : > { %p14312_p7 = pnand %p14310_p5, %p14270_p13  ;;  %p14319_p1 = por %p14318_p0, %p14317_p12 }
  0x42   : > { %p14313_p9 = pneg %p14312_p7 }
  0x44   : > { %p14320_p2 = pnand %p14319_p1, %p14313_p9 }
  0x46   : > { %14323 = shalt.err (!%p14320_p2)
}
  0x47   : > { %14211 = dma.hbm_to_vmem [thread:$0]  (!%p14532_p11), %s17105_s4, 18432, %s14536_s18, [#allocation7], %s16963_s10, %s16963_s10, %s16964_s14  }
  0x48   : > { %s14597_s16 = sadd.s32 1, %s14424_s30   ;;  %s32_s20 = sadd.s32 1, %s14420_s29 }
  0x49   : > { %s29_s21 = ssub.s32 %s14424_s30, %s14597_s16  ;;  %p39_p13 = scmp.ne.s32.totalorder %s14420_s29, %s14416_s28 }
  0x4a   : > { %p30_p6 = scmp.eq.s32.totalorder %s29_s21, 0  ;;  %p40_p10 = scmp.eq.s32.totalorder %s14424_s30, 0 }
  0x4b   : > { %p17106_p3 = scmp.eq.s32.totalorder %s14502_s9, 1  ;;  %p14222_p7 = scmp.lt.s32.totalorder %s14424_s30, 2 }
  0x4c   : > { %s14613_s23 = scalar_select %p30_p6, %s14420_s29, %s32_s20  }
  0x4d   : > { %p14607_p5 = por %p17106_p3, %p39_p13  ;;  %p41_p9 = por %p40_p10, %p39_p13 }
  0x4e   : > { %s283_s24 = sand.u32 1, %s14420_s29   ;;  %s14189_s18 = smul.u32 7808, %s14424_s30 }
  0x4f   : > { %s17107_s22 = scalar_select %p14607_p5, 1, 0 }
  0x50   : > { %s14188_s25 = smul.u32 488, %s283_s24  ;;  %p14617_p11 = pnand %p14222_p7, %p41_p9 }
  0x51   : > { %s14624_s19 = scalar_lea.hbm %s16953_s0, %s14189_s18  ;;  %s14628_s10 = scalar_lea.sflag [#allocation4], %s283_s24 }
  0x52   : > { %s287_s20 = scalar_lea.vmem [#allocation3], %s14188_s25  ;;  %s14324_s14 = scalar_lea.hbm %s14624_s19, 7808 }
  0x53   : > { %s294_s21 = sshll.u32 %s287_s20, 4  ;;  %p14325_p12 = scmp.ne.s32.totalorder %s14624_s19, %s14324_s14  ;;  %s14626_s21 = int_to_ptr.vmem [resolvable:$true] %s294_s21 }
  0x54   : > { %p14326_p0 = pneg %p14617_p11  ;;  %s14329_s17 = scalar_lea.hbm %s16953_s0, 15616 }
  0x55   : > { %p14330_p13 = scmp.lt.u32.totalorder %s14624_s19, %s16953_s0  ;;  %p14331_p6 = scmp.lt.u32.totalorder %s14329_s17, %s14324_s14 }
  0x56   : > { %p14327_p1 = pnand %p14326_p0, %p14325_p12  ;;  %p14333_p3 = scmp.lt.u32.totalorder %s14324_s14, %s14624_s19 }
  0x57   : > { %p14332_p10 = por %p14331_p6, %p14330_p13 }
  0x58   : > { %p14328_p2 = pneg %p14327_p1 }
  0x59   : > { %p14334_p7 = por %p14333_p3, %p14332_p10 }
  0x5b   : > { %p14335_p9 = pnand %p14334_p7, %p14328_p2 }
  0x5d   : > { %14338 = shalt.err (!%p14335_p9)
}
  0x5e   : > { %s14339_s24 = scalar_lea.vmem %s14626_s21, 7808  ;;  %s14430_s25 = smov [#allocation3]  }
  0x5f   : > { %p14340_p12 = scmp.ne.s32.totalorder %s14626_s21, %s14339_s24  ;;  %s14344_s20 = sshll.u32 %s14430_s25, 4  ;;  %s14345_s20 = int_to_ptr.vmem [resolvable:$false] %s14344_s20 }
  0x60   : > { %s14346_s2 = scalar_lea.vmem %s14345_s20, 15616  ;;  %p14347_p4 = scmp.lt.s32.totalorder %s14626_s21, %s14345_s20 }
  0x61   : > { %p14342_p1 = pnand %p14340_p12, %p14326_p0  ;;  %p14348_p13 = scmp.lt.s32.totalorder %s14346_s2, %s14339_s24 }
  0x63   : > { %p14343_p5 = pneg %p14342_p1  ;;  %p14349_p6 = por %p14348_p13, %p14347_p4 }
  0x65   : > { %p14350_p10 = pnand %p14349_p6, %p14343_p5 }
  0x67   : > { %14353 = shalt.err (!%p14350_p10)
}
  0x68   : > { %s17109_s4 = smov 8   ;;  %s17110_s14 = smov 128  }
  0x69   : > { %14215 = dma.hbm_to_vmem [thread:$0]  (!%p14617_p11), %s14624_s19, 7808, %s14626_s21, %s14628_s10, %s17110_s14, %s17110_s14, %s17109_s4  }
  0x6a   : > { %306 = sbr.rel (%p14521_p8) target bundleno = 2439 (0x987), region = 52 }
  0x71   : > { %s14662_s18 = sand.u32 1, %s14416_s28   ;;  %p17111_p4 = scmp.ne.s32.totalorder %s17100_s11, 0 }
  0x72   : > { %s14190_s15 = smul.u32 488, %s14662_s18  ;;  %s309_s17 = scalar_lea.sflag [#allocation4], %s14662_s18 }
  0x74   : > { %s14666_s24 = scalar_lea.vmem [#allocation3], %s14190_s15 }
  0x75   : > { %14399 = dma.done.wait (%p17111_p4), %s309_s17, 7808  }
  0x76   : > { %14401 = vsyncadd (%p17111_p4), %s309_s17, 4294959488  ;;  %p17112_p5 = scmp.eq.s32.totalorder %s14502_s9, 0 }
  0x78   : > { %14403 = dma.done.wait (%p17112_p5), [#allocation7], 36864   ;;  %p17113_p8 = pmov %p17112_p5 }
  0x79   : > { %v478_v0 = vld [vmem:[#allocation6 + $0x80] sm:$0xff]  ;;  %v479_v1 = vld [vmem:[#allocation6 + $0x88] sm:$0xff]  ;;  %v480_v2 = vld [vmem:[#allocation6 + $0x90] sm:$0xff]  ;;  %s14191_s26 = smul.u32 384, %s14662_s18  ;;  %p17368_p0 = scmp.ne.s32.totalorder %s17107_s22, 0 }
  0x7a   : > { %14405 = vsyncadd (%p17113_p8), [#allocation7], 4294930432  ;;  %v12620_v3 = vpack.c.bf16 %v479_v1, %v478_v0  ;;  %v481_v4 = vld [vmem:[#allocation6 + $0x98] sm:$0xff]  ;;  %v482_v6 = vld [vmem:[#allocation6 + $0xa0] sm:$0xff]  ;;  %s14192_s19 = smul.u32 6144, %s14502_s9  ;;  %s9173_s9 = scalar_lea.sflag [#allocation5], %s14662_s18 }
  0x7b   : > { %v12624_v5 = vpack.c.bf16 %v481_v4, %v480_v2  ;;  %v483_v7 = vld [vmem:[#allocation6 + $0xa8] sm:$0xff]  ;;  %v423_v9 = vld [vmem:[%s14666_s24 + $0x1] sm:$0xff]  ;;  %s14433_s14 = smov [#allocation9]  }
  0x7c   : > { %12621 = vmatprep.subr.bf16.mxu0 %v12620_v3  ;;  %v12628_v8 = vpack.c.bf16 %v483_v7, %v482_v6  ;;  %v484_v10 = vld [vmem:[#allocation6 + $0xb0] sm:$0xff]  ;;  %v485_v11 = vld [vmem:[#allocation6 + $0xb8] sm:$0xff]  ;;  %10595 = vmatprep.mubr.f32.mxu0 %v423_v9  ;;  %v486_v13 = vld [vmem:[#allocation6 + $0xc0] sm:$0xff]  ;;  %s16905_s2 = scalar_lea.hbm %s16961_s8, %s14192_s19  ;;  %s14358_s15 = sshll.u32 %s14433_s14, 4  ;;  %s14359_s15 = int_to_ptr.vmem [resolvable:$false] %s14358_s15 }
  0x7d   : > { %12623 = vmatpush3.bf16.msra.mxu0 %v12620_v3  ;;  %v12632_v12 = vpack.c.bf16 %v485_v11, %v484_v10  ;;  %v487_v14 = vld [vmem:[#allocation6 + $0xc8] sm:$0xff]  ;;  %v488_v16 = vld [vmem:[#allocation6 + $0xd0] sm:$0xff]  ;;  %v489_v17 = vld [vmem:[#allocation6 + $0xd8] sm:$0xff]  ;;  %s14360_s17 = scalar_lea.vmem %s14359_s15, 12288 }
  0x7e   : > { %12625 = vmatprep.subr.bf16.mxu0 %v12624_v5  ;;  %v12636_v15 = vpack.c.bf16 %v487_v14, %v486_v13  ;;  %v12640_v18 = vpack.c.bf16 %v489_v17, %v488_v16  ;;  %v490_v19 = vld [vmem:[#allocation6 + $0xe0] sm:$0xff]  ;;  %v491_v20 = vld [vmem:[#allocation6 + $0xe8] sm:$0xff]  ;;  %v492_v22 = vld [vmem:[#allocation6 + $0xf0] sm:$0xff] }
  0x7f   : > { %v12644_v21 = vpack.c.bf16 %v491_v20, %v490_v19  ;;  %v493_v23 = vld [vmem:[#allocation6 + $0xf8] sm:$0xff]  ;;  %v407_v25 = vld [vmem:[#allocation6] sm:$0xff]  ;;  %v408_v26 = vld [vmem:[#allocation6 + $0x8] sm:$0xff] }
  0x80   : > { %v12648_v24 = vpack.c.bf16 %v493_v23, %v492_v22  ;;  %v12652_v27 = vpack.c.bf16 %v408_v26, %v407_v25  ;;  %v409_v28 = vld [vmem:[#allocation6 + $0x10] sm:$0xff]  ;;  %v410_v29 = vld [vmem:[#allocation6 + $0x18] sm:$0xff]  ;;  %v411_v33 = vld [vmem:[#allocation6 + $0x20] sm:$0xff] }
  0x81   : > { %12627 = vmatpush3.bf16.msra.mxu0 %v12624_v5  ;;  %v424_v30 = vld [vmem:[%s14666_s24 + $0x9] sm:$0xff]  ;;  %v425_v31 = vld [vmem:[%s14666_s24 + $0x11] sm:$0xff]  ;;  %v12656_v32 = vpack.c.bf16 %v410_v29, %v409_v28  ;;  %v426_v35 = vld [vmem:[%s14666_s24 + $0x19] sm:$0xff] }
  0x82   : > { %12629 = vmatprep.subr.bf16.mxu0 %v12628_v8  ;;  %v412_v34 = vld [vmem:[#allocation6 + $0x28] sm:$0xff]  ;;  %v427_v36 = vld [vmem:[%s14666_s24 + $0x21] sm:$0xff] }
  0x83   : > { %v12660_v37 = vpack.c.bf16 %v412_v34, %v411_v33  ;;  %v413_v38 = vld [vmem:[#allocation6 + $0x30] sm:$0xff]  ;;  %v414_v39 = vld [vmem:[#allocation6 + $0x38] sm:$0xff]  ;;  %v415_v43 = vld [vmem:[#allocation6 + $0x40] sm:$0xff] }
  0x84   : > { %v428_v40 = vld [vmem:[%s14666_s24 + $0x29] sm:$0xff]  ;;  %v429_v41 = vld [vmem:[%s14666_s24 + $0x31] sm:$0xff]  ;;  %v12664_v42 = vpack.c.bf16 %v414_v39, %v413_v38  ;;  %v430_v45 = vld [vmem:[%s14666_s24 + $0x39] sm:$0xff] }
  0x85   : > { %12631 = vmatpush3.bf16.msra.mxu0 %v12628_v8  ;;  %v416_v44 = vld [vmem:[#allocation6 + $0x48] sm:$0xff]  ;;  %v431_v46 = vld [vmem:[%s14666_s24 + $0x41] sm:$0xff] }
  0x86   : > { %12633 = vmatprep.subr.bf16.mxu0 %v12632_v12  ;;  %v12668_v47 = vpack.c.bf16 %v416_v44, %v415_v43  ;;  %v417_v48 = vld [vmem:[#allocation6 + $0x50] sm:$0xff]  ;;  %v418_v49 = vld [vmem:[#allocation6 + $0x58] sm:$0xff]  ;;  %v419_v53 = vld [vmem:[#allocation6 + $0x60] sm:$0xff] }
  0x87   : > { %v432_v50 = vld [vmem:[%s14666_s24 + $0x49] sm:$0xff]  ;;  %v433_v51 = vld [vmem:[%s14666_s24 + $0x51] sm:$0xff]  ;;  %v12672_v52 = vpack.c.bf16 %v418_v49, %v417_v48  ;;  %v434_v55 = vld [vmem:[%s14666_s24 + $0x59] sm:$0xff] }
  0x88   : > { %v420_v54 = vld [vmem:[#allocation6 + $0x68] sm:$0xff]  ;;  %v435_v56 = vld [vmem:[%s14666_s24 + $0x61] sm:$0xff] }
  0x89   : > { %12635 = vmatpush3.bf16.msra.mxu0 %v12632_v12  ;;  %v12676_v57 = vpack.c.bf16 %v420_v54, %v419_v53  ;;  %v421_v58 = vld [vmem:[#allocation6 + $0x70] sm:$0xff]  ;;  %v422_v59 = vld [vmem:[#allocation6 + $0x78] sm:$0xff]  ;;  %v1219_v63 = vld [vmem:[#allocation6 + $0x100] sm:$0xff] }
  0x8a   : > { %12637 = vmatprep.subr.bf16.mxu0 %v12636_v15  ;;  %v436_v60 = vld [vmem:[%s14666_s24 + $0x69] sm:$0xff]  ;;  %v437_v61 = vld [vmem:[%s14666_s24 + $0x71] sm:$0xff]  ;;  %v12680_v62 = vpack.c.bf16 %v422_v59, %v421_v58  ;;  %v438_v1 = vld [vmem:[%s14666_s24 + $0x79] sm:$0xff] }
  0x8b   : > { %v1220_v0 = vld [vmem:[#allocation6 + $0x108] sm:$0xff]  ;;  %v439_v2 = vld [vmem:[%s14666_s24 + $0x81] sm:$0xff] }
  0x8c   : > { %v14693_v3 = vpack.c.bf16 %v1220_v0, %v1219_v63  ;;  %v440_v4 = vld [vmem:[%s14666_s24 + $0x89] sm:$0xff]  ;;  %v441_v5 = vld [vmem:[%s14666_s24 + $0x91] sm:$0xff]  ;;  %v442_v6 = vld [vmem:[%s14666_s24 + $0x99] sm:$0xff] }
  0x8d   : > { %12639 = vmatpush3.bf16.msra.mxu0 %v12636_v15  ;;  %v443_v7 = vld [vmem:[%s14666_s24 + $0xa1] sm:$0xff]  ;;  %v444_v8 = vld [vmem:[%s14666_s24 + $0xa9] sm:$0xff]  ;;  %v445_v9 = vld [vmem:[%s14666_s24 + $0xb1] sm:$0xff] }
  0x8e   : > { %12641 = vmatprep.subr.bf16.mxu0 %v12640_v18  ;;  %v446_v10 = vld [vmem:[%s14666_s24 + $0xb9] sm:$0xff]  ;;  %v447_v11 = vld [vmem:[%s14666_s24 + $0xc1] sm:$0xff]  ;;  %v448_v12 = vld [vmem:[%s14666_s24 + $0xc9] sm:$0xff] }
  0x8f   : > { %v449_v13 = vld [vmem:[%s14666_s24 + $0xd1] sm:$0xff]  ;;  %v450_v14 = vld [vmem:[%s14666_s24 + $0xd9] sm:$0xff]  ;;  %v451_v15 = vld [vmem:[%s14666_s24 + $0xe1] sm:$0xff] }
  0x90   : > { %v452_v16 = vld [vmem:[%s14666_s24 + $0xe9] sm:$0xff]  ;;  %v453_v17 = vld [vmem:[%s14666_s24 + $0xf1] sm:$0xff]  ;;  %v455_v19 = vld [vmem:[%s14666_s24 + $0x101] sm:$0xff] }
  0x91   : > { %12643 = vmatpush3.bf16.msra.mxu0 %v12640_v18  ;;  %v454_v18 = vld [vmem:[%s14666_s24 + $0xf9] sm:$0xff]  ;;  %v456_v20 = vld [vmem:[%s14666_s24 + $0x109] sm:$0xff]  ;;  %v459_v23 = vld [vmem:[%s14666_s24 + $0x121] sm:$0xff] }
  0x92   : > { %12645 = vmatprep.subr.bf16.mxu0 %v12644_v21  ;;  %v458_v22 = vld [vmem:[%s14666_s24 + $0x119] sm:$0xff]  ;;  %v461_v25 = vld [vmem:[%s14666_s24 + $0x131] sm:$0xff]  ;;  %v464_v28 = vld [vmem:[%s14666_s24 + $0x149] sm:$0xff] }
  0x93   : > { %v462_v26 = vld [vmem:[%s14666_s24 + $0x139] sm:$0xff]  ;;  %v465_v29 = vld [vmem:[%s14666_s24 + $0x151] sm:$0xff]  ;;  %v475_v39 = vld [vmem:[%s14666_s24 + $0x1a1] sm:$0xff] }
  0x94   : > { %v469_v33 = vld [vmem:[%s14666_s24 + $0x171] sm:$0xff]  ;;  %v470_v34 = vld [vmem:[%s14666_s24 + $0x179] sm:$0xff]  ;;  %v354_v44 = vld [vmem:[%s14666_s24 + $0x8] sm:$0xff] }
  0x95   : > { %12647 = vmatpush3.bf16.msra.mxu0 %v12644_v21  ;;  %v457_v21 = vld [vmem:[%s14666_s24 + $0x111] sm:$0xff]  ;;  %v474_v38 = vld [vmem:[%s14666_s24 + $0x199] sm:$0xff]  ;;  %v14746_v54 = vld [vmem:[%s14666_s24 + $0x28] sm:$0xff] }
  0x96   : > { %12649 = vmatprep.subr.bf16.mxu0 %v12648_v24  ;;  %v1222_v43 = vld [vmem:[#allocation6 + $0x118] sm:$0xff]  ;;  %v1224_v48 = vld [vmem:[#allocation6 + $0x128] sm:$0xff] }
  0x97   : > { %v14738_v49 = vld [vmem:[%s14666_s24 + $0x18] sm:$0xff]  ;;  %v1226_v53 = vld [vmem:[#allocation6 + $0x138] sm:$0xff] }
  0x98   : > { %v1228_v58 = vld [vmem:[#allocation6 + $0x148] sm:$0xff]  ;;  %v1230_v63 = vld [vmem:[#allocation6 + $0x158] sm:$0xff] }
  0x99   : > { %12651 = vmatpush3.bf16.msra.mxu0 %v12648_v24  ;;  %v460_v24 = vld [vmem:[%s14666_s24 + $0x129] sm:$0xff]  ;;  %v14754_v59 = vld [vmem:[%s14666_s24 + $0x38] sm:$0xff] }
  0x9a   : > { %12653 = vmatprep.subr.bf16.mxu0 %v12652_v27  ;;  %v14762_v0 = vld [vmem:[%s14666_s24 + $0x48] sm:$0xff] }
  0x9c   : > { %10596 = vmatmul.mubr.f32.vlgmr.msra.gmra.mrb[0].mxu0 %v424_v30  ;;  %v466_v30 = vld [vmem:[%s14666_s24 + $0x159] sm:$0xff] }
  0x9d   : > { %12655 = vmatpush3.bf16.msra.mxu0 %v12652_v27  ;;  %10598 = vmatprep.mubr.f32.mxu0 %v425_v31  ;;  %v463_v27 = vld [vmem:[%s14666_s24 + $0x141] sm:$0xff] }
  0x9e   : > { %12657 = vmatprep.subr.bf16.mxu0 %v12656_v32  ;;  %v467_v31 = vld [vmem:[%s14666_s24 + $0x161] sm:$0xff] }
  0xa0   : > { %10599 = vmatmul.mubr.f32.gmra.mrb[2].mxu0 %v426_v35  ;;  %v471_v35 = vld [vmem:[%s14666_s24 + $0x181] sm:$0xff] }
  0xa1   : > { %10601 = vmatprep.mubr.f32.mxu0 %v427_v36  ;;  %12659 = vmatpush3.bf16.msra.mxu0 %v12656_v32  ;;  %v468_v32 = vld [vmem:[%s14666_s24 + $0x169] sm:$0xff] }
  0xa2   : > { %12661 = vmatprep.subr.bf16.mxu0 %v12660_v37  ;;  %v472_v36 = vld [vmem:[%s14666_s24 + $0x189] sm:$0xff] }
  0xa4   : > { %10602 = vmatmul.mubr.f32.gmra.mrb[4].mxu0 %v428_v40  ;;  %v476_v40 = vld [vmem:[%s14666_s24 + $0x1a9] sm:$0xff] }
  0xa5   : > { %10604 = vmatprep.mubr.f32.mxu0 %v429_v41  ;;  %12663 = vmatpush3.bf16.msra.mxu0 %v12660_v37  ;;  %v473_v37 = vld [vmem:[%s14666_s24 + $0x191] sm:$0xff]  ;;  %v353_v41 = vld [vmem:[%s14666_s24] sm:$0xff] }
  0xa6   : > { %12665 = vmatprep.subr.bf16.mxu0 %v12664_v42 }
  0xa8   : > { %10605 = vmatmul.mubr.f32.gmra.mrb[6].mxu0 %v430_v45  ;;  %v355_v45 = vld [vmem:[%s14666_s24 + $0x10] sm:$0xff] }
  0xa9   : > { %10607 = vmatprep.mubr.f32.mxu0 %v431_v46  ;;  %12667 = vmatpush3.bf16.msra.mxu0 %v12664_v42  ;;  %v1221_v42 = vld [vmem:[#allocation6 + $0x110] sm:$0xff] }
  0xaa   : > { %12669 = vmatprep.subr.bf16.mxu0 %v12668_v47  ;;  %v12688_v46 = vpack.c.bf16 %v1222_v43, %v1221_v42  ;;  %v14893_v42 = vld [vmem:[%s14666_s24 + $0x148] sm:$0xff]  ;;  %v14896_v43 = vld [vmem:[%s14666_s24 + $0x150] sm:$0xff] }
  0xac   : > { %10608 = vmatmul.mubr.f32.gmra.mrb[8].mxu0 %v432_v50  ;;  %v14741_v50 = vld [vmem:[%s14666_s24 + $0x20] sm:$0xff] }
  0xad   : > { %10610 = vmatprep.mubr.f32.mxu0 %v433_v51  ;;  %12671 = vmatpush3.bf16.msra.mxu0 %v12668_v47  ;;  %v1223_v47 = vld [vmem:[#allocation6 + $0x120] sm:$0xff] }
  0xae   : > { %12673 = vmatprep.subr.bf16.mxu0 %v12672_v52  ;;  %v12692_v51 = vpack.c.bf16 %v1224_v48, %v1223_v47  ;;  %v14912_v47 = vld [vmem:[%s14666_s24 + $0x170] sm:$0xff]  ;;  %v14917_v48 = vld [vmem:[%s14666_s24 + $0x178] sm:$0xff] }
  0xb0   : > { %10611 = vmatmul.mubr.f32.gmra.mrb[10].mxu0 %v434_v55  ;;  %v14749_v55 = vld [vmem:[%s14666_s24 + $0x30] sm:$0xff] }
  0xb1   : > { %10613 = vmatprep.mubr.f32.mxu0 %v435_v56  ;;  %12675 = vmatpush3.bf16.msra.mxu0 %v12672_v52  ;;  %v1225_v52 = vld [vmem:[#allocation6 + $0x130] sm:$0xff] }
  0xb2   : > { %12677 = vmatprep.subr.bf16.mxu0 %v12676_v57  ;;  %v12696_v56 = vpack.c.bf16 %v1226_v53, %v1225_v52  ;;  %v14925_v52 = vld [vmem:[%s14666_s24 + $0x188] sm:$0xff]  ;;  %v14928_v53 = vld [vmem:[%s14666_s24 + $0x190] sm:$0xff] }
  0xb4   : > { %10614 = vmatmul.mubr.f32.gmra.mrb[12].mxu0 %v436_v60  ;;  %v14757_v60 = vld [vmem:[%s14666_s24 + $0x40] sm:$0xff] }
  0xb5   : > { %10616 = vmatprep.mubr.f32.mxu0 %v437_v61  ;;  %12679 = vmatpush3.bf16.msra.mxu0 %v12676_v57  ;;  %v1227_v57 = vld [vmem:[#allocation6 + $0x140] sm:$0xff] }
  0xb6   : > { %12681 = vmatprep.subr.bf16.mxu0 %v12680_v62  ;;  %v12700_v61 = vpack.c.bf16 %v1228_v58, %v1227_v57  ;;  %v14936_v57 = vld [vmem:[%s14666_s24 + $0x1a0] sm:$0xff]  ;;  %v14941_v58 = vld [vmem:[%s14666_s24 + $0x1a8] sm:$0xff] }
  0xb8   : > { %10617 = vmatmul.mubr.f32.gmra.mrb[14].mxu0 %v438_v1  ;;  %v14765_v1 = vld [vmem:[%s14666_s24 + $0x50] sm:$0xff] }
  0xb9   : > { %10619 = vmatprep.mubr.f32.mxu0 %v439_v2  ;;  %12683 = vmatpush3.bf16.msra.mxu0 %v12680_v62  ;;  %v1229_v62 = vld [vmem:[#allocation6 + $0x150] sm:$0xff] }
  0xba   : > { %12685 = vmatprep.subr.bf16.mxu0 %v14693_v3  ;;  %v12704_v2 = vpack.c.bf16 %v1230_v63, %v1229_v62  ;;  %v1681_v62 = vld [vmem:[#allocation6 + $0x190] sm:$0xff]  ;;  %v1682_v63 = vld [vmem:[#allocation6 + $0x198] sm:$0xff] }
  0xbc   : > { %10620 = vmatmul.mubr.f32.gmra.mrb[16].mxu0 %v440_v4  ;;  %v1232_v4 = vld [vmem:[#allocation6 + $0x168] sm:$0xff] }
  0xbd   : > { %10622 = vmatprep.mubr.f32.mxu0 %v441_v5  ;;  %v14770_v5 = vld [vmem:[%s14666_s24 + $0x58] sm:$0xff] }
  0xc0   : > { %10623 = vmatmul.mubr.f32.gmra.mrb[18].mxu0 %v442_v6  ;;  %v14773_v6 = vld [vmem:[%s14666_s24 + $0x60] sm:$0xff] }
  0xc1   : > { %10625 = vmatprep.mubr.f32.mxu0 %v443_v7 }
  0xc4   : > { %10626 = vmatmul.mubr.f32.gmra.mrb[20].mxu0 %v444_v8  ;;  %v1233_v8 = vld [vmem:[#allocation6 + $0x170] sm:$0xff] }
  0xc5   : > { %10628 = vmatprep.mubr.f32.mxu0 %v445_v9  ;;  %v1234_v9 = vld [vmem:[#allocation6 + $0x178] sm:$0xff] }
  0xc8   : > { %10629 = vmatmul.mubr.f32.gmra.mrb[22].mxu0 %v446_v10  ;;  %v14778_v10 = vld [vmem:[%s14666_s24 + $0x68] sm:$0xff] }
  0xc9   : > { %10631 = vmatprep.mubr.f32.mxu0 %v447_v11  ;;  %v14781_v11 = vld [vmem:[%s14666_s24 + $0x70] sm:$0xff] }
  0xcc   : > { %10632 = vmatmul.mubr.f32.gmra.mrb[24].mxu0 %v448_v12  ;;  %v12712_v12 = vpack.c.bf16 %v1234_v9, %v1233_v8  ;;  %v1684_v8 = vld [vmem:[#allocation6 + $0x1a8] sm:$0xff] }
  0xcd   : > { %10634 = vmatprep.mubr.f32.mxu0 %v449_v13  ;;  %v1679_v13 = vld [vmem:[#allocation6 + $0x180] sm:$0xff]  ;;  %v14949_v9 = vld [vmem:[%s14666_s24 + $0x1a] sm:$0xff] }
  0xce   : > { %17114 = vst [vmem:[#allocation13_spill] sm:$0xff] %v14949_v9 }
  0xd0   : > { %10635 = vmatmul.mubr.f32.gmra.mrb[26].mxu0 %v450_v14  ;;  %v1680_v14 = vld [vmem:[#allocation6 + $0x188] sm:$0xff] }
  0xd1   : > { %10637 = vmatprep.mubr.f32.mxu0 %v451_v15  ;;  %v14786_v15 = vld [vmem:[%s14666_s24 + $0x78] sm:$0xff] }
  0xd4   : > { %10638 = vmatmul.mubr.f32.gmra.mrb[28].mxu0 %v452_v16  ;;  %v14789_v16 = vld [vmem:[%s14666_s24 + $0x80] sm:$0xff] }
  0xd5   : > { %10640 = vmatprep.mubr.f32.mxu0 %v453_v17  ;;  %v14791_v17 = vpack.c.bf16 %v1680_v14, %v1679_v13  ;;  %v1685_v14 = vld [vmem:[#allocation6 + $0x1b0] sm:$0xff] }
  0xd8   : > { %10641 = vmatmul.mubr.f32.gmra.mrb[30].mxu0 %v454_v18  ;;  %v14796_v18 = vld [vmem:[%s14666_s24 + $0x88] sm:$0xff] }
  0xd9   : > { %10643 = vmatprep.mubr.f32.mxu0 %v455_v19  ;;  %v14799_v19 = vld [vmem:[%s14666_s24 + $0x90] sm:$0xff] }
  0xdc   : > { %10644 = vmatmul.mubr.f32.gmra.mrb[32].mxu0 %v456_v20  ;;  %v14805_v20 = vld [vmem:[%s14666_s24 + $0x98] sm:$0xff] }
  0xdd   : > { %10646 = vmatprep.mubr.f32.mxu0 %v457_v21  ;;  %v14808_v21 = vld [vmem:[%s14666_s24 + $0xa0] sm:$0xff] }
  0xe0   : > { %10647 = vmatmul.mubr.f32.gmra.mrb[34].mxu0 %v458_v22  ;;  %v14813_v22 = vld [vmem:[%s14666_s24 + $0xa8] sm:$0xff] }
  0xe1   : > { %10649 = vmatprep.mubr.f32.mxu0 %v459_v23  ;;  %v14816_v23 = vld [vmem:[%s14666_s24 + $0xb0] sm:$0xff] }
  0xe4   : > { %10650 = vmatmul.mubr.f32.gmra.mrb[36].mxu0 %v460_v24  ;;  %v14821_v24 = vld [vmem:[%s14666_s24 + $0xb8] sm:$0xff] }
  0xe5   : > { %10652 = vmatprep.mubr.f32.mxu0 %v461_v25  ;;  %v14824_v25 = vld [vmem:[%s14666_s24 + $0xc0] sm:$0xff] }
  0xe8   : > { %10653 = vmatmul.mubr.f32.gmra.mrb[38].mxu0 %v462_v26  ;;  %v14829_v26 = vld [vmem:[%s14666_s24 + $0xc8] sm:$0xff] }
  0xe9   : > { %10655 = vmatprep.mubr.f32.mxu0 %v463_v27  ;;  %v14832_v27 = vld [vmem:[%s14666_s24 + $0xd0] sm:$0xff] }
  0xec   : > { %10656 = vmatmul.mubr.f32.gmra.mrb[40].mxu0 %v464_v28  ;;  %v14837_v28 = vld [vmem:[%s14666_s24 + $0xd8] sm:$0xff] }
  0xed   : > { %10658 = vmatprep.mubr.f32.mxu0 %v465_v29  ;;  %v14840_v29 = vld [vmem:[%s14666_s24 + $0xe0] sm:$0xff] }
  0xf0   : > { %10659 = vmatmul.mubr.f32.gmra.mrb[42].mxu0 %v466_v30  ;;  %v14845_v30 = vld [vmem:[%s14666_s24 + $0xe8] sm:$0xff] }
  0xf1   : > { %10661 = vmatprep.mubr.f32.mxu0 %v467_v31  ;;  %v14848_v31 = vld [vmem:[%s14666_s24 + $0xf0] sm:$0xff] }
  0xf4   : > { %10662 = vmatmul.mubr.f32.gmra.mrb[44].mxu0 %v468_v32  ;;  %v14853_v32 = vld [vmem:[%s14666_s24 + $0xf8] sm:$0xff] }
  0xf5   : > { %10664 = vmatprep.mubr.f32.mxu0 %v469_v33  ;;  %v14856_v33 = vld [vmem:[%s14666_s24 + $0x100] sm:$0xff] }
  0xf8   : > { %10665 = vmatmul.mubr.f32.gmra.mrb[46].mxu0 %v470_v34  ;;  %v14861_v34 = vld [vmem:[%s14666_s24 + $0x108] sm:$0xff] }
  0xf9   : > { %10667 = vmatprep.mubr.f32.mxu0 %v471_v35  ;;  %v14864_v35 = vld [vmem:[%s14666_s24 + $0x110] sm:$0xff] }
  0xfc   : > { %10668 = vmatmul.mubr.f32.gmra.mrb[48].mxu0 %v472_v36  ;;  %v14869_v36 = vld [vmem:[%s14666_s24 + $0x118] sm:$0xff] }
  0xfd   : > { %10670 = vmatprep.mubr.f32.mxu0 %v473_v37  ;;  %v14872_v37 = vld [vmem:[%s14666_s24 + $0x120] sm:$0xff] }
 0x100   : > { %10671 = vmatmul.mubr.f32.gmra.mrb[50].mxu0 %v474_v38  ;;  %v14877_v38 = vld [vmem:[%s14666_s24 + $0x128] sm:$0xff] }
 0x101   : > { %10673 = vmatprep.mubr.f32.mxu0 %v475_v39  ;;  %v14880_v39 = vld [vmem:[%s14666_s24 + $0x130] sm:$0xff] }
 0x104   : > { %10674 = vmatmul.mubr.f32.gmra.mrb[52].mxu0 %v476_v40  ;;  %v14885_v40 = vld [vmem:[%s14666_s24 + $0x138] sm:$0xff] }
 0x105   : > { %10708 = vmatprep.mubr.f32.mxu0 %v353_v41  ;;  %v14888_v41 = vld [vmem:[%s14666_s24 + $0x140] sm:$0xff] }
 0x108   : > { %10709 = vmatmul.mubr.f32.vlgmr.msra.gmra.mrb[0].mxu0 %v354_v44  ;;  %v14901_v44 = vld [vmem:[%s14666_s24 + $0x158] sm:$0xff] }
 0x109   : > { %12687 = vmatpush3.bf16.msra.mxu0 %v14693_v3  ;;  %10711 = vmatprep.mubr.f32.mxu0 %v355_v45  ;;  %v1231_v3 = vld [vmem:[#allocation6 + $0x160] sm:$0xff]  ;;  %v14904_v45 = vld [vmem:[%s14666_s24 + $0x160] sm:$0xff] }
 0x10a   : > { %12689 = vmatprep.subr.bf16.mxu0 %v12688_v46  ;;  %v12708_v7 = vpack.c.bf16 %v1232_v4, %v1231_v3  ;;  %v1166_v3 = vld [vmem:[%s14666_s24 + $0x12] sm:$0xff]  ;;  %v12720_v4 = vpack.c.bf16 %v1682_v63, %v1681_v62  ;;  %v14957_v62 = vld [vmem:[%s14666_s24 + $0x2a] sm:$0xff] }
 0x10b   : > { %17116 = vst [vmem:[#allocation15_spill] sm:$0xff] %v14957_v62  ;;  %v14960_v63 = vld [vmem:[%s14666_s24 + $0x32] sm:$0xff] }
 0x10c   : > { %10712 = vmatmul.mubr.f32.gmra.mrb[2].mxu0 %v14738_v49  ;;  %17117 = vst [vmem:[#allocation16_spill] sm:$0xff] %v14960_v63 }
 0x10d   : > { %10714 = vmatprep.mubr.f32.mxu0 %v14741_v50  ;;  %12691 = vmatpush3.bf16.msra.mxu0 %v12688_v46  ;;  %v14909_v46 = vld [vmem:[%s14666_s24 + $0x168] sm:$0xff] }
 0x10e   : > { %12693 = vmatprep.subr.bf16.mxu0 %v12692_v51 }
 0x110   : > { %10715 = vmatmul.mubr.f32.gmra.mrb[4].mxu0 %v14746_v54 }
 0x111   : > { %10717 = vmatprep.mubr.f32.mxu0 %v14749_v55  ;;  %12695 = vmatpush3.bf16.msra.mxu0 %v12692_v51  ;;  %v14920_v51 = vld [vmem:[%s14666_s24 + $0x180] sm:$0xff] }
 0x112   : > { %12697 = vmatprep.subr.bf16.mxu0 %v12696_v56 }
 0x114   : > { %10718 = vmatmul.mubr.f32.gmra.mrb[6].mxu0 %v14754_v59 }
 0x115   : > { %10720 = vmatprep.mubr.f32.mxu0 %v14757_v60  ;;  %12699 = vmatpush3.bf16.msra.mxu0 %v12696_v56  ;;  %v14933_v56 = vld [vmem:[%s14666_s24 + $0x198] sm:$0xff] }
 0x116   : > { %12701 = vmatprep.subr.bf16.mxu0 %v12700_v61 }
 0x118   : > { %10721 = vmatmul.mubr.f32.gmra.mrb[8].mxu0 %v14762_v0 }
 0x119   : > { %10723 = vmatprep.mubr.f32.mxu0 %v14765_v1  ;;  %12703 = vmatpush3.bf16.msra.mxu0 %v12700_v61  ;;  %v1164_v61 = vld [vmem:[%s14666_s24 + $0x2] sm:$0xff] }
 0x11a   : > { %12705 = vmatprep.subr.bf16.mxu0 %v12704_v2 }
 0x11c   : > { %10724 = vmatmul.mubr.f32.gmra.mrb[10].mxu0 %v14770_v5 }
 0x11d   : > { %10726 = vmatprep.mubr.f32.mxu0 %v14773_v6  ;;  %12707 = vmatpush3.bf16.msra.mxu0 %v12704_v2  ;;  %v1165_v2 = vld [vmem:[%s14666_s24 + $0xa] sm:$0xff] }
 0x11e   : > { %12709 = vmatprep.subr.bf16.mxu0 %v12708_v7 }
 0x120   : > { %10727 = vmatmul.mubr.f32.gmra.mrb[12].mxu0 %v14778_v10 }
 0x121   : > { %10729 = vmatprep.mubr.f32.mxu0 %v14781_v11  ;;  %12711 = vmatpush3.bf16.msra.mxu0 %v12708_v7  ;;  %v1683_v7 = vld [vmem:[#allocation6 + $0x1a0] sm:$0xff] }
 0x122   : > { %12713 = vmatprep.subr.bf16.mxu0 %v12712_v12  ;;  %v12724_v13 = vpack.c.bf16 %v1684_v8, %v1683_v7  ;;  %v14965_v7 = vld [vmem:[%s14666_s24 + $0x3a] sm:$0xff]  ;;  %v14968_v8 = vld [vmem:[%s14666_s24 + $0x42] sm:$0xff] }
 0x123   : > { %17118 = vst [vmem:[#allocation17_spill] sm:$0xff] %v14965_v7  ;;  %17119 = vst [vmem:[#allocation18_spill] sm:$0xff] %v14968_v8 }
 0x124   : > { %10730 = vmatmul.mubr.f32.gmra.mrb[14].mxu0 %v14786_v15 }
 0x125   : > { %10732 = vmatprep.mubr.f32.mxu0 %v14789_v16  ;;  %12715 = vmatpush3.bf16.msra.mxu0 %v12712_v12  ;;  %v14952_v12 = vld [vmem:[%s14666_s24 + $0x22] sm:$0xff] }
 0x126   : > { %12717 = vmatprep.subr.bf16.mxu0 %v14791_v17  ;;  %17115 = vst [vmem:[#allocation14_spill] sm:$0xff] %v14952_v12 }
 0x128   : > { %10733 = vmatmul.mubr.f32.gmra.mrb[16].mxu0 %v14796_v18 }
 0x129   : > { %10735 = vmatprep.mubr.f32.mxu0 %v14799_v19 }
 0x12c   : > { %10736 = vmatmul.mubr.f32.gmra.mrb[18].mxu0 %v14805_v20 }
 0x12d   : > { %10738 = vmatprep.mubr.f32.mxu0 %v14808_v21 }
 0x130   : > { %10739 = vmatmul.mubr.f32.gmra.mrb[20].mxu0 %v14813_v22 }
 0x131   : > { %10741 = vmatprep.mubr.f32.mxu0 %v14816_v23 }
 0x134   : > { %10742 = vmatmul.mubr.f32.gmra.mrb[22].mxu0 %v14821_v24 }
 0x135   : > { %10744 = vmatprep.mubr.f32.mxu0 %v14824_v25 }
 0x138   : > { %10745 = vmatmul.mubr.f32.gmra.mrb[24].mxu0 %v14829_v26 }
 0x139   : > { %10747 = vmatprep.mubr.f32.mxu0 %v14832_v27 }
 0x13c   : > { %10748 = vmatmul.mubr.f32.gmra.mrb[26].mxu0 %v14837_v28 }
 0x13d   : > { %10750 = vmatprep.mubr.f32.mxu0 %v14840_v29 }
 0x140   : > { %10751 = vmatmul.mubr.f32.gmra.mrb[28].mxu0 %v14845_v30 }
 0x141   : > { %10753 = vmatprep.mubr.f32.mxu0 %v14848_v31 }
 0x144   : > { %10754 = vmatmul.mubr.f32.gmra.mrb[30].mxu0 %v14853_v32 }
 0x145   : > { %10756 = vmatprep.mubr.f32.mxu0 %v14856_v33 }
 0x148   : > { %10757 = vmatmul.mubr.f32.gmra.mrb[32].mxu0 %v14861_v34 }
 0x149   : > { %10759 = vmatprep.mubr.f32.mxu0 %v14864_v35 }
 0x14c   : > { %10760 = vmatmul.mubr.f32.gmra.mrb[34].mxu0 %v14869_v36 }
 0x14d   : > { %10762 = vmatprep.mubr.f32.mxu0 %v14872_v37 }
 0x150   : > { %10763 = vmatmul.mubr.f32.gmra.mrb[36].mxu0 %v14877_v38 }
 0x151   : > { %10765 = vmatprep.mubr.f32.mxu0 %v14880_v39 }
 0x154   : > { %10766 = vmatmul.mubr.f32.gmra.mrb[38].mxu0 %v14885_v40 }
 0x155   : > { %10768 = vmatprep.mubr.f32.mxu0 %v14888_v41 }
 0x158   : > { %10769 = vmatmul.mubr.f32.gmra.mrb[40].mxu0 %v14893_v42 }
 0x159   : > { %10771 = vmatprep.mubr.f32.mxu0 %v14896_v43 }
 0x15c   : > { %10772 = vmatmul.mubr.f32.gmra.mrb[42].mxu0 %v14901_v44 }
 0x15d   : > { %10774 = vmatprep.mubr.f32.mxu0 %v14904_v45 }
 0x160   : > { %10775 = vmatmul.mubr.f32.gmra.mrb[44].mxu0 %v14909_v46 }
 0x161   : > { %10777 = vmatprep.mubr.f32.mxu0 %v14912_v47 }
 0x164   : > { %10778 = vmatmul.mubr.f32.gmra.mrb[46].mxu0 %v14917_v48 }
 0x165   : > { %10780 = vmatprep.mubr.f32.mxu0 %v14920_v51 }
 0x168   : > { %10781 = vmatmul.mubr.f32.gmra.mrb[48].mxu0 %v14925_v52 }
 0x169   : > { %10783 = vmatprep.mubr.f32.mxu0 %v14928_v53 }
 0x16c   : > { %10784 = vmatmul.mubr.f32.gmra.mrb[50].mxu0 %v14933_v56 }
 0x16d   : > { %10786 = vmatprep.mubr.f32.mxu0 %v14936_v57 }
 0x170   : > { %10787 = vmatmul.mubr.f32.gmra.mrb[52].mxu0 %v14941_v58 }
 0x171   : > { %10821 = vmatprep.mubr.f32.mxu0 %v1164_v61  ;;  %v1686_v61 = vld [vmem:[#allocation6 + $0x1b8] sm:$0xff] }
 0x174   : > { %10822 = vmatmul.mubr.f32.vlgmr.msra.gmra.mrb[0].mxu0 %v1165_v2  ;;  %v1687_v2 = vld [vmem:[#allocation6 + $0x1c0] sm:$0xff] }
 0x175   : > { %12719 = vmatpush3.bf16.msra.mxu0 %v14791_v17  ;;  %10824 = vmatprep.mubr.f32.mxu0 %v1166_v3  ;;  %v12728_v17 = vpack.c.bf16 %v1686_v61, %v1685_v14  ;;  %v1688_v3 = vld [vmem:[#allocation6 + $0x1c8] sm:$0xff] }
 0x176   : > { %12721 = vmatprep.subr.bf16.mxu0 %v12720_v4  ;;  %v14973_v14 = vld [vmem:[%s14666_s24 + $0x4a] sm:$0xff]  ;;  %v14976_v61 = vld [vmem:[%s14666_s24 + $0x52] sm:$0xff] }
 0x177   : > { %17120 = vst [vmem:[#allocation19_spill] sm:$0xff] %v14973_v14  ;;  %17121 = vst [vmem:[#allocation20_spill] sm:$0xff] %v14976_v61 }
 0x178   : > { %10825 = vmatmul.mubr.f32.gmra.mrb[2].mxu0 %v14949_v9  ;;  %v1690_v9 = vld [vmem:[#allocation6 + $0x1d8] sm:$0xff] }
 0x179   : > { %10827 = vmatprep.mubr.f32.mxu0 %v14952_v12  ;;  %12723 = vmatpush3.bf16.msra.mxu0 %v12720_v4  ;;  %v12732_v4 = vpack.c.bf16 %v1688_v3, %v1687_v2  ;;  %v1689_v12 = vld [vmem:[#allocation6 + $0x1d0] sm:$0xff] }
 0x17a   : > { %12725 = vmatprep.subr.bf16.mxu0 %v12724_v13  ;;  %v14981_v2 = vld [vmem:[%s14666_s24 + $0x5a] sm:$0xff]  ;;  %v14984_v3 = vld [vmem:[%s14666_s24 + $0x62] sm:$0xff] }
 0x17c   : > { %10828 = vmatmul.mubr.f32.gmra.mrb[4].mxu0 %v14957_v62  ;;  %v1692_v62 = vld [vmem:[#allocation6 + $0x1e8] sm:$0xff] }
 0x17d   : > { %10830 = vmatprep.mubr.f32.mxu0 %v14960_v63  ;;  %12727 = vmatpush3.bf16.msra.mxu0 %v12724_v13  ;;  %v12736_v13 = vpack.c.bf16 %v1690_v9, %v1689_v12  ;;  %v1691_v63 = vld [vmem:[#allocation6 + $0x1e0] sm:$0xff] }
 0x17e   : > { %12729 = vmatprep.subr.bf16.mxu0 %v12728_v17  ;;  %v14989_v9 = vld [vmem:[%s14666_s24 + $0x6a] sm:$0xff]  ;;  %v14992_v12 = vld [vmem:[%s14666_s24 + $0x72] sm:$0xff] }
 0x17f   : > { %17122 = vst [vmem:[#allocation21_spill] sm:$0xff] %v14992_v12 }
 0x180   : > { %10831 = vmatmul.mubr.f32.gmra.mrb[6].mxu0 %v14965_v7  ;;  %v1694_v7 = vld [vmem:[#allocation6 + $0x1f8] sm:$0xff] }
 0x181   : > { %10833 = vmatprep.mubr.f32.mxu0 %v14968_v8  ;;  %12731 = vmatpush3.bf16.msra.mxu0 %v12728_v17  ;;  %v12740_v17 = vpack.c.bf16 %v1692_v62, %v1691_v63  ;;  %v1693_v8 = vld [vmem:[#allocation6 + $0x1f0] sm:$0xff] }
 0x182   : > { %12733 = vmatprep.subr.bf16.mxu0 %v12732_v4  ;;  %v14997_v62 = vld [vmem:[%s14666_s24 + $0x7a] sm:$0xff]  ;;  %v15000_v63 = vld [vmem:[%s14666_s24 + $0x82] sm:$0xff] }
 0x183   : > { %17123 = vst [vmem:[#allocation22_spill] sm:$0xff] %v14997_v62  ;;  %17124 = vst [vmem:[#allocation23_spill] sm:$0xff] %v15000_v63 }
 0x184   : > { %10834 = vmatmul.mubr.f32.gmra.mrb[8].mxu0 %v14973_v14  ;;  %v2140_v14 = vld [vmem:[#allocation6 + $0x208] sm:$0xff] }
 0x185   : > { %10836 = vmatprep.mubr.f32.mxu0 %v14976_v61  ;;  %12735 = vmatpush3.bf16.msra.mxu0 %v12732_v4  ;;  %v12744_v4 = vpack.c.bf16 %v1694_v7, %v1693_v8  ;;  %v2139_v61 = vld [vmem:[#allocation6 + $0x200] sm:$0xff] }
 0x186   : > { %12737 = vmatprep.subr.bf16.mxu0 %v12736_v13  ;;  %v15007_v7 = vld [vmem:[%s14666_s24 + $0x8a] sm:$0xff]  ;;  %v15010_v8 = vld [vmem:[%s14666_s24 + $0x92] sm:$0xff] }
 0x187   : > { %17125 = vst [vmem:[#allocation24_spill] sm:$0xff] %v15007_v7  ;;  %17126 = vst [vmem:[#allocation25_spill] sm:$0xff] %v15010_v8 }
 0x188   : > { %10837 = vmatmul.mubr.f32.gmra.mrb[10].mxu0 %v14981_v2 }
 0x189   : > { %10839 = vmatprep.mubr.f32.mxu0 %v14984_v3  ;;  %12739 = vmatpush3.bf16.msra.mxu0 %v12736_v13  ;;  %v15002_v13 = vpack.c.bf16 %v2140_v14, %v2139_v61  ;;  %v15016_v14 = vld [vmem:[%s14666_s24 + $0x9a] sm:$0xff]  ;;  %v15019_v61 = vld [vmem:[%s14666_s24 + $0xa2] sm:$0xff] }
 0x18a   : > { %12741 = vmatprep.subr.bf16.mxu0 %v12740_v17  ;;  %17127 = vst [vmem:[#allocation26_spill] sm:$0xff] %v15016_v14  ;;  %17128 = vst [vmem:[#allocation27_spill] sm:$0xff] %v15019_v61 }
 0x18c   : > { %10840 = vmatmul.mubr.f32.gmra.mrb[12].mxu0 %v14989_v9 }
 0x18d   : > { %10842 = vmatprep.mubr.f32.mxu0 %v14992_v12  ;;  %12743 = vmatpush3.bf16.msra.mxu0 %v12740_v17  ;;  %v15024_v17 = vld [vmem:[%s14666_s24 + $0xaa] sm:$0xff] }
 0x18e   : > { %12745 = vmatprep.subr.bf16.mxu0 %v12744_v4  ;;  %17129 = vst [vmem:[#allocation28_spill] sm:$0xff] %v15024_v17  ;;  %v2144_v12 = vld [vmem:[#allocation6 + $0x228] sm:$0xff] }
 0x190   : > { %10843 = vmatmul.mubr.f32.gmra.mrb[14].mxu0 %v14997_v62 }
 0x191   : > { %10845 = vmatprep.mubr.f32.mxu0 %v15000_v63  ;;  %12747 = vmatpush3.bf16.msra.mxu0 %v12744_v4  ;;  %v15027_v4 = vld [vmem:[%s14666_s24 + $0xb2] sm:$0xff]  ;;  %v15144_v63 = vld [vmem:[%s14666_s24 + $0x19a] sm:$0xff] }
 0x192   : > { %12749 = vmatprep.subr.bf16.mxu0 %v15002_v13  ;;  %17130 = vst [vmem:[#allocation29_spill] sm:$0xff] %v15027_v4  ;;  %17159 = vst [vmem:[#allocation58_spill] sm:$0xff] %v15144_v63 }
 0x194   : > { %10846 = vmatmul.mubr.f32.gmra.mrb[16].mxu0 %v15007_v7  ;;  %v15035_v7 = vld [vmem:[%s14666_s24 + $0xc2] sm:$0xff] }
 0x195   : > { %10848 = vmatprep.mubr.f32.mxu0 %v15010_v8  ;;  %v15032_v8 = vld [vmem:[%s14666_s24 + $0xba] sm:$0xff]  ;;  %17132 = vst [vmem:[#allocation31_spill] sm:$0xff] %v15035_v7 }
 0x196   : > { %17131 = vst [vmem:[#allocation30_spill] sm:$0xff] %v15032_v8 }
 0x198   : > { %10849 = vmatmul.mubr.f32.gmra.mrb[18].mxu0 %v15016_v14  ;;  %v15043_v14 = vld [vmem:[%s14666_s24 + $0xd2] sm:$0xff] }
 0x199   : > { %10851 = vmatprep.mubr.f32.mxu0 %v15019_v61  ;;  %v15040_v61 = vld [vmem:[%s14666_s24 + $0xca] sm:$0xff]  ;;  %17134 = vst [vmem:[#allocation33_spill] sm:$0xff] %v15043_v14 }
 0x19a   : > { %17133 = vst [vmem:[#allocation32_spill] sm:$0xff] %v15040_v61 }
 0x19c   : > { %10852 = vmatmul.mubr.f32.gmra.mrb[20].mxu0 %v15024_v17  ;;  %v15051_v17 = vld [vmem:[%s14666_s24 + $0xe2] sm:$0xff] }
 0x19d   : > { %10854 = vmatprep.mubr.f32.mxu0 %v15027_v4  ;;  %v15048_v4 = vld [vmem:[%s14666_s24 + $0xda] sm:$0xff]  ;;  %17136 = vst [vmem:[#allocation35_spill] sm:$0xff] %v15051_v17 }
 0x19e   : > { %17135 = vst [vmem:[#allocation34_spill] sm:$0xff] %v15048_v4 }
 0x1a0   : > { %10855 = vmatmul.mubr.f32.gmra.mrb[22].mxu0 %v15032_v8  ;;  %v15059_v8 = vld [vmem:[%s14666_s24 + $0xf2] sm:$0xff] }
 0x1a1   : > { %10857 = vmatprep.mubr.f32.mxu0 %v15035_v7  ;;  %v15056_v7 = vld [vmem:[%s14666_s24 + $0xea] sm:$0xff]  ;;  %17138 = vst [vmem:[#allocation37_spill] sm:$0xff] %v15059_v8 }
 0x1a2   : > { %17137 = vst [vmem:[#allocation36_spill] sm:$0xff] %v15056_v7 }
 0x1a4   : > { %10858 = vmatmul.mubr.f32.gmra.mrb[24].mxu0 %v15040_v61  ;;  %v15067_v61 = vld [vmem:[%s14666_s24 + $0x102] sm:$0xff] }
 0x1a5   : > { %10860 = vmatprep.mubr.f32.mxu0 %v15043_v14  ;;  %v15064_v14 = vld [vmem:[%s14666_s24 + $0xfa] sm:$0xff]  ;;  %17140 = vst [vmem:[#allocation39_spill] sm:$0xff] %v15067_v61 }
 0x1a6   : > { %17139 = vst [vmem:[#allocation38_spill] sm:$0xff] %v15064_v14 }
 0x1a8   : > { %10861 = vmatmul.mubr.f32.gmra.mrb[26].mxu0 %v15048_v4  ;;  %v15075_v4 = vld [vmem:[%s14666_s24 + $0x112] sm:$0xff] }
 0x1a9   : > { %10863 = vmatprep.mubr.f32.mxu0 %v15051_v17  ;;  %v15072_v17 = vld [vmem:[%s14666_s24 + $0x10a] sm:$0xff]  ;;  %17142 = vst [vmem:[#allocation41_spill] sm:$0xff] %v15075_v4 }
 0x1aa   : > { %17141 = vst [vmem:[#allocation40_spill] sm:$0xff] %v15072_v17 }
 0x1ac   : > { %10864 = vmatmul.mubr.f32.gmra.mrb[28].mxu0 %v15056_v7  ;;  %v15083_v7 = vld [vmem:[%s14666_s24 + $0x122] sm:$0xff] }
 0x1ad   : > { %10866 = vmatprep.mubr.f32.mxu0 %v15059_v8  ;;  %v15080_v8 = vld [vmem:[%s14666_s24 + $0x11a] sm:$0xff]  ;;  %17144 = vst [vmem:[#allocation43_spill] sm:$0xff] %v15083_v7 }
 0x1ae   : > { %17143 = vst [vmem:[#allocation42_spill] sm:$0xff] %v15080_v8 }
 0x1b0   : > { %10867 = vmatmul.mubr.f32.gmra.mrb[30].mxu0 %v15064_v14  ;;  %v15091_v14 = vld [vmem:[%s14666_s24 + $0x132] sm:$0xff] }
 0x1b1   : > { %10869 = vmatprep.mubr.f32.mxu0 %v15067_v61  ;;  %v15088_v61 = vld [vmem:[%s14666_s24 + $0x12a] sm:$0xff]  ;;  %17146 = vst [vmem:[#allocation45_spill] sm:$0xff] %v15091_v14 }
 0x1b2   : > { %17145 = vst [vmem:[#allocation44_spill] sm:$0xff] %v15088_v61 }
 0x1b4   : > { %10870 = vmatmul.mubr.f32.gmra.mrb[32].mxu0 %v15072_v17  ;;  %v15099_v17 = vld [vmem:[%s14666_s24 + $0x142] sm:$0xff] }
 0x1b5   : > { %10872 = vmatprep.mubr.f32.mxu0 %v15075_v4  ;;  %v15096_v4 = vld [vmem:[%s14666_s24 + $0x13a] sm:$0xff]  ;;  %17148 = vst [vmem:[#allocation47_spill] sm:$0xff] %v15099_v17 }
 0x1b6   : > { %17147 = vst [vmem:[#allocation46_spill] sm:$0xff] %v15096_v4 }
 0x1b8   : > { %10873 = vmatmul.mubr.f32.gmra.mrb[34].mxu0 %v15080_v8  ;;  %v15107_v8 = vld [vmem:[%s14666_s24 + $0x152] sm:$0xff] }
 0x1b9   : > { %10875 = vmatprep.mubr.f32.mxu0 %v15083_v7  ;;  %v15104_v7 = vld [vmem:[%s14666_s24 + $0x14a] sm:$0xff]  ;;  %17150 = vst [vmem:[#allocation49_spill] sm:$0xff] %v15107_v8 }
 0x1ba   : > { %17149 = vst [vmem:[#allocation48_spill] sm:$0xff] %v15104_v7 }
 0x1bc   : > { %10876 = vmatmul.mubr.f32.gmra.mrb[36].mxu0 %v15088_v61  ;;  %v15115_v61 = vld [vmem:[%s14666_s24 + $0x162] sm:$0xff] }
 0x1bd   : > { %10878 = vmatprep.mubr.f32.mxu0 %v15091_v14  ;;  %v15112_v14 = vld [vmem:[%s14666_s24 + $0x15a] sm:$0xff]  ;;  %17152 = vst [vmem:[#allocation51_spill] sm:$0xff] %v15115_v61 }
 0x1be   : > { %17151 = vst [vmem:[#allocation50_spill] sm:$0xff] %v15112_v14 }
 0x1c0   : > { %10879 = vmatmul.mubr.f32.gmra.mrb[38].mxu0 %v15096_v4  ;;  %v15123_v4 = vld [vmem:[%s14666_s24 + $0x172] sm:$0xff] }
 0x1c1   : > { %10881 = vmatprep.mubr.f32.mxu0 %v15099_v17  ;;  %v15120_v17 = vld [vmem:[%s14666_s24 + $0x16a] sm:$0xff]  ;;  %17154 = vst [vmem:[#allocation53_spill] sm:$0xff] %v15123_v4 }
 0x1c2   : > { %17153 = vst [vmem:[#allocation52_spill] sm:$0xff] %v15120_v17 }
 0x1c4   : > { %10882 = vmatmul.mubr.f32.gmra.mrb[40].mxu0 %v15104_v7  ;;  %v15131_v7 = vld [vmem:[%s14666_s24 + $0x182] sm:$0xff] }
 0x1c5   : > { %10884 = vmatprep.mubr.f32.mxu0 %v15107_v8  ;;  %v15128_v8 = vld [vmem:[%s14666_s24 + $0x17a] sm:$0xff]  ;;  %17156 = vst [vmem:[#allocation55_spill] sm:$0xff] %v15131_v7 }
 0x1c6   : > { %17155 = vst [vmem:[#allocation54_spill] sm:$0xff] %v15128_v8 }
 0x1c8   : > { %10885 = vmatmul.mubr.f32.gmra.mrb[42].mxu0 %v15112_v14  ;;  %v15136_v14 = vld [vmem:[%s14666_s24 + $0x18a] sm:$0xff] }
 0x1c9   : > { %10887 = vmatprep.mubr.f32.mxu0 %v15115_v61  ;;  %17157 = vst [vmem:[#allocation56_spill] sm:$0xff] %v15136_v14  ;;  %v15139_v61 = vld [vmem:[%s14666_s24 + $0x192] sm:$0xff] }
 0x1ca   : > { %17158 = vst [vmem:[#allocation57_spill] sm:$0xff] %v15139_v61 }
 0x1cc   : > { %10888 = vmatmul.mubr.f32.gmra.mrb[44].mxu0 %v15120_v17  ;;  %v15147_v17 = vld [vmem:[%s14666_s24 + $0x1a2] sm:$0xff] }
 0x1cd   : > { %10890 = vmatprep.mubr.f32.mxu0 %v15123_v4  ;;  %17160 = vst [vmem:[#allocation59_spill] sm:$0xff] %v15147_v17  ;;  %v15152_v4 = vld [vmem:[%s14666_s24 + $0x1aa] sm:$0xff] }
 0x1d0   : > { %10891 = vmatmul.mubr.f32.gmra.mrb[46].mxu0 %v15128_v8  ;;  %v2141_v8 = vld [vmem:[#allocation6 + $0x210] sm:$0xff] }
 0x1d1   : > { %10893 = vmatprep.mubr.f32.mxu0 %v15131_v7  ;;  %v2142_v7 = vld [vmem:[#allocation6 + $0x218] sm:$0xff] }
 0x1d2   : > { %v12752_v62 = vpack.c.bf16 %v2142_v7, %v2141_v8  ;;  %v2147_v7 = vld [vmem:[#allocation6 + $0x240] sm:$0xff]  ;;  %v2148_v8 = vld [vmem:[#allocation6 + $0x248] sm:$0xff] }
 0x1d4   : > { %10894 = vmatmul.mubr.f32.gmra.mrb[48].mxu0 %v15136_v14  ;;  %v2143_v14 = vld [vmem:[#allocation6 + $0x220] sm:$0xff] }
 0x1d5   : > { %10896 = vmatprep.mubr.f32.mxu0 %v15139_v61  ;;  %v2146_v61 = vld [vmem:[#allocation6 + $0x238] sm:$0xff] }
 0x1d8   : > { %10897 = vmatmul.mubr.f32.gmra.mrb[50].mxu0 %v15144_v63  ;;  %v12756_v63 = vpack.c.bf16 %v2144_v12, %v2143_v14  ;;  %v2150_v12 = vld [vmem:[#allocation6 + $0x258] sm:$0xff]  ;;  %v15271_v14 = vld [vmem:[%s14666_s24 + $0x91] sm:$0xff] }
 0x1d9   : > { %10899 = vmatprep.mubr.f32.mxu0 %v15147_v17  ;;  %v2145_v17 = vld [vmem:[#allocation6 + $0x230] sm:$0xff] }
 0x1dc   : > { %10900 = vmatmul.mubr.f32.gmra.mrb[52].mxu0 %v15152_v4 }
 0x1dd   : > { %10934 = vmatprep.mubr.f32.mxu0 %v14738_v49  ;;  %v12760_v49 = vpack.c.bf16 %v2146_v61, %v2145_v17  ;;  %v15274_v61 = vld [vmem:[%s14666_s24 + $0x99] sm:$0xff] }
 0x1e0   : > { %10935 = vmatmul.mubr.f32.vlgmr.msra.gmra.mrb[0].mxu0 %v14741_v50  ;;  %v12764_v50 = vpack.c.bf16 %v2148_v8, %v2147_v7  ;;  %v15284_v7 = vld [vmem:[%s14666_s24 + $0xa9] sm:$0xff]  ;;  %v15290_v8 = vld [vmem:[%s14666_s24 + $0xb1] sm:$0xff] }
 0x1e1   : > { %12751 = vmatpush3.bf16.msra.mxu0 %v15002_v13  ;;  %10937 = vmatprep.mubr.f32.mxu0 %v14746_v54  ;;  %v2149_v54 = vld [vmem:[#allocation6 + $0x250] sm:$0xff]  ;;  %v2600_v13 = vld [vmem:[#allocation6 + $0x288] sm:$0xff] }
 0x1e2   : > { %12753 = vmatprep.subr.bf16.mxu0 %v12752_v62 }
 0x1e4   : > { %10938 = vmatmul.mubr.f32.gmra.mrb[2].mxu0 %v14749_v55  ;;  %v12768_v55 = vpack.c.bf16 %v2150_v12, %v2149_v54  ;;  %v15298_v54 = vld [vmem:[%s14666_s24 + $0xc1] sm:$0xff]  ;;  %v15301_v12 = vld [vmem:[%s14666_s24 + $0xc9] sm:$0xff] }
 0x1e5   : > { %10940 = vmatprep.mubr.f32.mxu0 %v14754_v59  ;;  %12755 = vmatpush3.bf16.msra.mxu0 %v12752_v62  ;;  %v2151_v59 = vld [vmem:[#allocation6 + $0x260] sm:$0xff]  ;;  %v2152_v62 = vld [vmem:[#allocation6 + $0x268] sm:$0xff] }
 0x1e6   : > { %12757 = vmatprep.subr.bf16.mxu0 %v12756_v63 }
 0x1e8   : > { %10941 = vmatmul.mubr.f32.gmra.mrb[4].mxu0 %v14757_v60  ;;  %v12772_v60 = vpack.c.bf16 %v2152_v62, %v2151_v59  ;;  %v15309_v59 = vld [vmem:[%s14666_s24 + $0xd9] sm:$0xff]  ;;  %v15314_v62 = vld [vmem:[%s14666_s24 + $0xe1] sm:$0xff] }
 0x1e9   : > { %10943 = vmatprep.mubr.f32.mxu0 %v14762_v0  ;;  %12759 = vmatpush3.bf16.msra.mxu0 %v12756_v63  ;;  %v2153_v0 = vld [vmem:[#allocation6 + $0x270] sm:$0xff]  ;;  %v2154_v63 = vld [vmem:[#allocation6 + $0x278] sm:$0xff] }
 0x1ea   : > { %12761 = vmatprep.subr.bf16.mxu0 %v12760_v49 }
 0x1ec   : > { %10944 = vmatmul.mubr.f32.gmra.mrb[6].mxu0 %v14765_v1  ;;  %v12776_v1 = vpack.c.bf16 %v2154_v63, %v2153_v0  ;;  %v15322_v0 = vld [vmem:[%s14666_s24 + $0xf1] sm:$0xff]  ;;  %v15325_v63 = vld [vmem:[%s14666_s24 + $0xf9] sm:$0xff] }
 0x1ed   : > { %10946 = vmatprep.mubr.f32.mxu0 %v14770_v5  ;;  %12763 = vmatpush3.bf16.msra.mxu0 %v12760_v49  ;;  %v2599_v5 = vld [vmem:[#allocation6 + $0x280] sm:$0xff] }
 0x1ee   : > { %12765 = vmatprep.subr.bf16.mxu0 %v12764_v50  ;;  %v15281_v49 = vld [vmem:[%s14666_s24 + $0xa1] sm:$0xff] }
 0x1f0   : > { %10947 = vmatmul.mubr.f32.gmra.mrb[8].mxu0 %v14773_v6  ;;  %v12780_v6 = vpack.c.bf16 %v2600_v13, %v2599_v5  ;;  %v15333_v5 = vld [vmem:[%s14666_s24 + $0x109] sm:$0xff]  ;;  %v15338_v13 = vld [vmem:[%s14666_s24 + $0x111] sm:$0xff] }
 0x1f1   : > { %10949 = vmatprep.mubr.f32.mxu0 %v14778_v10  ;;  %12767 = vmatpush3.bf16.msra.mxu0 %v12764_v50  ;;  %v15208_v10 = vld [vmem:[%s14666_s24 + $0x1b0] sm:$0xff]  ;;  %v15293_v50 = vld [vmem:[%s14666_s24 + $0xb9] sm:$0xff] }
 0x1f2   : > { %12769 = vmatprep.subr.bf16.mxu0 %v12768_v55 }
 0x1f4   : > { %10950 = vmatmul.mubr.f32.gmra.mrb[10].mxu0 %v14781_v11  ;;  %v15211_v11 = vld [vmem:[%s14666_s24 + $0x1b8] sm:$0xff] }
 0x1f5   : > { %10952 = vmatprep.mubr.f32.mxu0 %v14786_v15  ;;  %12771 = vmatpush3.bf16.msra.mxu0 %v12768_v55  ;;  %v15216_v15 = vld [vmem:[%s14666_s24 + $0x1c0] sm:$0xff]  ;;  %v15306_v55 = vld [vmem:[%s14666_s24 + $0xd1] sm:$0xff] }
 0x1f6   : > { %12773 = vmatprep.subr.bf16.mxu0 %v12772_v60 }
 0x1f8   : > { %10953 = vmatmul.mubr.f32.gmra.mrb[12].mxu0 %v14789_v16  ;;  %v2084_v16 = vld [vmem:[%s14666_s24 + $0x19] sm:$0xff] }
 0x1f9   : > { %10955 = vmatprep.mubr.f32.mxu0 %v14796_v18  ;;  %12775 = vmatpush3.bf16.msra.mxu0 %v12772_v60  ;;  %v2601_v18 = vld [vmem:[#allocation6 + $0x290] sm:$0xff]  ;;  %v15317_v60 = vld [vmem:[%s14666_s24 + $0xe9] sm:$0xff] }
 0x1fa   : > { %12777 = vmatprep.subr.bf16.mxu0 %v12776_v1 }
 0x1fc   : > { %10956 = vmatmul.mubr.f32.gmra.mrb[14].mxu0 %v14799_v19  ;;  %v2602_v19 = vld [vmem:[#allocation6 + $0x298] sm:$0xff] }
 0x1fd   : > { %10958 = vmatprep.mubr.f32.mxu0 %v14805_v20  ;;  %12779 = vmatpush3.bf16.msra.mxu0 %v12776_v1  ;;  %v2085_v20 = vld [vmem:[%s14666_s24 + $0x21] sm:$0xff] }
 0x1fe   : > { %12781 = vmatprep.subr.bf16.mxu0 %v12780_v6  ;;  %v15330_v1 = vld [vmem:[%s14666_s24 + $0x101] sm:$0xff] }
 0x200   : > { %10959 = vmatmul.mubr.f32.gmra.mrb[16].mxu0 %v14808_v21  ;;  %v2086_v21 = vld [vmem:[%s14666_s24 + $0x29] sm:$0xff] }
 0x201   : > { %10961 = vmatprep.mubr.f32.mxu0 %v14813_v22  ;;  %v12784_v22 = vpack.c.bf16 %v2602_v19, %v2601_v18  ;;  %v15349_v18 = vld [vmem:[%s14666_s24 + $0x129] sm:$0xff]  ;;  %v15354_v19 = vld [vmem:[%s14666_s24 + $0x131] sm:$0xff] }
 0x204   : > { %10962 = vmatmul.mubr.f32.gmra.mrb[18].mxu0 %v14816_v23  ;;  %v2603_v23 = vld [vmem:[#allocation6 + $0x2a0] sm:$0xff] }
 0x205   : > { %10964 = vmatprep.mubr.f32.mxu0 %v14821_v24  ;;  %v2604_v24 = vld [vmem:[#allocation6 + $0x2a8] sm:$0xff] }
 0x208   : > { %10965 = vmatmul.mubr.f32.gmra.mrb[20].mxu0 %v14824_v25  ;;  %v15223_v25 = vld [vmem:[%s14666_s24 + $0x31] sm:$0xff] }
 0x209   : > { %10967 = vmatprep.mubr.f32.mxu0 %v14829_v26  ;;  %v15226_v26 = vld [vmem:[%s14666_s24 + $0x39] sm:$0xff] }
 0x20c   : > { %10968 = vmatmul.mubr.f32.gmra.mrb[22].mxu0 %v14832_v27  ;;  %v12788_v27 = vpack.c.bf16 %v2604_v24, %v2603_v23  ;;  %v15370_v23 = vld [vmem:[%s14666_s24 + $0x151] sm:$0xff]  ;;  %v15373_v24 = vld [vmem:[%s14666_s24 + $0x159] sm:$0xff] }
 0x20d   : > { %10970 = vmatprep.mubr.f32.mxu0 %v14837_v28  ;;  %v2605_v28 = vld [vmem:[#allocation6 + $0x2b0] sm:$0xff] }
 0x210   : > { %10971 = vmatmul.mubr.f32.gmra.mrb[24].mxu0 %v14840_v29  ;;  %v2606_v29 = vld [vmem:[#allocation6 + $0x2b8] sm:$0xff] }
 0x211   : > { %10973 = vmatprep.mubr.f32.mxu0 %v14845_v30  ;;  %v15231_v30 = vld [vmem:[%s14666_s24 + $0x41] sm:$0xff] }
 0x214   : > { %10974 = vmatmul.mubr.f32.gmra.mrb[26].mxu0 %v14848_v31  ;;  %v15234_v31 = vld [vmem:[%s14666_s24 + $0x49] sm:$0xff] }
 0x215   : > { %10976 = vmatprep.mubr.f32.mxu0 %v14853_v32  ;;  %v12792_v32 = vpack.c.bf16 %v2606_v29, %v2605_v28  ;;  %v15381_v28 = vld [vmem:[%s14666_s24 + $0x169] sm:$0xff]  ;;  %v15386_v29 = vld [vmem:[%s14666_s24 + $0x171] sm:$0xff] }
 0x218   : > { %10977 = vmatmul.mubr.f32.gmra.mrb[28].mxu0 %v14856_v33  ;;  %v2607_v33 = vld [vmem:[#allocation6 + $0x2c0] sm:$0xff] }
 0x219   : > { %10979 = vmatprep.mubr.f32.mxu0 %v14861_v34  ;;  %v2608_v34 = vld [vmem:[#allocation6 + $0x2c8] sm:$0xff] }
 0x21c   : > { %10980 = vmatmul.mubr.f32.gmra.mrb[30].mxu0 %v14864_v35  ;;  %v15239_v35 = vld [vmem:[%s14666_s24 + $0x51] sm:$0xff] }
 0x21d   : > { %10982 = vmatprep.mubr.f32.mxu0 %v14869_v36  ;;  %v15242_v36 = vld [vmem:[%s14666_s24 + $0x59] sm:$0xff] }
 0x220   : > { %10983 = vmatmul.mubr.f32.gmra.mrb[32].mxu0 %v14872_v37  ;;  %v12796_v37 = vpack.c.bf16 %v2608_v34, %v2607_v33  ;;  %v15394_v33 = vld [vmem:[%s14666_s24 + $0x181] sm:$0xff]  ;;  %v15397_v34 = vld [vmem:[%s14666_s24 + $0x189] sm:$0xff] }
 0x221   : > { %10985 = vmatprep.mubr.f32.mxu0 %v14877_v38  ;;  %v2609_v38 = vld [vmem:[#allocation6 + $0x2d0] sm:$0xff]  ;;  %17161 = vst [vmem:[#allocation60_spill] sm:$0xff] %v15394_v33  ;;  %17162 = vst [vmem:[#allocation61_spill] sm:$0xff] %v15397_v34 }
 0x224   : > { %10986 = vmatmul.mubr.f32.gmra.mrb[34].mxu0 %v14880_v39  ;;  %v2610_v39 = vld [vmem:[#allocation6 + $0x2d8] sm:$0xff] }
 0x225   : > { %10988 = vmatprep.mubr.f32.mxu0 %v14885_v40  ;;  %v15247_v40 = vld [vmem:[%s14666_s24 + $0x61] sm:$0xff] }
 0x228   : > { %10989 = vmatmul.mubr.f32.gmra.mrb[36].mxu0 %v14888_v41  ;;  %v15250_v41 = vld [vmem:[%s14666_s24 + $0x69] sm:$0xff] }
 0x229   : > { %10991 = vmatprep.mubr.f32.mxu0 %v14893_v42  ;;  %v12800_v42 = vpack.c.bf16 %v2610_v39, %v2609_v38  ;;  %v15405_v38 = vld [vmem:[%s14666_s24 + $0x199] sm:$0xff]  ;;  %v15410_v39 = vld [vmem:[%s14666_s24 + $0x1a1] sm:$0xff] }
 0x22a   : > { %17164 = vst [vmem:[#allocation63_spill] sm:$0xff] %v15405_v38  ;;  %17165 = vst [vmem:[#allocation64_spill] sm:$0xff] %v15410_v39 }
 0x22c   : > { %10992 = vmatmul.mubr.f32.gmra.mrb[38].mxu0 %v14896_v43  ;;  %v2611_v43 = vld [vmem:[#allocation6 + $0x2e0] sm:$0xff] }
 0x22d   : > { %10994 = vmatprep.mubr.f32.mxu0 %v14901_v44  ;;  %v2612_v44 = vld [vmem:[#allocation6 + $0x2e8] sm:$0xff] }
 0x230   : > { %10995 = vmatmul.mubr.f32.gmra.mrb[40].mxu0 %v14904_v45  ;;  %v15255_v45 = vld [vmem:[%s14666_s24 + $0x71] sm:$0xff] }
 0x231   : > { %10997 = vmatprep.mubr.f32.mxu0 %v14909_v46  ;;  %v15258_v46 = vld [vmem:[%s14666_s24 + $0x79] sm:$0xff] }
 0x234   : > { %10998 = vmatmul.mubr.f32.gmra.mrb[42].mxu0 %v14912_v47  ;;  %v12804_v47 = vpack.c.bf16 %v2612_v44, %v2611_v43  ;;  %v15418_v43 = vld [vmem:[%s14666_s24 + $0x1b1] sm:$0xff]  ;;  %v15421_v44 = vld [vmem:[%s14666_s24 + $0x1b9] sm:$0xff] }
 0x235   : > { %11000 = vmatprep.mubr.f32.mxu0 %v14917_v48  ;;  %v2613_v48 = vld [vmem:[#allocation6 + $0x2f0] sm:$0xff]  ;;  %17167 = vst [vmem:[#allocation66_spill] sm:$0xff] %v15418_v43  ;;  %17168 = vst [vmem:[#allocation67_spill] sm:$0xff] %v15421_v44 }
 0x238   : > { %11001 = vmatmul.mubr.f32.gmra.mrb[44].mxu0 %v14920_v51  ;;  %v2614_v51 = vld [vmem:[#allocation6 + $0x2f8] sm:$0xff] }
 0x239   : > { %11003 = vmatprep.mubr.f32.mxu0 %v14925_v52  ;;  %v15263_v52 = vld [vmem:[%s14666_s24 + $0x81] sm:$0xff] }
 0x23c   : > { %11004 = vmatmul.mubr.f32.gmra.mrb[46].mxu0 %v14928_v53  ;;  %v15266_v53 = vld [vmem:[%s14666_s24 + $0x89] sm:$0xff] }
 0x23d   : > { %11006 = vmatprep.mubr.f32.mxu0 %v14933_v56  ;;  %v12808_v56 = vpack.c.bf16 %v2614_v51, %v2613_v48  ;;  %v3061_v48 = vld [vmem:[#allocation6 + $0x310] sm:$0xff]  ;;  %v3062_v51 = vld [vmem:[#allocation6 + $0x318] sm:$0xff] }
 0x240   : > { %11007 = vmatmul.mubr.f32.gmra.mrb[48].mxu0 %v14936_v57  ;;  %v3059_v57 = vld [vmem:[#allocation6 + $0x300] sm:$0xff] }
 0x241   : > { %11009 = vmatprep.mubr.f32.mxu0 %v14941_v58  ;;  %v3060_v58 = vld [vmem:[#allocation6 + $0x308] sm:$0xff] }
 0x242   : > { %v15276_v17 = vpack.c.bf16 %v3060_v58, %v3059_v57  ;;  %v12816_v57 = vpack.c.bf16 %v3062_v51, %v3061_v48  ;;  %v3063_v58 = vld [vmem:[#allocation6 + $0x320] sm:$0xff]  ;;  %v3068_v51 = vld [vmem:[#allocation6 + $0x348] sm:$0xff] }
 0x243   : > { %v3067_v48 = vld [vmem:[#allocation6 + $0x340] sm:$0xff] }
 0x244   : > { %11010 = vmatmul.mubr.f32.gmra.mrb[50].mxu0 %v15208_v10 }
 0x245   : > { %11012 = vmatprep.mubr.f32.mxu0 %v15211_v11 }
 0x248   : > { %11013 = vmatmul.mubr.f32.gmra.mrb[52].mxu0 %v15216_v15 }
 0x249   : > { %11047 = vmatprep.mubr.f32.mxu0 %v2084_v16  ;;  %v15346_v16 = vld [vmem:[%s14666_s24 + $0x121] sm:$0xff] }
 0x24c   : > { %11048 = vmatmul.mubr.f32.vlgmr.msra.gmra.mrb[0].mxu0 %v2085_v20  ;;  %v15357_v20 = vld [vmem:[%s14666_s24 + $0x139] sm:$0xff] }
 0x24d   : > { %12783 = vmatpush3.bf16.msra.mxu0 %v12780_v6  ;;  %11050 = vmatprep.mubr.f32.mxu0 %v2086_v21  ;;  %v15341_v6 = vld [vmem:[%s14666_s24 + $0x119] sm:$0xff]  ;;  %v15362_v21 = vld [vmem:[%s14666_s24 + $0x141] sm:$0xff] }
 0x24e   : > { %12785 = vmatprep.subr.bf16.mxu0 %v12784_v22 }
 0x250   : > { %11051 = vmatmul.mubr.f32.gmra.mrb[2].mxu0 %v15223_v25 }
 0x251   : > { %11053 = vmatprep.mubr.f32.mxu0 %v15226_v26  ;;  %12787 = vmatpush3.bf16.msra.mxu0 %v12784_v22  ;;  %v15365_v22 = vld [vmem:[%s14666_s24 + $0x149] sm:$0xff] }
 0x252   : > { %12789 = vmatprep.subr.bf16.mxu0 %v12788_v27 }
 0x254   : > { %11054 = vmatmul.mubr.f32.gmra.mrb[4].mxu0 %v15231_v30 }
 0x255   : > { %11056 = vmatprep.mubr.f32.mxu0 %v15234_v31  ;;  %12791 = vmatpush3.bf16.msra.mxu0 %v12788_v27  ;;  %v15378_v27 = vld [vmem:[%s14666_s24 + $0x161] sm:$0xff] }
 0x256   : > { %12793 = vmatprep.subr.bf16.mxu0 %v12792_v32 }
 0x258   : > { %11057 = vmatmul.mubr.f32.gmra.mrb[6].mxu0 %v15239_v35 }
 0x259   : > { %11059 = vmatprep.mubr.f32.mxu0 %v15242_v36  ;;  %12795 = vmatpush3.bf16.msra.mxu0 %v12792_v32  ;;  %v15389_v32 = vld [vmem:[%s14666_s24 + $0x179] sm:$0xff] }
 0x25a   : > { %12797 = vmatprep.subr.bf16.mxu0 %v12796_v37 }
 0x25c   : > { %11060 = vmatmul.mubr.f32.gmra.mrb[8].mxu0 %v15247_v40 }
 0x25d   : > { %11062 = vmatprep.mubr.f32.mxu0 %v15250_v41  ;;  %12799 = vmatpush3.bf16.msra.mxu0 %v12796_v37  ;;  %v15402_v37 = vld [vmem:[%s14666_s24 + $0x191] sm:$0xff] }
 0x25e   : > { %12801 = vmatprep.subr.bf16.mxu0 %v12800_v42  ;;  %17163 = vst [vmem:[#allocation62_spill] sm:$0xff] %v15402_v37 }
 0x260   : > { %11063 = vmatmul.mubr.f32.gmra.mrb[10].mxu0 %v15255_v45 }
 0x261   : > { %11065 = vmatprep.mubr.f32.mxu0 %v15258_v46  ;;  %12803 = vmatpush3.bf16.msra.mxu0 %v12800_v42  ;;  %v15413_v42 = vld [vmem:[%s14666_s24 + $0x1a9] sm:$0xff] }
 0x262   : > { %12805 = vmatprep.subr.bf16.mxu0 %v12804_v47  ;;  %17166 = vst [vmem:[#allocation65_spill] sm:$0xff] %v15413_v42 }
 0x264   : > { %11066 = vmatmul.mubr.f32.gmra.mrb[12].mxu0 %v15263_v52 }
 0x265   : > { %11068 = vmatprep.mubr.f32.mxu0 %v15266_v53  ;;  %12807 = vmatpush3.bf16.msra.mxu0 %v12804_v47  ;;  %v15426_v47 = vld [vmem:[%s14666_s24 + $0x1c1] sm:$0xff] }
 0x266   : > { %12809 = vmatprep.subr.bf16.mxu0 %v12808_v56  ;;  %17169 = vst [vmem:[#allocation68_spill] sm:$0xff] %v15426_v47 }
 0x268   : > { %11069 = vmatmul.mubr.f32.gmra.mrb[14].mxu0 %v15271_v14 }
 0x269   : > { %11071 = vmatprep.mubr.f32.mxu0 %v15274_v61  ;;  %12811 = vmatpush3.bf16.msra.mxu0 %v12808_v56  ;;  %v17170_v56 = vld [vmem:[#allocation13_spill] sm:$0xff] }
 0x26a   : > { %12813 = vmatprep.subr.bf16.mxu0 %v15276_v17 }
 0x26c   : > { %11072 = vmatmul.mubr.f32.gmra.mrb[16].mxu0 %v15281_v49 }
 0x26d   : > { %11074 = vmatprep.mubr.f32.mxu0 %v15284_v7 }
 0x270   : > { %11075 = vmatmul.mubr.f32.gmra.mrb[18].mxu0 %v15290_v8 }
 0x271   : > { %11077 = vmatprep.mubr.f32.mxu0 %v15293_v50 }
 0x274   : > { %11078 = vmatmul.mubr.f32.gmra.mrb[20].mxu0 %v15298_v54 }
 0x275   : > { %11080 = vmatprep.mubr.f32.mxu0 %v15301_v12 }
 0x278   : > { %11081 = vmatmul.mubr.f32.gmra.mrb[22].mxu0 %v15306_v55 }
 0x279   : > { %11083 = vmatprep.mubr.f32.mxu0 %v15309_v59 }
 0x27c   : > { %11084 = vmatmul.mubr.f32.gmra.mrb[24].mxu0 %v15314_v62 }
 0x27d   : > { %11086 = vmatprep.mubr.f32.mxu0 %v15317_v60 }
 0x280   : > { %11087 = vmatmul.mubr.f32.gmra.mrb[26].mxu0 %v15322_v0 }
 0x281   : > { %11089 = vmatprep.mubr.f32.mxu0 %v15325_v63 }
 0x284   : > { %11090 = vmatmul.mubr.f32.gmra.mrb[28].mxu0 %v15330_v1 }
 0x285   : > { %11092 = vmatprep.mubr.f32.mxu0 %v15333_v5 }
 0x288   : > { %11093 = vmatmul.mubr.f32.gmra.mrb[30].mxu0 %v15338_v13 }
 0x289   : > { %11095 = vmatprep.mubr.f32.mxu0 %v15341_v6 }
 0x28c   : > { %11096 = vmatmul.mubr.f32.gmra.mrb[32].mxu0 %v15346_v16 }
 0x28d   : > { %11098 = vmatprep.mubr.f32.mxu0 %v15349_v18 }
 0x290   : > { %11099 = vmatmul.mubr.f32.gmra.mrb[34].mxu0 %v15354_v19 }
 0x291   : > { %11101 = vmatprep.mubr.f32.mxu0 %v15357_v20 }
 0x294   : > { %11102 = vmatmul.mubr.f32.gmra.mrb[36].mxu0 %v15362_v21 }
 0x295   : > { %11104 = vmatprep.mubr.f32.mxu0 %v15365_v22 }
 0x298   : > { %11105 = vmatmul.mubr.f32.gmra.mrb[38].mxu0 %v15370_v23 }
 0x299   : > { %11107 = vmatprep.mubr.f32.mxu0 %v15373_v24 }
 0x29c   : > { %11108 = vmatmul.mubr.f32.gmra.mrb[40].mxu0 %v15378_v27 }
 0x29d   : > { %11110 = vmatprep.mubr.f32.mxu0 %v15381_v28 }
 0x2a0   : > { %11111 = vmatmul.mubr.f32.gmra.mrb[42].mxu0 %v15386_v29 }
 0x2a1   : > { %11113 = vmatprep.mubr.f32.mxu0 %v15389_v32 }
 0x2a4   : > { %11114 = vmatmul.mubr.f32.gmra.mrb[44].mxu0 %v15394_v33  ;;  %v17174_v33 = vld [vmem:[#allocation17_spill] sm:$0xff] }
 0x2a5   : > { %11116 = vmatprep.mubr.f32.mxu0 %v15397_v34  ;;  %v17173_v34 = vld [vmem:[#allocation16_spill] sm:$0xff] }
 0x2a8   : > { %11117 = vmatmul.mubr.f32.gmra.mrb[46].mxu0 %v15402_v37  ;;  %v3066_v37 = vld [vmem:[#allocation6 + $0x338] sm:$0xff] }
 0x2a9   : > { %11119 = vmatprep.mubr.f32.mxu0 %v15405_v38  ;;  %v17172_v38 = vld [vmem:[#allocation15_spill] sm:$0xff] }
 0x2ac   : > { %11120 = vmatmul.mubr.f32.gmra.mrb[48].mxu0 %v15410_v39  ;;  %v3064_v39 = vld [vmem:[#allocation6 + $0x328] sm:$0xff] }
 0x2ad   : > { %11122 = vmatprep.mubr.f32.mxu0 %v15413_v42  ;;  %v17171_v42 = vld [vmem:[#allocation14_spill] sm:$0xff] }
 0x2b0   : > { %11123 = vmatmul.mubr.f32.gmra.mrb[50].mxu0 %v15418_v43  ;;  %v12820_v43 = vpack.c.bf16 %v3064_v39, %v3063_v58  ;;  %v3070_v39 = vld [vmem:[#allocation6 + $0x358] sm:$0xff] }
 0x2b1   : > { %11125 = vmatprep.mubr.f32.mxu0 %v15421_v44  ;;  %v3065_v44 = vld [vmem:[#allocation6 + $0x330] sm:$0xff]  ;;  %v17177_v58 = vld [vmem:[#allocation20_spill] sm:$0xff] }
 0x2b4   : > { %11126 = vmatmul.mubr.f32.gmra.mrb[52].mxu0 %v15426_v47  ;;  %v17175_v47 = vld [vmem:[#allocation18_spill] sm:$0xff] }
 0x2b5   : > { %11160 = vmatprep.mubr.f32.mxu0 %v17170_v56  ;;  %v12824_v56 = vpack.c.bf16 %v3066_v37, %v3065_v44  ;;  %v3072_v37 = vld [vmem:[#allocation6 + $0x368] sm:$0xff]  ;;  %v3073_v44 = vld [vmem:[#allocation6 + $0x370] sm:$0xff] }
 0x2b8   : > { %11161 = vmatmul.mubr.f32.vlgmr.msra.gmra.mrb[0].mxu0 %v17171_v42  ;;  %v17176_v42 = vld [vmem:[#allocation19_spill] sm:$0xff] }
 0x2b9   : > { %12815 = vmatpush3.bf16.msra.mxu0 %v15276_v17  ;;  %11163 = vmatprep.mubr.f32.mxu0 %v17172_v38  ;;  %v12828_v17 = vpack.c.bf16 %v3068_v51, %v3067_v48  ;;  %v3069_v38 = vld [vmem:[#allocation6 + $0x350] sm:$0xff]  ;;  %v17179_v48 = vld [vmem:[#allocation22_spill] sm:$0xff] }
 0x2ba   : > { %12817 = vmatprep.subr.bf16.mxu0 %v12816_v57  ;;  %v3520_v51 = vld [vmem:[#allocation6 + $0x388] sm:$0xff] }
 0x2bc   : > { %11164 = vmatmul.mubr.f32.gmra.mrb[2].mxu0 %v17173_v34  ;;  %v3071_v34 = vld [vmem:[#allocation6 + $0x360] sm:$0xff] }
 0x2bd   : > { %11166 = vmatprep.mubr.f32.mxu0 %v17174_v33  ;;  %12819 = vmatpush3.bf16.msra.mxu0 %v12816_v57  ;;  %v12832_v33 = vpack.c.bf16 %v3070_v39, %v3069_v38  ;;  %v17178_v57 = vld [vmem:[#allocation21_spill] sm:$0xff]  ;;  %v17181_v38 = vld [vmem:[#allocation24_spill] sm:$0xff]  ;;  %v17184_v39 = vld [vmem:[#allocation27_spill] sm:$0xff] }
 0x2be   : > { %12821 = vmatprep.subr.bf16.mxu0 %v12820_v43 }
 0x2c0   : > { %11167 = vmatmul.mubr.f32.gmra.mrb[4].mxu0 %v17175_v47  ;;  %v3074_v47 = vld [vmem:[#allocation6 + $0x378] sm:$0xff] }
 0x2c1   : > { %11169 = vmatprep.mubr.f32.mxu0 %v17176_v42  ;;  %12823 = vmatpush3.bf16.msra.mxu0 %v12820_v43  ;;  %v12836_v43 = vpack.c.bf16 %v3072_v37, %v3071_v34  ;;  %v17180_v42 = vld [vmem:[#allocation23_spill] sm:$0xff]  ;;  %v17187_v34 = vld [vmem:[#allocation30_spill] sm:$0xff] }
 0x2c2   : > { %12825 = vmatprep.subr.bf16.mxu0 %v12824_v56  ;;  %v17188_v37 = vld [vmem:[#allocation31_spill] sm:$0xff] }
 0x2c4   : > { %11170 = vmatmul.mubr.f32.gmra.mrb[6].mxu0 %v17177_v58  ;;  %v17185_v58 = vld [vmem:[#allocation28_spill] sm:$0xff] }
 0x2c5   : > { %11172 = vmatprep.mubr.f32.mxu0 %v14981_v2  ;;  %12827 = vmatpush3.bf16.msra.mxu0 %v12824_v56  ;;  %v12840_v2 = vpack.c.bf16 %v3074_v47, %v3073_v44  ;;  %v3519_v56 = vld [vmem:[#allocation6 + $0x380] sm:$0xff]  ;;  %v17189_v44 = vld [vmem:[#allocation32_spill] sm:$0xff]  ;;  %v17191_v47 = vld [vmem:[#allocation34_spill] sm:$0xff] }
 0x2c6   : > { %12829 = vmatprep.subr.bf16.mxu0 %v12828_v17 }
 0x2c8   : > { %11173 = vmatmul.mubr.f32.gmra.mrb[8].mxu0 %v14984_v3  ;;  %v12844_v3 = vpack.c.bf16 %v3520_v51, %v3519_v56  ;;  %v17195_v56 = vld [vmem:[#allocation38_spill] sm:$0xff]  ;;  %v17196_v51 = vld [vmem:[#allocation39_spill] sm:$0xff] }
 0x2c9   : > { %11175 = vmatprep.mubr.f32.mxu0 %v14989_v9  ;;  %12831 = vmatpush3.bf16.msra.mxu0 %v12828_v17  ;;  %v17182_v9 = vld [vmem:[#allocation25_spill] sm:$0xff]  ;;  %v17183_v17 = vld [vmem:[#allocation26_spill] sm:$0xff] }
 0x2ca   : > { %12833 = vmatprep.subr.bf16.mxu0 %v12832_v33 }
 0x2cc   : > { %11176 = vmatmul.mubr.f32.gmra.mrb[10].mxu0 %v17178_v57  ;;  %v17192_v57 = vld [vmem:[#allocation35_spill] sm:$0xff] }
 0x2cd   : > { %11178 = vmatprep.mubr.f32.mxu0 %v17179_v48  ;;  %12835 = vmatpush3.bf16.msra.mxu0 %v12832_v33  ;;  %v17186_v33 = vld [vmem:[#allocation29_spill] sm:$0xff]  ;;  %v17193_v48 = vld [vmem:[#allocation36_spill] sm:$0xff] }
 0x2ce   : > { %12837 = vmatprep.subr.bf16.mxu0 %v12836_v43 }
 0x2d0   : > { %11179 = vmatmul.mubr.f32.gmra.mrb[12].mxu0 %v17180_v42  ;;  %v17197_v42 = vld [vmem:[#allocation40_spill] sm:$0xff] }
 0x2d1   : > { %11181 = vmatprep.mubr.f32.mxu0 %v17181_v38  ;;  %12839 = vmatpush3.bf16.msra.mxu0 %v12836_v43  ;;  %v17190_v43 = vld [vmem:[#allocation33_spill] sm:$0xff] }
 0x2d2   : > { %12841 = vmatprep.subr.bf16.mxu0 %v12840_v2  ;;  %v17198_v38 = vld [vmem:[#allocation41_spill] sm:$0xff] }
 0x2d4   : > { %11182 = vmatmul.mubr.f32.gmra.mrb[14].mxu0 %v17182_v9  ;;  %v17199_v9 = vld [vmem:[#allocation42_spill] sm:$0xff] }
 0x2d5   : > { %11184 = vmatprep.mubr.f32.mxu0 %v17183_v17  ;;  %12843 = vmatpush3.bf16.msra.mxu0 %v12840_v2  ;;  %v17194_v2 = vld [vmem:[#allocation37_spill] sm:$0xff]  ;;  %v17200_v17 = vld [vmem:[#allocation43_spill] sm:$0xff] }
 0x2d6   : > { %12845 = vmatprep.subr.bf16.mxu0 %v12844_v3 }
 0x2d8   : > { %11185 = vmatmul.mubr.f32.gmra.mrb[16].mxu0 %v17184_v39  ;;  %v17201_v39 = vld [vmem:[#allocation44_spill] sm:$0xff] }
 0x2d9   : > { %11187 = vmatprep.mubr.f32.mxu0 %v17185_v58  ;;  %v17202_v58 = vld [vmem:[#allocation45_spill] sm:$0xff] }
 0x2dc   : > { %11188 = vmatmul.mubr.f32.gmra.mrb[18].mxu0 %v17186_v33  ;;  %v17203_v33 = vld [vmem:[#allocation46_spill] sm:$0xff] }
 0x2dd   : > { %11190 = vmatprep.mubr.f32.mxu0 %v17187_v34  ;;  %v17204_v34 = vld [vmem:[#allocation47_spill] sm:$0xff] }
 0x2e0   : > { %11191 = vmatmul.mubr.f32.gmra.mrb[20].mxu0 %v17188_v37  ;;  %v17205_v37 = vld [vmem:[#allocation48_spill] sm:$0xff] }
 0x2e1   : > { %11193 = vmatprep.mubr.f32.mxu0 %v17189_v44  ;;  %v17206_v44 = vld [vmem:[#allocation49_spill] sm:$0xff] }
 0x2e4   : > { %11194 = vmatmul.mubr.f32.gmra.mrb[22].mxu0 %v17190_v43  ;;  %v17207_v43 = vld [vmem:[#allocation50_spill] sm:$0xff] }
 0x2e5   : > { %11196 = vmatprep.mubr.f32.mxu0 %v17191_v47  ;;  %v17208_v47 = vld [vmem:[#allocation51_spill] sm:$0xff] }
 0x2e8   : > { %11197 = vmatmul.mubr.f32.gmra.mrb[24].mxu0 %v17192_v57  ;;  %v17209_v57 = vld [vmem:[#allocation52_spill] sm:$0xff] }
 0x2e9   : > { %11199 = vmatprep.mubr.f32.mxu0 %v17193_v48  ;;  %v17210_v48 = vld [vmem:[#allocation53_spill] sm:$0xff] }
 0x2ec   : > { %11200 = vmatmul.mubr.f32.gmra.mrb[26].mxu0 %v17194_v2  ;;  %v17211_v2 = vld [vmem:[#allocation54_spill] sm:$0xff] }
 0x2ed   : > { %11202 = vmatprep.mubr.f32.mxu0 %v17195_v56  ;;  %v17212_v56 = vld [vmem:[#allocation55_spill] sm:$0xff] }
 0x2f0   : > { %11203 = vmatmul.mubr.f32.gmra.mrb[28].mxu0 %v17196_v51  ;;  %v17213_v51 = vld [vmem:[#allocation56_spill] sm:$0xff] }
 0x2f1   : > { %11205 = vmatprep.mubr.f32.mxu0 %v17197_v42  ;;  %v17214_v42 = vld [vmem:[#allocation57_spill] sm:$0xff] }
 0x2f4   : > { %11206 = vmatmul.mubr.f32.gmra.mrb[30].mxu0 %v17198_v38  ;;  %v17215_v38 = vld [vmem:[#allocation58_spill] sm:$0xff] }
 0x2f5   : > { %11208 = vmatprep.mubr.f32.mxu0 %v17199_v9  ;;  %v17216_v9 = vld [vmem:[#allocation59_spill] sm:$0xff] }
 0x2f8   : > { %11209 = vmatmul.mubr.f32.gmra.mrb[32].mxu0 %v17200_v17  ;;  %v15482_v17 = vld [vmem:[%s14666_s24 + $0x1b2] sm:$0xff] }
 0x2f9   : > { %11211 = vmatprep.mubr.f32.mxu0 %v17201_v39  ;;  %v15485_v39 = vld [vmem:[%s14666_s24 + $0x1ba] sm:$0xff] }
 0x2fc   : > { %11212 = vmatmul.mubr.f32.gmra.mrb[34].mxu0 %v17202_v58  ;;  %v15490_v58 = vld [vmem:[%s14666_s24 + $0x1c2] sm:$0xff] }
 0x2fd   : > { %11214 = vmatprep.mubr.f32.mxu0 %v17203_v33  ;;  %v3004_v33 = vld [vmem:[%s14666_s24 + $0x30] sm:$0xff] }
 0x300   : > { %11215 = vmatmul.mubr.f32.gmra.mrb[36].mxu0 %v17204_v34  ;;  %v3521_v34 = vld [vmem:[#allocation6 + $0x390] sm:$0xff] }
 0x301   : > { %11217 = vmatprep.mubr.f32.mxu0 %v17205_v37  ;;  %v3522_v37 = vld [vmem:[#allocation6 + $0x398] sm:$0xff] }
 0x304   : > { %11218 = vmatmul.mubr.f32.gmra.mrb[38].mxu0 %v17206_v44  ;;  %v3005_v44 = vld [vmem:[%s14666_s24 + $0x38] sm:$0xff] }
 0x305   : > { %11220 = vmatprep.mubr.f32.mxu0 %v17207_v43  ;;  %v12848_v43 = vpack.c.bf16 %v3522_v37, %v3521_v34  ;;  %v3527_v34 = vld [vmem:[#allocation6 + $0x3c0] sm:$0xff] }
 0x306   : > { %v3011_v37 = vld [vmem:[%s14666_s24 + $0x68] sm:$0xff] }
 0x308   : > { %11221 = vmatmul.mubr.f32.gmra.mrb[40].mxu0 %v17208_v47  ;;  %v3523_v47 = vld [vmem:[#allocation6 + $0x3a0] sm:$0xff] }
 0x309   : > { %11223 = vmatprep.mubr.f32.mxu0 %v17209_v57  ;;  %v3524_v57 = vld [vmem:[#allocation6 + $0x3a8] sm:$0xff] }
 0x30c   : > { %11224 = vmatmul.mubr.f32.gmra.mrb[42].mxu0 %v17210_v48  ;;  %v3007_v48 = vld [vmem:[%s14666_s24 + $0x48] sm:$0xff] }
 0x30d   : > { %11226 = vmatprep.mubr.f32.mxu0 %v17211_v2  ;;  %v3008_v2 = vld [vmem:[%s14666_s24 + $0x50] sm:$0xff] }
 0x310   : > { %11227 = vmatmul.mubr.f32.gmra.mrb[44].mxu0 %v17212_v56  ;;  %v12852_v56 = vpack.c.bf16 %v3524_v57, %v3523_v47  ;;  %v3529_v47 = vld [vmem:[#allocation6 + $0x3d0] sm:$0xff]  ;;  %v3530_v57 = vld [vmem:[#allocation6 + $0x3d8] sm:$0xff] }
 0x311   : > { %11229 = vmatprep.mubr.f32.mxu0 %v17213_v51  ;;  %v3525_v51 = vld [vmem:[#allocation6 + $0x3b0] sm:$0xff] }
 0x314   : > { %11230 = vmatmul.mubr.f32.gmra.mrb[46].mxu0 %v17214_v42  ;;  %v3526_v42 = vld [vmem:[#allocation6 + $0x3b8] sm:$0xff] }
 0x315   : > { %11232 = vmatprep.mubr.f32.mxu0 %v17215_v38  ;;  %v3009_v38 = vld [vmem:[%s14666_s24 + $0x58] sm:$0xff] }
 0x318   : > { %11233 = vmatmul.mubr.f32.gmra.mrb[48].mxu0 %v17216_v9  ;;  %v3010_v9 = vld [vmem:[%s14666_s24 + $0x60] sm:$0xff] }
 0x319   : > { %11235 = vmatprep.mubr.f32.mxu0 %v15152_v4  ;;  %v3006_v4 = vld [vmem:[%s14666_s24 + $0x40] sm:$0xff] }
 0x31c   : > { %11236 = vmatmul.mubr.f32.gmra.mrb[50].mxu0 %v15482_v17 }
 0x31d   : > { %11238 = vmatprep.mubr.f32.mxu0 %v15485_v39 }
 0x320   : > { %11239 = vmatmul.mubr.f32.gmra.mrb[52].mxu0 %v15490_v58 }
 0x321   : > { %11273 = vmatprep.mubr.f32.mxu0 %v3004_v33  ;;  %v12856_v33 = vpack.c.bf16 %v3526_v42, %v3525_v51  ;;  %v3531_v51 = vld [vmem:[#allocation6 + $0x3e0] sm:$0xff]  ;;  %v3532_v42 = vld [vmem:[#allocation6 + $0x3e8] sm:$0xff] }
 0x324   : > { %11274 = vmatmul.mubr.f32.vlgmr.msra.gmra.mrb[0].mxu0 %v3005_v44  ;;  %v3012_v44 = vld [vmem:[%s14666_s24 + $0x70] sm:$0xff] }
 0x325   : > { %12847 = vmatpush3.bf16.msra.mxu0 %v12844_v3  ;;  %11276 = vmatprep.mubr.f32.mxu0 %v3006_v4  ;;  %v3528_v3 = vld [vmem:[#allocation6 + $0x3c8] sm:$0xff] }
 0x326   : > { %12849 = vmatprep.subr.bf16.mxu0 %v12848_v43  ;;  %v12860_v4 = vpack.c.bf16 %v3528_v3, %v3527_v34  ;;  %v3533_v34 = vld [vmem:[#allocation6 + $0x3f0] sm:$0xff]  ;;  %v3534_v3 = vld [vmem:[#allocation6 + $0x3f8] sm:$0xff] }
 0x328   : > { %11277 = vmatmul.mubr.f32.gmra.mrb[2].mxu0 %v3007_v48  ;;  %v3014_v48 = vld [vmem:[%s14666_s24 + $0x80] sm:$0xff] }
 0x329   : > { %11279 = vmatprep.mubr.f32.mxu0 %v3008_v2  ;;  %12851 = vmatpush3.bf16.msra.mxu0 %v12848_v43  ;;  %v3013_v43 = vld [vmem:[%s14666_s24 + $0x78] sm:$0xff]  ;;  %v12864_v2 = vpack.c.bf16 %v3530_v57, %v3529_v47  ;;  %v3979_v47 = vld [vmem:[#allocation6 + $0x400] sm:$0xff] }
 0x32a   : > { %12853 = vmatprep.subr.bf16.mxu0 %v12852_v56  ;;  %v3980_v57 = vld [vmem:[#allocation6 + $0x408] sm:$0xff] }
 0x32c   : > { %11280 = vmatmul.mubr.f32.gmra.mrb[4].mxu0 %v3009_v38  ;;  %v3016_v38 = vld [vmem:[%s14666_s24 + $0x90] sm:$0xff] }
 0x32d   : > { %11282 = vmatprep.mubr.f32.mxu0 %v3010_v9  ;;  %12855 = vmatpush3.bf16.msra.mxu0 %v12852_v56  ;;  %v3015_v56 = vld [vmem:[%s14666_s24 + $0x88] sm:$0xff]  ;;  %v12868_v9 = vpack.c.bf16 %v3532_v42, %v3531_v51  ;;  %v3022_v51 = vld [vmem:[%s14666_s24 + $0xc0] sm:$0xff] }
 0x32e   : > { %12857 = vmatprep.subr.bf16.mxu0 %v12856_v33  ;;  %v3023_v42 = vld [vmem:[%s14666_s24 + $0xc8] sm:$0xff] }
 0x330   : > { %11283 = vmatmul.mubr.f32.gmra.mrb[6].mxu0 %v3011_v37  ;;  %v3018_v37 = vld [vmem:[%s14666_s24 + $0xa0] sm:$0xff] }
 0x331   : > { %11285 = vmatprep.mubr.f32.mxu0 %v3012_v44  ;;  %12859 = vmatpush3.bf16.msra.mxu0 %v12856_v33  ;;  %v3017_v33 = vld [vmem:[%s14666_s24 + $0x98] sm:$0xff]  ;;  %v12872_v44 = vpack.c.bf16 %v3534_v3, %v3533_v34  ;;  %v3027_v34 = vld [vmem:[%s14666_s24 + $0xe8] sm:$0xff]  ;;  %v3028_v3 = vld [vmem:[%s14666_s24 + $0xf0] sm:$0xff] }
 0x332   : > { %12861 = vmatprep.subr.bf16.mxu0 %v12860_v4 }
 0x334   : > { %11286 = vmatmul.mubr.f32.gmra.mrb[8].mxu0 %v3013_v43  ;;  %v3020_v43 = vld [vmem:[%s14666_s24 + $0xb0] sm:$0xff] }
 0x335   : > { %11288 = vmatprep.mubr.f32.mxu0 %v3014_v48  ;;  %12863 = vmatpush3.bf16.msra.mxu0 %v12860_v4  ;;  %v3019_v4 = vld [vmem:[%s14666_s24 + $0xa8] sm:$0xff]  ;;  %v15510_v48 = vpack.c.bf16 %v3980_v57, %v3979_v47  ;;  %v3032_v47 = vld [vmem:[%s14666_s24 + $0x110] sm:$0xff]  ;;  %v3033_v57 = vld [vmem:[%s14666_s24 + $0x118] sm:$0xff] }
 0x336   : > { %12865 = vmatprep.subr.bf16.mxu0 %v12864_v2 }
 0x338   : > { %11289 = vmatmul.mubr.f32.gmra.mrb[10].mxu0 %v3015_v56  ;;  %v3024_v56 = vld [vmem:[%s14666_s24 + $0xd0] sm:$0xff] }
 0x339   : > { %11291 = vmatprep.mubr.f32.mxu0 %v3016_v38  ;;  %12867 = vmatpush3.bf16.msra.mxu0 %v12864_v2  ;;  %v3021_v2 = vld [vmem:[%s14666_s24 + $0xb8] sm:$0xff] }
 0x33a   : > { %12869 = vmatprep.subr.bf16.mxu0 %v12868_v9  ;;  %v3025_v38 = vld [vmem:[%s14666_s24 + $0xd8] sm:$0xff] }
 0x33c   : > { %11292 = vmatmul.mubr.f32.gmra.mrb[12].mxu0 %v3017_v33  ;;  %v3029_v33 = vld [vmem:[%s14666_s24 + $0xf8] sm:$0xff] }
 0x33d   : > { %11294 = vmatprep.mubr.f32.mxu0 %v3018_v37  ;;  %12871 = vmatpush3.bf16.msra.mxu0 %v12868_v9  ;;  %v3026_v9 = vld [vmem:[%s14666_s24 + $0xe0] sm:$0xff] }
 0x33e   : > { %12873 = vmatprep.subr.bf16.mxu0 %v12872_v44  ;;  %v3030_v37 = vld [vmem:[%s14666_s24 + $0x100] sm:$0xff] }
 0x340   : > { %11295 = vmatmul.mubr.f32.gmra.mrb[14].mxu0 %v3019_v4  ;;  %v3034_v4 = vld [vmem:[%s14666_s24 + $0x120] sm:$0xff] }
 0x341   : > { %11297 = vmatprep.mubr.f32.mxu0 %v3020_v43  ;;  %12875 = vmatpush3.bf16.msra.mxu0 %v12872_v44  ;;  %v3031_v44 = vld [vmem:[%s14666_s24 + $0x108] sm:$0xff] }
 0x342   : > { %12877 = vmatprep.subr.bf16.mxu0 %v15510_v48  ;;  %v3035_v43 = vld [vmem:[%s14666_s24 + $0x128] sm:$0xff] }
 0x344   : > { %11298 = vmatmul.mubr.f32.gmra.mrb[16].mxu0 %v3021_v2  ;;  %v3036_v2 = vld [vmem:[%s14666_s24 + $0x130] sm:$0xff] }
 0x345   : > { %11300 = vmatprep.mubr.f32.mxu0 %v3022_v51  ;;  %v3037_v51 = vld [vmem:[%s14666_s24 + $0x138] sm:$0xff] }
 0x348   : > { %11301 = vmatmul.mubr.f32.gmra.mrb[18].mxu0 %v3023_v42  ;;  %v3038_v42 = vld [vmem:[%s14666_s24 + $0x140] sm:$0xff] }
 0x349   : > { %11303 = vmatprep.mubr.f32.mxu0 %v3024_v56  ;;  %v3039_v56 = vld [vmem:[%s14666_s24 + $0x148] sm:$0xff] }
 0x34c   : > { %11304 = vmatmul.mubr.f32.gmra.mrb[20].mxu0 %v3025_v38  ;;  %v3040_v38 = vld [vmem:[%s14666_s24 + $0x150] sm:$0xff] }
 0x34d   : > { %11306 = vmatprep.mubr.f32.mxu0 %v3026_v9  ;;  %v3041_v9 = vld [vmem:[%s14666_s24 + $0x158] sm:$0xff] }
 0x350   : > { %11307 = vmatmul.mubr.f32.gmra.mrb[22].mxu0 %v3027_v34  ;;  %v3042_v34 = vld [vmem:[%s14666_s24 + $0x160] sm:$0xff] }
 0x351   : > { %11309 = vmatprep.mubr.f32.mxu0 %v3028_v3  ;;  %v14431_v3 = vmov 0  }
 0x352   : > { %14266 = vset.pattern.permute.xlu0 %v14431_v3  ;;  %14267 = vset.pattern.permute.xlu1 %v14431_v3  ;;  %v3050_v3 = vld [vmem:[%s14666_s24 + $0x1a0] sm:$0xff] }
 0x354   : > { %11310 = vmatmul.mubr.f32.gmra.mrb[24].mxu0 %v3029_v33  ;;  %v4499_v33 = vld [vmem:[%s16954_s1] sm:$0xff] }
 0x355   : > { %11312 = vmatprep.mubr.f32.mxu0 %v3030_v37  ;;  %4555 = vperm.xlu0 %14266, %v4499_v33   ;;  %v3043_v37 = vld [vmem:[%s14666_s24 + $0x168] sm:$0xff]  ;;  %v4506_v33 = vld [vmem:[%s16954_s1 + $0x38] sm:$0xff] }
 0x358   : > { %11313 = vmatmul.mubr.f32.gmra.mrb[26].mxu0 %v3031_v44  ;;  %v3044_v44 = vld [vmem:[%s14666_s24 + $0x170] sm:$0xff] }
 0x359   : > { %11315 = vmatprep.mubr.f32.mxu0 %v3032_v47  ;;  %v4501_v47 = vld [vmem:[%s16954_s1 + $0x10] sm:$0xff] }
 0x35a   : > { %4565 = vperm.xlu1 %14267, %v4501_v47   ;;  %v4508_v47 = vld [vmem:[%s16954_s1 + $0x48] sm:$0xff] }
 0x35c   : > { %11316 = vmatmul.mubr.f32.gmra.mrb[28].mxu0 %v3033_v57  ;;  %v4500_v57 = vld [vmem:[%s16954_s1 + $0x8] sm:$0xff] }
 0x35d   : > { %11318 = vmatprep.mubr.f32.mxu0 %v3034_v4  ;;  %v3045_v4 = vld [vmem:[%s14666_s24 + $0x178] sm:$0xff]  ;;  %4560 = vperm.xlu0 %14266, %v4500_v57  }
 0x35e   : > { %v4509_v57 = vld [vmem:[%s16954_s1 + $0x50] sm:$0xff] }
 0x360   : > { %11319 = vmatmul.mubr.f32.gmra.mrb[30].mxu0 %v3035_v43  ;;  %v3046_v43 = vld [vmem:[%s14666_s24 + $0x180] sm:$0xff] }
 0x361   : > { %11321 = vmatprep.mubr.f32.mxu0 %v3036_v2  ;;  %v4502_v2 = vld [vmem:[%s16954_s1 + $0x18] sm:$0xff] }
 0x362   : > { %4570 = vperm.xlu1 %14267, %v4502_v2   ;;  %v3055_v2 = vld [vmem:[%s14666_s24 + $0x1c8] sm:$0xff] }
 0x364   : > { %11322 = vmatmul.mubr.f32.gmra.mrb[32].mxu0 %v3037_v51  ;;  %v4503_v51 = vld [vmem:[%s16954_s1 + $0x20] sm:$0xff] }
 0x365   : > { %11324 = vmatprep.mubr.f32.mxu0 %v3038_v42  ;;  %v3047_v42 = vld [vmem:[%s14666_s24 + $0x188] sm:$0xff]  ;;  %4575 = vperm.xlu0 %14266, %v4503_v51   ;;  %v3056_v51 = vld [vmem:[%s14666_s24 + $0x1d0] sm:$0xff] }
 0x368   : > { %11325 = vmatmul.mubr.f32.gmra.mrb[34].mxu0 %v3039_v56  ;;  %v3048_v56 = vld [vmem:[%s14666_s24 + $0x190] sm:$0xff] }
 0x369   : > { %11327 = vmatprep.mubr.f32.mxu0 %v3040_v38  ;;  %v4504_v38 = vld [vmem:[%s16954_s1 + $0x28] sm:$0xff] }
 0x36a   : > { %4580 = vperm.xlu1 %14267, %v4504_v38   ;;  %v3982_v38 = vld [vmem:[#allocation6 + $0x418] sm:$0xff] }
 0x36c   : > { %11328 = vmatmul.mubr.f32.gmra.mrb[36].mxu0 %v3041_v9  ;;  %v4505_v9 = vld [vmem:[%s16954_s1 + $0x30] sm:$0xff] }
 0x36d   : > { %11330 = vmatprep.mubr.f32.mxu0 %v3042_v34  ;;  %v3049_v34 = vld [vmem:[%s14666_s24 + $0x198] sm:$0xff]  ;;  %4585 = vperm.xlu0 %14266, %v4505_v9   ;;  %v4515_v9 = vld [vmem:[%s16954_s1 + $0x80] sm:$0xff] }
 0x36e   : > { %4590 = vperm.xlu1 %14267, %v4506_v33   ;;  %v3984_v33 = vld [vmem:[#allocation6 + $0x428] sm:$0xff] }
 0x370   : > { %11331 = vmatmul.mubr.f32.gmra.mrb[38].mxu0 %v3043_v37  ;;  %v4507_v37 = vld [vmem:[%s16954_s1 + $0x40] sm:$0xff] }
 0x371   : > { %11333 = vmatprep.mubr.f32.mxu0 %v3044_v44  ;;  %v3051_v44 = vld [vmem:[%s14666_s24 + $0x1a8] sm:$0xff]  ;;  %4595 = vperm.xlu0 %14266, %v4507_v37  }
 0x372   : > { %4600 = vperm.xlu1 %14267, %v4508_v47   ;;  %v4516_v37 = vld [vmem:[%s16954_s1 + $0x88] sm:$0xff]  ;;  %v3985_v47 = vld [vmem:[#allocation6 + $0x430] sm:$0xff] }
 0x374   : > { %11334 = vmatmul.mubr.f32.gmra.mrb[40].mxu0 %v3045_v4  ;;  %v4510_v4 = vld [vmem:[%s16954_s1 + $0x58] sm:$0xff] }
 0x375   : > { %11336 = vmatprep.mubr.f32.mxu0 %v3046_v43  ;;  %4605 = vperm.xlu0 %14266, %v4509_v57   ;;  %v4511_v43 = vld [vmem:[%s16954_s1 + $0x60] sm:$0xff] }
 0x376   : > { %4610 = vperm.xlu1 %14267, %v4510_v4   ;;  %v3986_v57 = vld [vmem:[#allocation6 + $0x438] sm:$0xff]  ;;  %v4518_v4 = vld [vmem:[%s16954_s1 + $0x98] sm:$0xff] }
 0x378   : > { %11337 = vmatmul.mubr.f32.gmra.mrb[42].mxu0 %v3047_v42  ;;  %v4513_v42 = vld [vmem:[%s16954_s1 + $0x70] sm:$0xff] }
 0x379   : > { %11339 = vmatprep.mubr.f32.mxu0 %v3048_v56  ;;  %4615 = vperm.xlu0 %14266, %v4511_v43   ;;  %v3057_v56 = vld [vmem:[%s14666_s24 + $0x1d8] sm:$0xff]  ;;  %v4519_v43 = vld [vmem:[%s16954_s1 + $0xa0] sm:$0xff] }
 0x37c   : > { %11340 = vmatmul.mubr.f32.gmra.mrb[44].mxu0 %v3049_v34 }
 0x37d   : > { %11342 = vmatprep.mubr.f32.mxu0 %v3050_v3  ;;  %4625 = vperm.xlu0 %14266, %v4513_v42   ;;  %v3983_v3 = vld [vmem:[#allocation6 + $0x420] sm:$0xff]  ;;  %v4522_v42 = vld [vmem:[%s16954_s1 + $0xb8] sm:$0xff] }
 0x380   : > { %11343 = vmatmul.mubr.f32.gmra.mrb[46].mxu0 %v3051_v44  ;;  %v4517_v44 = vld [vmem:[%s16954_s1 + $0x90] sm:$0xff] }
 0x381   : > { %11345 = vmatprep.mubr.f32.mxu0 %v15208_v10  ;;  %v4512_v10 = vld [vmem:[%s16954_s1 + $0x68] sm:$0xff]  ;;  %4635 = vperm.xlu0 %14266, %v4515_v9   ;;  %v3994_v9 = vld [vmem:[#allocation6 + $0x478] sm:$0xff] }
 0x382   : > { %4620 = vperm.xlu1 %14267, %v4512_v10   ;;  %v3990_v10 = vld [vmem:[#allocation6 + $0x458] sm:$0xff] }
 0x384   : > { %11346 = vmatmul.mubr.f32.gmra.mrb[48].mxu0 %v15211_v11  ;;  %v3981_v11 = vld [vmem:[#allocation6 + $0x410] sm:$0xff] }
 0x385   : > { %11348 = vmatprep.mubr.f32.mxu0 %v15216_v15  ;;  %v4514_v15 = vld [vmem:[%s16954_s1 + $0x78] sm:$0xff]  ;;  %v12880_v34 = vpack.c.bf16 %v3982_v38, %v3981_v11  ;;  %4645 = vperm.xlu0 %14266, %v4517_v44   ;;  %v3992_v11 = vld [vmem:[#allocation6 + $0x468] sm:$0xff]  ;;  %v4524_v38 = vld [vmem:[%s16954_s1 + $0xc8] sm:$0xff] }
 0x386   : > { %4630 = vperm.xlu1 %14267, %v4514_v15   ;;  %v4525_v15 = vld [vmem:[%s16954_s1 + $0xd0] sm:$0xff]  ;;  %v5047_v44 = vld [vmem:[#allocation8 + $0x90] sm:$0xff] }
 0x388   : > { %11349 = vmatmul.mubr.f32.gmra.mrb[50].mxu0 %v3055_v2  ;;  %v4520_v2 = vld [vmem:[%s16954_s1 + $0xa8] sm:$0xff] }
 0x389   : > { %11351 = vmatprep.mubr.f32.mxu0 %v3056_v51  ;;  %4655 = vperm.xlu0 %14266, %v4519_v43   ;;  %v4521_v51 = vld [vmem:[%s16954_s1 + $0xb0] sm:$0xff]  ;;  %v17222_v43 = vld [vmem:[#allocation65_spill] sm:$0xff] }
 0x38a   : > { %4640 = vperm.xlu1 %14267, %v4516_v37   ;;  %v5046_v37 = vld [vmem:[#allocation8 + $0x88] sm:$0xff] }
 0x38c   : > { %11352 = vmatmul.mubr.f32.gmra.mrb[52].mxu0 %v3057_v56  ;;  %v4523_v56 = vld [vmem:[%s16954_s1 + $0xc0] sm:$0xff] }
 0x38d   : > { %11386 = vmatprep.mubr.f32.mxu0 %v15223_v25  ;;  %v12884_v25 = vpack.c.bf16 %v3984_v33, %v3983_v3  ;;  %4665 = vperm.xlu0 %14266, %v4521_v51   ;;  %v4527_v3 = vld [vmem:[%s16954_s1 + $0xe0] sm:$0xff]  ;;  %v4529_v33 = vld [vmem:[%s16954_s1 + $0xf0] sm:$0xff] }
 0x38e   : > { %4650 = vperm.xlu1 %14267, %v4518_v4   ;;  %v3516_v51 = vld [vmem:[%s14666_s24 + $0x1d1] sm:$0xff] }
 0x390   : > { %11387 = vmatmul.mubr.f32.vlgmr.msra.gmra.mrb[0].mxu0 %v15226_v26  ;;  %v12888_v26 = vpack.c.bf16 %v3986_v57, %v3985_v47 }
 0x391   : > { %12879 = vmatpush3.bf16.msra.mxu0 %v15510_v48  ;;  %11389 = vmatprep.mubr.f32.mxu0 %v15231_v30  ;;  %v3987_v30 = vld [vmem:[#allocation6 + $0x440] sm:$0xff]  ;;  %v3988_v48 = vld [vmem:[#allocation6 + $0x448] sm:$0xff] }
 0x392   : > { %12881 = vmatprep.subr.bf16.mxu0 %v12880_v34  ;;  %4660 = vperm.xlu1 %14267, %v4520_v2   ;;  %v3515_v2 = vld [vmem:[%s14666_s24 + $0x1c9] sm:$0xff] }
 0x393   : > { %4675 = vperm.xlu0 %14266, %v4523_v56   ;;  %v3927_v56 = vld [vmem:[%s14666_s24 + $0x4a] sm:$0xff] }
 0x394   : > { %11390 = vmatmul.mubr.f32.gmra.mrb[2].mxu0 %v15234_v31  ;;  %v12892_v31 = vpack.c.bf16 %v3988_v48, %v3987_v30  ;;  %v17224_v30 = vld [vmem:[#allocation67_spill] sm:$0xff]  ;;  %v17225_v48 = vld [vmem:[#allocation68_spill] sm:$0xff] }
 0x395   : > { %11392 = vmatprep.mubr.f32.mxu0 %v15239_v35  ;;  %12883 = vmatpush3.bf16.msra.mxu0 %v12880_v34  ;;  %v3989_v35 = vld [vmem:[#allocation6 + $0x450] sm:$0xff] }
 0x396   : > { %12885 = vmatprep.subr.bf16.mxu0 %v12884_v25  ;;  %4670 = vperm.xlu1 %14267, %v4522_v42   ;;  %v4526_v34 = vld [vmem:[%s16954_s1 + $0xd8] sm:$0xff] }
 0x397   : > { %4685 = vperm.xlu0 %14266, %v4525_v15   ;;  %v3926_v42 = vld [vmem:[%s14666_s24 + $0x42] sm:$0xff]  ;;  %v3932_v15 = vld [vmem:[%s14666_s24 + $0x72] sm:$0xff] }
 0x398   : > { %11393 = vmatmul.mubr.f32.gmra.mrb[4].mxu0 %v15242_v36  ;;  %v12896_v36 = vpack.c.bf16 %v3990_v10, %v3989_v35  ;;  %v3924_v35 = vld [vmem:[%s14666_s24 + $0x32] sm:$0xff]  ;;  %v3925_v10 = vld [vmem:[%s14666_s24 + $0x3a] sm:$0xff] }
 0x399   : > { %11395 = vmatprep.mubr.f32.mxu0 %v15247_v40  ;;  %12887 = vmatpush3.bf16.msra.mxu0 %v12884_v25  ;;  %v3991_v40 = vld [vmem:[#allocation6 + $0x460] sm:$0xff]  ;;  %v17219_v25 = vld [vmem:[#allocation62_spill] sm:$0xff] }
 0x39a   : > { %12889 = vmatprep.subr.bf16.mxu0 %v12888_v26  ;;  %4680 = vperm.xlu1 %14267, %v4524_v38   ;;  %v3931_v38 = vld [vmem:[%s14666_s24 + $0x6a] sm:$0xff] }
 0x39b   : > { %4695 = vperm.xlu0 %14266, %v4527_v3   ;;  %v3937_v3 = vld [vmem:[%s14666_s24 + $0x9a] sm:$0xff] }
 0x39c   : > { %11396 = vmatmul.mubr.f32.gmra.mrb[6].mxu0 %v15250_v41  ;;  %v12900_v41 = vpack.c.bf16 %v3992_v11, %v3991_v40  ;;  %v3929_v40 = vld [vmem:[%s14666_s24 + $0x5a] sm:$0xff]  ;;  %v3930_v11 = vld [vmem:[%s14666_s24 + $0x62] sm:$0xff] }
 0x39d   : > { %11398 = vmatprep.mubr.f32.mxu0 %v15255_v45  ;;  %12891 = vmatpush3.bf16.msra.mxu0 %v12888_v26  ;;  %v3993_v45 = vld [vmem:[#allocation6 + $0x470] sm:$0xff]  ;;  %v17223_v26 = vld [vmem:[#allocation66_spill] sm:$0xff] }
 0x39e   : > { %12893 = vmatprep.subr.bf16.mxu0 %v12892_v31  ;;  %4690 = vperm.xlu1 %14267, %v4526_v34   ;;  %v3936_v34 = vld [vmem:[%s14666_s24 + $0x92] sm:$0xff] }
 0x39f   : > { %4705 = vperm.xlu0 %14266, %v4529_v33   ;;  %v3940_v33 = vld [vmem:[%s14666_s24 + $0xb2] sm:$0xff] }
 0x3a0   : > { %11399 = vmatmul.mubr.f32.gmra.mrb[8].mxu0 %v15258_v46  ;;  %v12904_v46 = vpack.c.bf16 %v3994_v9, %v3993_v45  ;;  %v3934_v45 = vld [vmem:[%s14666_s24 + $0x82] sm:$0xff]  ;;  %v3935_v9 = vld [vmem:[%s14666_s24 + $0x8a] sm:$0xff] }
 0x3a1   : > { %11401 = vmatprep.mubr.f32.mxu0 %v15263_v52  ;;  %12895 = vmatpush3.bf16.msra.mxu0 %v12892_v31  ;;  %v4528_v52 = vld [vmem:[%s16954_s1 + $0xe8] sm:$0xff]  ;;  %v3517_v31 = vld [vmem:[%s14666_s24 + $0x1d9] sm:$0xff] }
 0x3a2   : > { %12897 = vmatprep.subr.bf16.mxu0 %v12896_v36  ;;  %4700 = vperm.xlu1 %14267, %v4528_v52   ;;  %v3939_v52 = vld [vmem:[%s14666_s24 + $0xaa] sm:$0xff] }
 0x3a4   : > { %11402 = vmatmul.mubr.f32.gmra.mrb[10].mxu0 %v15266_v53  ;;  %v4530_v53 = vld [vmem:[%s16954_s1 + $0xf8] sm:$0xff] }
 0x3a5   : > { %11404 = vmatprep.mubr.f32.mxu0 %v15271_v14  ;;  %12899 = vmatpush3.bf16.msra.mxu0 %v12896_v36  ;;  %v4531_v14 = vld [vmem:[%s16954_s1 + $0x100] sm:$0xff]  ;;  %v3928_v36 = vld [vmem:[%s14666_s24 + $0x52] sm:$0xff] }
 0x3a6   : > { %12901 = vmatprep.subr.bf16.mxu0 %v12900_v41  ;;  %4710 = vperm.xlu1 %14267, %v4530_v53   ;;  %v3941_v53 = vld [vmem:[%s14666_s24 + $0xba] sm:$0xff] }
 0x3a7   : > { %4715 = vperm.xlu0 %14266, %v4531_v14   ;;  %v3942_v14 = vld [vmem:[%s14666_s24 + $0xc2] sm:$0xff] }
 0x3a8   : > { %11405 = vmatmul.mubr.f32.gmra.mrb[12].mxu0 %v15274_v61  ;;  %v4532_v61 = vld [vmem:[%s16954_s1 + $0x108] sm:$0xff] }
 0x3a9   : > { %11407 = vmatprep.mubr.f32.mxu0 %v15281_v49  ;;  %12903 = vmatpush3.bf16.msra.mxu0 %v12900_v41  ;;  %v4533_v49 = vld [vmem:[%s16954_s1 + $0x110] sm:$0xff] }
 0x3aa   : > { %12905 = vmatprep.subr.bf16.mxu0 %v12904_v46  ;;  %4720 = vperm.xlu1 %14267, %v4532_v61   ;;  %v3933_v41 = vld [vmem:[%s14666_s24 + $0x7a] sm:$0xff]  ;;  %v3943_v61 = vld [vmem:[%s14666_s24 + $0xca] sm:$0xff] }
 0x3ab   : > { %4725 = vperm.xlu0 %14266, %v4533_v49   ;;  %v3944_v49 = vld [vmem:[%s14666_s24 + $0xd2] sm:$0xff] }
 0x3ac   : > { %11408 = vmatmul.mubr.f32.gmra.mrb[14].mxu0 %v15284_v7  ;;  %v4534_v7 = vld [vmem:[%s16954_s1 + $0x118] sm:$0xff] }
 0x3ad   : > { %11410 = vmatprep.mubr.f32.mxu0 %v15290_v8  ;;  %12907 = vmatpush3.bf16.msra.mxu0 %v12904_v46  ;;  %v4535_v8 = vld [vmem:[%s16954_s1 + $0x120] sm:$0xff] }
 0x3ae   : > { %4730 = vperm.xlu1 %14267, %v4534_v7   ;;  %v3938_v46 = vld [vmem:[%s14666_s24 + $0xa2] sm:$0xff]  ;;  %v3945_v7 = vld [vmem:[%s14666_s24 + $0xda] sm:$0xff] }
 0x3af   : > { %4735 = vperm.xlu0 %14266, %v4535_v8   ;;  %v3946_v8 = vld [vmem:[%s14666_s24 + $0xe2] sm:$0xff] }
 0x3b0   : > { %11411 = vmatmul.mubr.f32.gmra.mrb[16].mxu0 %v15293_v50  ;;  %v4536_v50 = vld [vmem:[%s16954_s1 + $0x128] sm:$0xff] }
 0x3b1   : > { %11413 = vmatprep.mubr.f32.mxu0 %v15298_v54  ;;  %v4537_v54 = vld [vmem:[%s16954_s1 + $0x130] sm:$0xff] }
 0x3b2   : > { %4740 = vperm.xlu1 %14267, %v4536_v50   ;;  %v3947_v50 = vld [vmem:[%s14666_s24 + $0xea] sm:$0xff] }
 0x3b3   : > { %4745 = vperm.xlu0 %14266, %v4537_v54   ;;  %v3948_v54 = vld [vmem:[%s14666_s24 + $0xf2] sm:$0xff] }
 0x3b4   : > { %11414 = vmatmul.mubr.f32.gmra.mrb[18].mxu0 %v15301_v12  ;;  %v4538_v12 = vld [vmem:[%s16954_s1 + $0x138] sm:$0xff] }
 0x3b5   : > { %11416 = vmatprep.mubr.f32.mxu0 %v15306_v55  ;;  %v4539_v55 = vld [vmem:[%s16954_s1 + $0x140] sm:$0xff] }
 0x3b6   : > { %4750 = vperm.xlu1 %14267, %v4538_v12   ;;  %v3949_v12 = vld [vmem:[%s14666_s24 + $0xfa] sm:$0xff] }
 0x3b7   : > { %4755 = vperm.xlu0 %14266, %v4539_v55   ;;  %v3950_v55 = vld [vmem:[%s14666_s24 + $0x102] sm:$0xff] }
 0x3b8   : > { %11417 = vmatmul.mubr.f32.gmra.mrb[20].mxu0 %v15309_v59  ;;  %v4540_v59 = vld [vmem:[%s16954_s1 + $0x148] sm:$0xff] }
 0x3b9   : > { %11419 = vmatprep.mubr.f32.mxu0 %v15314_v62  ;;  %v4541_v62 = vld [vmem:[%s16954_s1 + $0x150] sm:$0xff] }
 0x3ba   : > { %4760 = vperm.xlu1 %14267, %v4540_v59   ;;  %v3951_v59 = vld [vmem:[%s14666_s24 + $0x10a] sm:$0xff] }
 0x3bb   : > { %4765 = vperm.xlu0 %14266, %v4541_v62   ;;  %v3952_v62 = vld [vmem:[%s14666_s24 + $0x112] sm:$0xff] }
 0x3bc   : > { %11420 = vmatmul.mubr.f32.gmra.mrb[22].mxu0 %v15317_v60  ;;  %v4542_v60 = vld [vmem:[%s16954_s1 + $0x158] sm:$0xff] }
 0x3bd   : > { %11422 = vmatprep.mubr.f32.mxu0 %v15322_v0  ;;  %v4543_v0 = vld [vmem:[%s16954_s1 + $0x160] sm:$0xff] }
 0x3be   : > { %4770 = vperm.xlu1 %14267, %v4542_v60   ;;  %v3953_v60 = vld [vmem:[%s14666_s24 + $0x11a] sm:$0xff] }
 0x3bf   : > { %4775 = vperm.xlu0 %14266, %v4543_v0   ;;  %v3954_v0 = vld [vmem:[%s14666_s24 + $0x122] sm:$0xff] }
 0x3c0   : > { %11423 = vmatmul.mubr.f32.gmra.mrb[24].mxu0 %v15325_v63  ;;  %v4544_v63 = vld [vmem:[%s16954_s1 + $0x168] sm:$0xff] }
 0x3c1   : > { %11425 = vmatprep.mubr.f32.mxu0 %v15330_v1  ;;  %v4545_v1 = vld [vmem:[%s16954_s1 + $0x170] sm:$0xff] }
 0x3c2   : > { %4780 = vperm.xlu1 %14267, %v4544_v63   ;;  %v3955_v63 = vld [vmem:[%s14666_s24 + $0x12a] sm:$0xff] }
 0x3c3   : > { %4785 = vperm.xlu0 %14266, %v4545_v1   ;;  %v3956_v1 = vld [vmem:[%s14666_s24 + $0x132] sm:$0xff] }
 0x3c4   : > { %11426 = vmatmul.mubr.f32.gmra.mrb[26].mxu0 %v15333_v5  ;;  %v4546_v5 = vld [vmem:[%s16954_s1 + $0x178] sm:$0xff] }
 0x3c5   : > { %11428 = vmatprep.mubr.f32.mxu0 %v15338_v13  ;;  %v4547_v13 = vld [vmem:[%s16954_s1 + $0x180] sm:$0xff] }
 0x3c6   : > { %4790 = vperm.xlu1 %14267, %v4546_v5   ;;  %v3957_v5 = vld [vmem:[%s14666_s24 + $0x13a] sm:$0xff] }
 0x3c7   : > { %4795 = vperm.xlu0 %14266, %v4547_v13   ;;  %v3958_v13 = vld [vmem:[%s14666_s24 + $0x142] sm:$0xff] }
 0x3c8   : > { %11429 = vmatmul.mubr.f32.gmra.mrb[28].mxu0 %v15341_v6  ;;  %v4548_v6 = vld [vmem:[%s16954_s1 + $0x188] sm:$0xff] }
 0x3c9   : > { %11431 = vmatprep.mubr.f32.mxu0 %v15346_v16  ;;  %v4549_v16 = vld [vmem:[%s16954_s1 + $0x190] sm:$0xff] }
 0x3ca   : > { %4800 = vperm.xlu1 %14267, %v4548_v6   ;;  %v3959_v6 = vld [vmem:[%s14666_s24 + $0x14a] sm:$0xff] }
 0x3cb   : > { %4805 = vperm.xlu0 %14266, %v4549_v16   ;;  %v3960_v16 = vld [vmem:[%s14666_s24 + $0x152] sm:$0xff] }
 0x3cc   : > { %11432 = vmatmul.mubr.f32.gmra.mrb[30].mxu0 %v15349_v18  ;;  %v4550_v18 = vld [vmem:[%s16954_s1 + $0x198] sm:$0xff] }
 0x3cd   : > { %11434 = vmatprep.mubr.f32.mxu0 %v15354_v19  ;;  %v4551_v19 = vld [vmem:[%s16954_s1 + $0x1a0] sm:$0xff] }
 0x3ce   : > { %4810 = vperm.xlu1 %14267, %v4550_v18   ;;  %v3961_v18 = vld [vmem:[%s14666_s24 + $0x15a] sm:$0xff] }
 0x3cf   : > { %4815 = vperm.xlu0 %14266, %v4551_v19   ;;  %v3962_v19 = vld [vmem:[%s14666_s24 + $0x162] sm:$0xff] }
 0x3d0   : > { %11435 = vmatmul.mubr.f32.gmra.mrb[32].mxu0 %v15357_v20  ;;  %v4552_v20 = vld [vmem:[%s16954_s1 + $0x1a8] sm:$0xff] }
 0x3d1   : > { %11437 = vmatprep.mubr.f32.mxu0 %v15362_v21  ;;  %v17217_v21 = vld [vmem:[#allocation60_spill] sm:$0xff] }
 0x3d2   : > { %4820 = vperm.xlu1 %14267, %v4552_v20   ;;  %v3963_v20 = vld [vmem:[%s14666_s24 + $0x16a] sm:$0xff] }
 0x3d4   : > { %11438 = vmatmul.mubr.f32.gmra.mrb[34].mxu0 %v15365_v22  ;;  %v17218_v22 = vld [vmem:[#allocation61_spill] sm:$0xff] }
 0x3d5   : > { %11440 = vmatprep.mubr.f32.mxu0 %v15370_v23  ;;  %v5045_v23 = vld [vmem:[#allocation8 + $0x80] sm:$0xff] }
 0x3d6   : > { %v12908_v47 = vpack.c.bf16 %v5046_v37, %v5045_v23  ;;  %v3966_v23 = vld [vmem:[%s14666_s24 + $0x182] sm:$0xff] }
 0x3d7   : > { %v5051_v37 = vld [vmem:[#allocation8 + $0xb0] sm:$0xff] }
 0x3d8   : > { %11441 = vmatmul.mubr.f32.gmra.mrb[36].mxu0 %v15373_v24  ;;  %v5048_v24 = vld [vmem:[#allocation8 + $0x98] sm:$0xff]  ;;  %12909 = vmatprep.subr.bf16.mxu1 %v12908_v47 }
 0x3d9   : > { %11443 = vmatprep.mubr.f32.mxu0 %v15378_v27  ;;  %v12912_v57 = vpack.c.bf16 %v5048_v24, %v5047_v44  ;;  %v5049_v27 = vld [vmem:[#allocation8 + $0xa0] sm:$0xff]  ;;  %12911 = vmatpush3.bf16.msra.mxu1 %v12908_v47  ;;  %v5052_v44 = vld [vmem:[#allocation8 + $0xb8] sm:$0xff] }
 0x3da   : > { %v12920_v47 = vpack.c.bf16 %v5052_v44, %v5051_v37  ;;  %v3968_v24 = vld [vmem:[%s14666_s24 + $0x192] sm:$0xff] }
 0x3db   : > { %12913 = vmatprep.subr.bf16.mxu1 %v12912_v57 }
 0x3dc   : > { %11444 = vmatmul.mubr.f32.gmra.mrb[38].mxu0 %v15381_v28  ;;  %v5050_v28 = vld [vmem:[#allocation8 + $0xa8] sm:$0xff] }
 0x3dd   : > { %11446 = vmatprep.mubr.f32.mxu0 %v15386_v29  ;;  %v17220_v29 = vld [vmem:[#allocation63_spill] sm:$0xff]  ;;  %v12916_v4 = vpack.c.bf16 %v5050_v28, %v5049_v27  ;;  %12915 = vmatpush3.bf16.msra.mxu1 %v12912_v57  ;;  %v5053_v57 = vld [vmem:[#allocation8 + $0xc0] sm:$0xff]  ;;  %v5054_v27 = vld [vmem:[#allocation8 + $0xc8] sm:$0xff] }
 0x3de   : > { %v3969_v28 = vld [vmem:[%s14666_s24 + $0x19a] sm:$0xff] }
 0x3df   : > { %12917 = vmatprep.subr.bf16.mxu1 %v12916_v4 }
 0x3e0   : > { %11447 = vmatmul.mubr.f32.gmra.mrb[40].mxu0 %v15389_v32  ;;  %v17221_v32 = vld [vmem:[#allocation64_spill] sm:$0xff] }
 0x3e1   : > { %11449 = vmatprep.mubr.f32.mxu0 %v17217_v21  ;;  %12919 = vmatpush3.bf16.msra.mxu1 %v12916_v4  ;;  %v3964_v21 = vld [vmem:[%s14666_s24 + $0x172] sm:$0xff] }
 0x3e2   : > { %12921 = vmatprep.subr.bf16.mxu1 %v12920_v47  ;;  %v5055_v4 = vld [vmem:[#allocation8 + $0xd0] sm:$0xff] }
 0x3e4   : > { %11450 = vmatmul.mubr.f32.gmra.mrb[42].mxu0 %v17218_v22  ;;  %v3965_v22 = vld [vmem:[%s14666_s24 + $0x17a] sm:$0xff] }
 0x3e5   : > { %11452 = vmatprep.mubr.f32.mxu0 %v17219_v25  ;;  %v3967_v25 = vld [vmem:[%s14666_s24 + $0x18a] sm:$0xff]  ;;  %12923 = vmatpush3.bf16.msra.mxu1 %v12920_v47 }
 0x3e8   : > { %11453 = vmatmul.mubr.f32.gmra.mrb[44].mxu0 %v17220_v29  ;;  %v12924_v29 = vpack.c.bf16 %v5054_v27, %v5053_v57 }
 0x3e9   : > { %11455 = vmatprep.mubr.f32.mxu0 %v17221_v32  ;;  %v3970_v32 = vld [vmem:[%s14666_s24 + $0x1a2] sm:$0xff] }
 0x3ea   : > { %12925 = vmatprep.subr.bf16.mxu1 %v12924_v29 }
 0x3eb   : > { %12927 = vmatpush3.bf16.msra.mxu1 %v12924_v29 }
 0x3ec   : > { %11456 = vmatmul.mubr.f32.gmra.mrb[46].mxu0 %v17222_v43  ;;  %v5056_v43 = vld [vmem:[#allocation8 + $0xd8] sm:$0xff] }
 0x3ed   : > { %11458 = vmatprep.mubr.f32.mxu0 %v17223_v26  ;;  %v3971_v26 = vld [vmem:[%s14666_s24 + $0x1aa] sm:$0xff] }
 0x3f0   : > { %11459 = vmatmul.mubr.f32.gmra.mrb[48].mxu0 %v17224_v30  ;;  %v12928_v30 = vpack.c.bf16 %v5056_v43, %v5055_v4 }
 0x3f1   : > { %11461 = vmatprep.mubr.f32.mxu0 %v17225_v48  ;;  %v5057_v48 = vld [vmem:[#allocation8 + $0xe0] sm:$0xff] }
 0x3f2   : > { %12929 = vmatprep.subr.bf16.mxu1 %v12928_v30 }
 0x3f3   : > { %12931 = vmatpush3.bf16.msra.mxu1 %v12928_v30 }
 0x3f4   : > { %11462 = vmatmul.mubr.f32.gmra.mrb[50].mxu0 %v3515_v2  ;;  %v5058_v2 = vld [vmem:[#allocation8 + $0xe8] sm:$0xff] }
 0x3f5   : > { %11464 = vmatprep.mubr.f32.mxu0 %v3516_v51  ;;  %v12932_v51 = vpack.c.bf16 %v5058_v2, %v5057_v48 }
 0x3f7   : > { %12933 = vmatprep.subr.bf16.mxu1 %v12932_v51 }
 0x3f8   : > { %11465 = vmatmul.mubr.f32.gmra.mrb[52].mxu0 %v3517_v31  ;;  %12935 = vmatpush3.bf16.msra.mxu1 %v12932_v51  ;;  %v5059_v31 = vld [vmem:[#allocation8 + $0xf0] sm:$0xff] }
 0x3f9   : > { %11499 = vmatprep.mubr.f32.mxu0 %v3924_v35  ;;  %v5060_v35 = vld [vmem:[#allocation8 + $0xf8] sm:$0xff]  ;;  %v4982_v51 = vld [vmem:[#allocation8 + $0x10] sm:$0xff] }
 0x3fc   : > { %11500 = vmatmul.mubr.f32.vlgmr.msra.gmra.mrb[0].mxu0 %v3925_v10  ;;  %v3975_v10 = vld [vmem:[%s14666_s24 + $0x1ca] sm:$0xff] }
 0x3fd   : > { %11502 = vmatprep.mubr.f32.mxu0 %v3926_v42  ;;  %v12936_v42 = vpack.c.bf16 %v5060_v35, %v5059_v31  ;;  %v4983_v31 = vld [vmem:[#allocation8 + $0x18] sm:$0xff] }
 0x3ff   : > { %12937 = vmatprep.subr.bf16.mxu1 %v12936_v42 }
 0x400   : > { %11503 = vmatmul.mubr.f32.gmra.mrb[2].mxu0 %v3927_v56  ;;  %v3976_v56 = vld [vmem:[%s14666_s24 + $0x1d2] sm:$0xff]  ;;  %12939 = vmatpush3.bf16.msra.mxu1 %v12936_v42 }
 0x401   : > { %11505 = vmatprep.mubr.f32.mxu0 %v3928_v36  ;;  %v3977_v36 = vld [vmem:[%s14666_s24 + $0x1da] sm:$0xff] }
 0x404   : > { %11506 = vmatmul.mubr.f32.gmra.mrb[4].mxu0 %v3929_v40  ;;  %v4980_v40 = vld [vmem:[#allocation8] sm:$0xff] }
 0x405   : > { %11508 = vmatprep.mubr.f32.mxu0 %v3930_v11 }
 0x408   : > { %11509 = vmatmul.mubr.f32.gmra.mrb[6].mxu0 %v3931_v38  ;;  %v4556_v38 = vpop.permute.xlu0 %4555 }
 0x409   : > { %11511 = vmatprep.mubr.f32.mxu0 %v3932_v15 }
 0x40c   : > { %11512 = vmatmul.mubr.f32.gmra.mrb[8].mxu0 %v3933_v41  ;;  %v4561_v41 = vpop.permute.xlu0 %4560 }
 0x40d   : > { %11514 = vmatprep.mubr.f32.mxu0 %v3934_v45 }
 0x410   : > { %11515 = vmatmul.mubr.f32.gmra.mrb[10].mxu0 %v3935_v9  ;;  %v4576_v45 = vpop.permute.xlu0 %4575 }
 0x411   : > { %11517 = vmatprep.mubr.f32.mxu0 %v3936_v34 }
 0x414   : > { %11518 = vmatmul.mubr.f32.gmra.mrb[12].mxu0 %v3937_v3  ;;  %v15824_v34 = vpop.permute.xlu0 %4585 }
 0x415   : > { %11520 = vmatprep.mubr.f32.mxu0 %v3938_v46 }
 0x418   : > { %11521 = vmatmul.mubr.f32.gmra.mrb[14].mxu0 %v3939_v52  ;;  %v15828_v46 = vpop.permute.xlu0 %4595 }
 0x419   : > { %11523 = vmatprep.mubr.f32.mxu0 %v3940_v33 }
 0x41c   : > { %11524 = vmatmul.mubr.f32.gmra.mrb[16].mxu0 %v3941_v53  ;;  %v15832_v33 = vpop.permute.xlu0 %4605  ;;  %v14432_v53 = vmov 0.0  }
 0x41d   : > { %11526 = vmatprep.mubr.f32.mxu0 %v3942_v14  ;;  %4931 = vst [vmem:[#allocation2 + $0x1b0] sm:$0xff] %v14432_v53  ;;  %v4985_v53 = vld [vmem:[#allocation8 + $0x28] sm:$0xff] }
 0x420   : > { %11527 = vmatmul.mubr.f32.gmra.mrb[18].mxu0 %v3943_v61  ;;  %v15836_v61 = vpop.permute.xlu0 %4615 }
 0x421   : > { %11529 = vmatprep.mubr.f32.mxu0 %v3944_v49 }
 0x424   : > { %11530 = vmatmul.mubr.f32.gmra.mrb[20].mxu0 %v3945_v7  ;;  %v15840_v7 = vpop.permute.xlu0 %4625 }
 0x425   : > { %11532 = vmatprep.mubr.f32.mxu0 %v3946_v8  ;;  %v15845_v8 = vld [vmem:[%s16956_s3] ss:$0 sm:$0xff] }
 0x428   : > { %11533 = vmatmul.mubr.f32.gmra.mrb[22].mxu0 %v3947_v50 }
 0x429   : > { %11535 = vmatprep.mubr.f32.mxu0 %v3948_v54 }
 0x42c   : > { %11536 = vmatmul.mubr.f32.gmra.mrb[24].mxu0 %v3949_v12  ;;  %v15849_v12 = vpop.permute.xlu0 %4635 }
 0x42d   : > { %11538 = vmatprep.mubr.f32.mxu0 %v3950_v55 }
 0x430   : > { %11539 = vmatmul.mubr.f32.gmra.mrb[26].mxu0 %v3951_v59 }
 0x431   : > { %11541 = vmatprep.mubr.f32.mxu0 %v3952_v62 }
 0x434   : > { %11542 = vmatmul.mubr.f32.gmra.mrb[28].mxu0 %v3953_v60 }
 0x435   : > { %11544 = vmatprep.mubr.f32.mxu0 %v3954_v0 }
 0x438   : > { %11545 = vmatmul.mubr.f32.gmra.mrb[30].mxu0 %v3955_v63 }
 0x439   : > { %11547 = vmatprep.mubr.f32.mxu0 %v3956_v1 }
 0x43c   : > { %11548 = vmatmul.mubr.f32.gmra.mrb[32].mxu0 %v3957_v5 }
 0x43d   : > { %11550 = vmatprep.mubr.f32.mxu0 %v3958_v13 }
 0x440   : > { %11551 = vmatmul.mubr.f32.gmra.mrb[34].mxu0 %v3959_v6 }
 0x441   : > { %11553 = vmatprep.mubr.f32.mxu0 %v3960_v16 }
 0x444   : > { %11554 = vmatmul.mubr.f32.gmra.mrb[36].mxu0 %v3961_v18 }
 0x445   : > { %11556 = vmatprep.mubr.f32.mxu0 %v3962_v19  ;;  %v15861_v19 = vpop.permute.xlu0 %4645 }
 0x448   : > { %11557 = vmatmul.mubr.f32.gmra.mrb[38].mxu0 %v3963_v20 }
 0x449   : > { %11559 = vmatprep.mubr.f32.mxu0 %v3964_v21  ;;  %v15875_v29 = vpop.permute.xlu0 %4655 }
 0x44c   : > { %11560 = vmatmul.mubr.f32.gmra.mrb[40].mxu0 %v3965_v22 }
 0x44d   : > { %11562 = vmatprep.mubr.f32.mxu0 %v3966_v23 }
 0x450   : > { %11563 = vmatmul.mubr.f32.gmra.mrb[42].mxu0 %v3967_v25 }
 0x451   : > { %11565 = vmatprep.mubr.f32.mxu0 %v3968_v24 }
 0x454   : > { %11566 = vmatmul.mubr.f32.gmra.mrb[44].mxu0 %v3969_v28 }
 0x455   : > { %11568 = vmatprep.mubr.f32.mxu0 %v3970_v32 }
 0x458   : > { %11569 = vmatmul.mubr.f32.gmra.mrb[46].mxu0 %v3971_v26 }
 0x459   : > { %11571 = vmatprep.mubr.f32.mxu0 %v15482_v17  ;;  %v4981_v17 = vld [vmem:[#allocation8 + $0x8] sm:$0xff] }
 0x45a   : > { %v15821_v11 = vpack.c.bf16 %v4981_v17, %v4980_v40 }
 0x45c   : > { %11572 = vmatmul.mubr.f32.gmra.mrb[48].mxu0 %v15485_v39  ;;  %12941 = vmatprep.subr.bf16.mxu1 %v15821_v11  ;;  %v4566_v39 = vpop.permute.xlu1 %4565 }
 0x45d   : > { %11574 = vmatprep.mubr.f32.mxu0 %v15490_v58 }
 0x460   : > { %11575 = vmatmul.mubr.f32.gmra.mrb[50].mxu0 %v3975_v10  ;;  %v4571_v15 = vpop.permute.xlu1 %4570 }
 0x461   : > { %11577 = vmatprep.mubr.f32.mxu0 %v3976_v56 }
 0x464   : > { %11578 = vmatmul.mubr.f32.gmra.mrb[52].mxu0 %v3977_v36  ;;  %v4581_v58 = vpop.permute.xlu1 %4580 }
 0x468   : > { %v4591_v9 = vpop.permute.xlu1 %4590 }
 0x46c   : > { %v15826_v3 = vpop.permute.xlu1 %4600 }
 0x470   : > { %v15830_v52 = vpop.permute.xlu1 %4610 }
 0x474   : > { %v15834_v14 = vpop.permute.xlu1 %4620 }
 0x478   : > { %v15838_v49 = vpop.permute.xlu1 %4630 }
 0x47c   : > { %v15847_v50 = vpop.permute.xlu1 %4640 }
 0x480   : > { %v15856_v6 = vpop.permute.xlu1 %4650 }
 0x484   : > { %v15872_v57 = vpop.permute.xlu1 %4660 }
 0x488   : > { %v15888_v40 = vpop.permute.xlu1 %4670 }
 0x4cf   : > { %v11501_v54 = vpop.f32.mrb[0].mxu0 }
 0x4d0   : > { %v4392_v55 = vadd.f32 %v11501_v54, %v15845_v8  ;;  %v4061_v59 = vpop.f32.mrb[1].mxu0 }
 0x4d1   : > { %v4391_v62 = vadd.f32 %v15845_v8, %v4061_v59 }
 0x4d2   : > { %v4446_v60 = vmax.f32 %v4392_v55, 0.0 }
 0x4d3   : > { %v4445_v0 = vmax.f32 %v4391_v62, 0.0  ;;  %v11504_v63 = vpop.f32.mrb[2].mxu0 }
 0x4d4   : > { %v15853_v1 = vmul.f32 %v4561_v41, %v4446_v60  ;;  %v4394_v5 = vadd.f32 %v11504_v63, %v15845_v8  ;;  %v4071_v13 = vpop.f32.mrb[3].mxu0  ;;  %v15894_v41 = vpop.permute.xlu0 %4665 }
 0x4d5   : > { %v15858_v16 = vmul.f32 %v4556_v38, %v4445_v0  ;;  %v4393_v18 = vadd.f32 %v15845_v8, %v4071_v13  ;;  %v12944_v38 = vpack.c.bf16 %v4983_v31, %v4982_v51 }
 0x4d6   : > { %4878 = vst [vmem:[#allocation2 + $0x8] sm:$0xff] %v15853_v1  ;;  %v4448_v20 = vmax.f32 %v4394_v5, 0.0  ;;  %v4986_v5 = vld [vmem:[#allocation8 + $0x30] sm:$0xff] }
 0x4d7   : > { %4877 = vst [vmem:[#allocation2] sm:$0xff] %v15858_v16  ;;  %v4447_v21 = vmax.f32 %v4393_v18, 0.0  ;;  %v11507_v22 = vpop.f32.mrb[4].mxu0 }
 0x4d8   : > { %v15865_v23 = vmul.f32 %v4571_v15, %v4448_v20  ;;  %v4396_v37 = vadd.f32 %v11507_v22, %v15845_v8  ;;  %v4081_v44 = vpop.f32.mrb[5].mxu0  ;;  %v4984_v15 = vld [vmem:[#allocation8 + $0x20] sm:$0xff]  ;;  %v4987_v20 = vld [vmem:[#allocation8 + $0x38] sm:$0xff] }
 0x4d9   : > { %v15868_v25 = vmul.f32 %v4566_v39, %v4447_v21  ;;  %v4395_v47 = vadd.f32 %v15845_v8, %v4081_v44  ;;  %v12948_v63 = vpack.c.bf16 %v4985_v53, %v4984_v15  ;;  %v15908_v21 = vpop.permute.xlu1 %4680 }
 0x4da   : > { %4880 = vst [vmem:[#allocation2 + $0x18] sm:$0xff] %v15865_v23  ;;  %v4450_v24 = vmax.f32 %v4396_v37, 0.0 }
 0x4db   : > { %4879 = vst [vmem:[#allocation2 + $0x10] sm:$0xff] %v15868_v25  ;;  %v4449_v27 = vmax.f32 %v4395_v47, 0.0  ;;  %v11510_v28 = vpop.f32.mrb[6].mxu0 }
 0x4dc   : > { %v15877_v32 = vmul.f32 %v4581_v58, %v4450_v24  ;;  %v4398_v4 = vadd.f32 %v11510_v28, %v15845_v8  ;;  %v4091_v43 = vpop.f32.mrb[7].mxu0  ;;  %v12952_v28 = vpack.c.bf16 %v4987_v20, %v4986_v5  ;;  %v4992_v5 = vld [vmem:[#allocation8 + $0x60] sm:$0xff] }
 0x4dd   : > { %v15880_v26 = vmul.f32 %v4576_v45, %v4449_v27  ;;  %v4397_v30 = vadd.f32 %v15845_v8, %v4091_v43 }
 0x4de   : > { %4882 = vst [vmem:[#allocation2 + $0x28] sm:$0xff] %v15877_v32  ;;  %v4452_v48 = vmax.f32 %v4398_v4, 0.0  ;;  %v4996_v2 = vld [vmem:[#allocation2 + $0x1] sm:$0xff] }
 0x4df   : > { %4881 = vst [vmem:[#allocation2 + $0x20] sm:$0xff] %v15880_v26  ;;  %v4451_v35 = vmax.f32 %v4397_v30, 0.0  ;;  %v11513_v10 = vpop.f32.mrb[8].mxu0  ;;  %11612 = vmatprep.mubr.f32.mxu1 %v4996_v2  ;;  %v4988_v4 = vld [vmem:[#allocation8 + $0x40] sm:$0xff] }
 0x4e0   : > { %v15885_v42 = vmul.f32 %v4591_v9, %v4452_v48  ;;  %v4400_v56 = vadd.f32 %v11513_v10, %v15845_v8  ;;  %v4101_v36 = vpop.f32.mrb[9].mxu0  ;;  %v15927_v10 = vpop.permute.xlu1 %4690 }
 0x4e1   : > { %v15891_v17 = vmul.f32 %v15824_v34, %v4451_v35  ;;  %v4399_v39 = vadd.f32 %v15845_v8, %v4101_v36 }
 0x4e2   : > { %4884 = vst [vmem:[#allocation2 + $0x38] sm:$0xff] %v15885_v42  ;;  %v4454_v58 = vmax.f32 %v4400_v56, 0.0  ;;  %v4997_v45 = vld [vmem:[#allocation2 + $0x9] sm:$0xff]  ;;  %v4998_v9 = vld [vmem:[#allocation2 + $0x11] sm:$0xff] }
 0x4e3   : > { %4883 = vst [vmem:[#allocation2 + $0x30] sm:$0xff] %v15891_v17  ;;  %v4453_v54 = vmax.f32 %v4399_v39, 0.0  ;;  %v11516_v55 = vpop.f32.mrb[10].mxu0  ;;  %11613 = vmatmul.mubr.f32.vlgmr.msra.gmra.mrb[0].mxu1 %v4997_v45 }
 0x4e4   : > { %v15899_v34 = vmul.f32 %v15826_v3, %v4454_v58  ;;  %v4402_v59 = vadd.f32 %v11516_v55, %v15845_v8  ;;  %v4111_v62 = vpop.f32.mrb[11].mxu0  ;;  %11615 = vmatprep.mubr.f32.mxu1 %v4998_v9  ;;  %12943 = vmatpush3.bf16.msra.mxu1 %v15821_v11  ;;  %v4991_v9 = vld [vmem:[#allocation8 + $0x58] sm:$0xff]  ;;  %v15946_v20 = vpop.permute.xlu1 %4700 }
 0x4e5   : > { %v15904_v60 = vmul.f32 %v15828_v46, %v4453_v54  ;;  %v4401_v0 = vadd.f32 %v15845_v8, %v4111_v62  ;;  %12945 = vmatprep.subr.bf16.mxu1 %v12944_v38  ;;  %v15911_v46 = vpop.permute.xlu0 %4675 }
 0x4e6   : > { %4886 = vst [vmem:[#allocation2 + $0x48] sm:$0xff] %v15899_v34  ;;  %v4456_v13 = vmax.f32 %v4402_v59, 0.0  ;;  %v4999_v18 = vld [vmem:[#allocation2 + $0x19] sm:$0xff]  ;;  %v5000_v3 = vld [vmem:[#allocation2 + $0x21] sm:$0xff] }
 0x4e7   : > { %4885 = vst [vmem:[#allocation2 + $0x40] sm:$0xff] %v15904_v60  ;;  %v4455_v22 = vmax.f32 %v4401_v0, 0.0  ;;  %v11519_v11 = vpop.f32.mrb[12].mxu0  ;;  %11616 = vmatmul.mubr.f32.gmra.mrb[2].mxu1 %v4999_v18 }
 0x4e8   : > { %v15914_v37 = vmul.f32 %v15830_v52, %v4456_v13  ;;  %v4404_v44 = vadd.f32 %v11519_v11, %v15845_v8  ;;  %v4121_v47 = vpop.f32.mrb[13].mxu0  ;;  %11618 = vmatprep.mubr.f32.mxu1 %v5000_v3  ;;  %12947 = vmatpush3.bf16.msra.mxu1 %v12944_v38  ;;  %v4989_v52 = vld [vmem:[#allocation8 + $0x48] sm:$0xff]  ;;  %v4990_v38 = vld [vmem:[#allocation8 + $0x50] sm:$0xff] }
 0x4e9   : > { %v15918_v24 = vmul.f32 %v15832_v33, %v4455_v22  ;;  %v4403_v27 = vadd.f32 %v15845_v8, %v4121_v47  ;;  %12949 = vmatprep.subr.bf16.mxu1 %v12948_v63  ;;  %v12956_v39 = vpack.c.bf16 %v4989_v52, %v4988_v4  ;;  %v15933_v15 = vpop.permute.xlu0 %4685 }
 0x4ea   : > { %4888 = vst [vmem:[#allocation2 + $0x58] sm:$0xff] %v15914_v37  ;;  %v4458_v43 = vmax.f32 %v4404_v44, 0.0  ;;  %v5001_v30 = vld [vmem:[#allocation2 + $0x29] sm:$0xff]  ;;  %v5002_v48 = vld [vmem:[#allocation2 + $0x31] sm:$0xff] }
 0x4eb   : > { %4887 = vst [vmem:[#allocation2 + $0x50] sm:$0xff] %v15918_v24  ;;  %v4457_v2 = vmax.f32 %v4403_v27, 0.0  ;;  %v11522_v51 = vpop.f32.mrb[14].mxu0  ;;  %11619 = vmatmul.mubr.f32.gmra.mrb[4].mxu1 %v5001_v30  ;;  %v4994_v30 = vld [vmem:[#allocation8 + $0x70] sm:$0xff] }
 0x4ec   : > { %v15924_v31 = vmul.f32 %v15834_v14, %v4458_v43  ;;  %v4406_v33 = vadd.f32 %v11522_v51, %v15845_v8  ;;  %v4131_v35 = vpop.f32.mrb[15].mxu0  ;;  %11621 = vmatprep.mubr.f32.mxu1 %v5002_v48  ;;  %12951 = vmatpush3.bf16.msra.mxu1 %v12948_v63  ;;  %v12960_v63 = vpack.c.bf16 %v4991_v9, %v4990_v38 }
 0x4ed   : > { %v15930_v56 = vmul.f32 %v15836_v61, %v4457_v2  ;;  %v4405_v36 = vadd.f32 %v15845_v8, %v4131_v35  ;;  %12953 = vmatprep.subr.bf16.mxu1 %v12952_v28 }
 0x4ee   : > { %4890 = vst [vmem:[#allocation2 + $0x68] sm:$0xff] %v15924_v31  ;;  %v4460_v14 = vmax.f32 %v4406_v33, 0.0  ;;  %v5003_v58 = vld [vmem:[#allocation2 + $0x39] sm:$0xff]  ;;  %v5004_v45 = vld [vmem:[#allocation2 + $0x41] sm:$0xff] }
 0x4ef   : > { %4889 = vst [vmem:[#allocation2 + $0x60] sm:$0xff] %v15930_v56  ;;  %v4459_v53 = vmax.f32 %v4405_v36, 0.0  ;;  %v11525_v54 = vpop.f32.mrb[16].mxu0  ;;  %11622 = vmatmul.mubr.f32.gmra.mrb[6].mxu1 %v5003_v58 }
 0x4f0   : > { %v15938_v61 = vmul.f32 %v15838_v49, %v4460_v14  ;;  %v4408_v55 = vadd.f32 %v11525_v54, %v15845_v8  ;;  %v4141_v59 = vpop.f32.mrb[17].mxu0  ;;  %11624 = vmatprep.mubr.f32.mxu1 %v5004_v45  ;;  %12955 = vmatpush3.bf16.msra.mxu1 %v12952_v28  ;;  %v4993_v49 = vld [vmem:[#allocation8 + $0x68] sm:$0xff]  ;;  %v5720_v45 = vld [vmem:[#allocation8 + $0x100] sm:$0xff] }
 0x4f1   : > { %v15942_v62 = vmul.f32 %v15840_v7, %v4459_v53  ;;  %v4407_v0 = vadd.f32 %v15845_v8, %v4141_v59  ;;  %12957 = vmatprep.subr.bf16.mxu1 %v12956_v39  ;;  %v15949_v7 = vpop.permute.xlu0 %4695  ;;  %v12964_v43 = vpack.c.bf16 %v4993_v49, %v4992_v5 }
 0x4f2   : > { %4892 = vst [vmem:[#allocation2 + $0x78] sm:$0xff] %v15938_v61  ;;  %v4462_v13 = vmax.f32 %v4408_v55, 0.0  ;;  %v5005_v18 = vld [vmem:[#allocation2 + $0x49] sm:$0xff]  ;;  %v5006_v3 = vld [vmem:[#allocation2 + $0x51] sm:$0xff] }
 0x4f3   : > { %4891 = vst [vmem:[#allocation2 + $0x70] sm:$0xff] %v15942_v62  ;;  %v4461_v22 = vmax.f32 %v4407_v0, 0.0  ;;  %v11528_v11 = vpop.f32.mrb[18].mxu0  ;;  %11625 = vmatmul.mubr.f32.gmra.mrb[8].mxu1 %v5005_v18  ;;  %v5721_v55 = vld [vmem:[#allocation8 + $0x108] sm:$0xff] }
 0x4f4   : > { %v15952_v44 = vmul.f32 %v15847_v50, %v4462_v13  ;;  %v4410_v47 = vadd.f32 %v11528_v11, %v15845_v8  ;;  %v4151_v27 = vpop.f32.mrb[19].mxu0  ;;  %11627 = vmatprep.mubr.f32.mxu1 %v5006_v3  ;;  %12959 = vmatpush3.bf16.msra.mxu1 %v12956_v39  ;;  %v4995_v50 = vld [vmem:[#allocation8 + $0x78] sm:$0xff]  ;;  %v15965_v39 = vpop.permute.xlu1 %4710  ;;  %v15983_v3 = vpack.c.bf16 %v5721_v55, %v5720_v45 }
 0x4f5   : > { %v15956_v28 = vmul.f32 %v15849_v12, %v4461_v22  ;;  %v4409_v4 = vadd.f32 %v15845_v8, %v4151_v27  ;;  %12961 = vmatprep.subr.bf16.mxu1 %v12960_v63  ;;  %v12968_v58 = vpack.c.bf16 %v4995_v50, %v4994_v30  ;;  %v15971_v9 = vpop.permute.xlu0 %4705 }
 0x4f6   : > { %4894 = vst [vmem:[#allocation2 + $0x88] sm:$0xff] %v15952_v44  ;;  %v4464_v48 = vmax.f32 %v4410_v47, 0.0  ;;  %v5007_v52 = vld [vmem:[#allocation2 + $0x59] sm:$0xff]  ;;  %v5008_v2 = vld [vmem:[#allocation2 + $0x61] sm:$0xff] }
 0x4f7   : > { %4893 = vst [vmem:[#allocation2 + $0x80] sm:$0xff] %v15956_v28  ;;  %v4463_v51 = vmax.f32 %v4409_v4, 0.0  ;;  %v11531_v33 = vpop.f32.mrb[20].mxu0  ;;  %11628 = vmatmul.mubr.f32.gmra.mrb[10].mxu1 %v5007_v52 }
 0x4f8   : > { %v15962_v35 = vmul.f32 %v15856_v6, %v4464_v48  ;;  %v4412_v12 = vadd.f32 %v11531_v33, %v15845_v8  ;;  %v4161_v36 = vpop.f32.mrb[21].mxu0  ;;  %11630 = vmatprep.mubr.f32.mxu1 %v5008_v2  ;;  %12963 = vmatpush3.bf16.msra.mxu1 %v12960_v63 }
 0x4f9   : > { %v15968_v38 = vmul.f32 %v15861_v19, %v4463_v51  ;;  %v4411_v14 = vadd.f32 %v15845_v8, %v4161_v36  ;;  %12965 = vmatprep.subr.bf16.mxu1 %v12964_v43  ;;  %v15989_v4 = vpop.permute.xlu0 %4715 }
 0x4fa   : > { %4896 = vst [vmem:[#allocation2 + $0x98] sm:$0xff] %v15962_v35  ;;  %v4466_v6 = vmax.f32 %v4412_v12, 0.0  ;;  %v5009_v53 = vld [vmem:[#allocation2 + $0x69] sm:$0xff]  ;;  %v5010_v54 = vld [vmem:[#allocation2 + $0x71] sm:$0xff] }
 0x4fb   : > { %4895 = vst [vmem:[#allocation2 + $0x90] sm:$0xff] %v15968_v38  ;;  %v4465_v59 = vmax.f32 %v4411_v14, 0.0  ;;  %v11534_v0 = vpop.f32.mrb[22].mxu0  ;;  %11631 = vmatmul.mubr.f32.gmra.mrb[12].mxu1 %v5009_v53 }
 0x4fc   : > { %v15976_v19 = vmul.f32 %v15872_v57, %v4466_v6  ;;  %v4414_v63 = vadd.f32 %v11534_v0, %v15845_v8  ;;  %v4171_v5 = vpop.f32.mrb[23].mxu0  ;;  %11633 = vmatprep.mubr.f32.mxu1 %v5010_v54  ;;  %12967 = vmatpush3.bf16.msra.mxu1 %v12964_v43  ;;  %v15986_v57 = vpop.permute.xlu1 %4720 }
 0x4fd   : > { %v15980_v13 = vmul.f32 %v15875_v29, %v4465_v59  ;;  %v4413_v18 = vadd.f32 %v15845_v8, %v4171_v5  ;;  %12969 = vmatprep.subr.bf16.mxu1 %v12968_v58  ;;  %v16012_v6 = vpop.permute.xlu0 %4725 }
 0x4fe   : > { %4898 = vst [vmem:[#allocation2 + $0xa8] sm:$0xff] %v15976_v19  ;;  %v4468_v49 = vmax.f32 %v4414_v63, 0.0  ;;  %v5011_v22 = vld [vmem:[#allocation2 + $0x79] sm:$0xff]  ;;  %v5012_v11 = vld [vmem:[#allocation2 + $0x81] sm:$0xff] }
 0x4ff   : > { %4897 = vst [vmem:[#allocation2 + $0xa0] sm:$0xff] %v15980_v13  ;;  %v4467_v47 = vmax.f32 %v4413_v18, 0.0  ;;  %v11537_v27 = vpop.f32.mrb[24].mxu0  ;;  %11634 = vmatmul.mubr.f32.gmra.mrb[14].mxu1 %v5011_v22 }
 0x500   : > { %v15992_v29 = vmul.f32 %v15888_v40, %v4468_v49  ;;  %v4416_v43 = vadd.f32 %v11537_v27, %v15845_v8  ;;  %v4181_v30 = vpop.f32.mrb[25].mxu0  ;;  %11636 = vmatprep.mubr.f32.mxu1 %v5012_v11  ;;  %12971 = vmatpush3.bf16.msra.mxu1 %v12968_v58  ;;  %v16006_v14 = vpop.permute.xlu1 %4730 }
 0x501   : > { %v15996_v48 = vmul.f32 %v15894_v41, %v4467_v47  ;;  %v4415_v52 = vadd.f32 %v15845_v8, %v4181_v30  ;;  %12973 = vmatprep.subr.bf16.mxu1 %v15983_v3 }
 0x502   : > { %4900 = vst [vmem:[#allocation2 + $0xb8] sm:$0xff] %v15992_v29  ;;  %v4470_v2 = vmax.f32 %v4416_v43, 0.0  ;;  %v5013_v50 = vld [vmem:[#allocation2 + $0x89] sm:$0xff]  ;;  %v5014_v51 = vld [vmem:[#allocation2 + $0x91] sm:$0xff]  ;;  %v16028_v43 = vpop.permute.xlu0 %4735 }
 0x503   : > { %4899 = vst [vmem:[#allocation2 + $0xb0] sm:$0xff] %v15996_v48  ;;  %v4469_v40 = vmax.f32 %v4415_v52, 0.0  ;;  %v11540_v33 = vpop.f32.mrb[26].mxu0  ;;  %11637 = vmatmul.mubr.f32.gmra.mrb[16].mxu1 %v5013_v50 }
 0x504   : > { %v16003_v12 = vmul.f32 %v15908_v21, %v4470_v2  ;;  %v4418_v41 = vadd.f32 %v11540_v33, %v15845_v8  ;;  %v4191_v36 = vpop.f32.mrb[27].mxu0  ;;  %11639 = vmatprep.mubr.f32.mxu1 %v5014_v51  ;;  %v16025_v47 = vpop.permute.xlu1 %4740 }
 0x505   : > { %v16009_v58 = vmul.f32 %v15911_v46, %v4469_v40  ;;  %v4417_v45 = vadd.f32 %v15845_v8, %v4191_v36 }
 0x506   : > { %4902 = vst [vmem:[#allocation2 + $0xc8] sm:$0xff] %v16003_v12  ;;  %v4472_v53 = vmax.f32 %v4418_v41, 0.0  ;;  %v5015_v54 = vld [vmem:[#allocation2 + $0x99] sm:$0xff]  ;;  %v5016_v55 = vld [vmem:[#allocation2 + $0xa1] sm:$0xff] }
 0x507   : > { %4901 = vst [vmem:[#allocation2 + $0xc0] sm:$0xff] %v16009_v58  ;;  %v4471_v21 = vmax.f32 %v4417_v45, 0.0  ;;  %v11543_v59 = vpop.f32.mrb[28].mxu0  ;;  %11640 = vmatmul.mubr.f32.gmra.mrb[18].mxu1 %v5015_v54 }
 0x508   : > { %v16017_v0 = vmul.f32 %v15927_v10, %v4472_v53  ;;  %v4420_v46 = vadd.f32 %v11543_v59, %v15845_v8  ;;  %v4201_v63 = vpop.f32.mrb[29].mxu0  ;;  %11642 = vmatprep.mubr.f32.mxu1 %v5016_v55 }
 0x509   : > { %v16021_v5 = vmul.f32 %v15933_v15, %v4471_v21  ;;  %v4419_v18 = vadd.f32 %v15845_v8, %v4201_v63  ;;  %v4746_v21 = vpop.permute.xlu0 %4745 }
 0x50a   : > { %4904 = vst [vmem:[#allocation2 + $0xd8] sm:$0xff] %v16017_v0  ;;  %v4474_v49 = vmax.f32 %v4420_v46, 0.0  ;;  %v5017_v22 = vld [vmem:[#allocation2 + $0xa9] sm:$0xff]  ;;  %v5018_v11 = vld [vmem:[#allocation2 + $0xb1] sm:$0xff] }
 0x50b   : > { %4903 = vst [vmem:[#allocation2 + $0xd0] sm:$0xff] %v16021_v5  ;;  %v4473_v10 = vmax.f32 %v4419_v18, 0.0  ;;  %v11546_v27 = vpop.f32.mrb[30].mxu0  ;;  %11643 = vmatmul.mubr.f32.gmra.mrb[20].mxu1 %v5017_v22 }
 0x50c   : > { %v16031_v30 = vmul.f32 %v15946_v20, %v4474_v49  ;;  %v4422_v15 = vadd.f32 %v11546_v27, %v15845_v8  ;;  %v4211_v52 = vpop.f32.mrb[31].mxu0  ;;  %11645 = vmatprep.mubr.f32.mxu1 %v5018_v11 }
 0x50d   : > { %v16035_v2 = vmul.f32 %v15949_v7, %v4473_v10  ;;  %v4421_v50 = vadd.f32 %v15845_v8, %v4211_v52  ;;  %v4751_v7 = vpop.permute.xlu1 %4750 }
 0x50e   : > { %4906 = vst [vmem:[#allocation2 + $0xe8] sm:$0xff] %v16031_v30  ;;  %v4476_v51 = vmax.f32 %v4422_v15, 0.0  ;;  %v5019_v40 = vld [vmem:[#allocation2 + $0xb9] sm:$0xff]  ;;  %v5020_v33 = vld [vmem:[#allocation2 + $0xc1] sm:$0xff] }
 0x50f   : > { %4905 = vst [vmem:[#allocation2 + $0xe0] sm:$0xff] %v16035_v2  ;;  %v4475_v41 = vmax.f32 %v4421_v50, 0.0  ;;  %v11549_v36 = vpop.f32.mrb[32].mxu0  ;;  %11646 = vmatmul.mubr.f32.gmra.mrb[22].mxu1 %v5019_v40  ;;  %v4756_v40 = vpop.permute.xlu0 %4755 }
 0x510   : > { %v16041_v20 = vmul.f32 %v15965_v39, %v4476_v51  ;;  %v4424_v45 = vadd.f32 %v11549_v36, %v15845_v8  ;;  %v4221_v53 = vpop.f32.mrb[33].mxu0  ;;  %11648 = vmatprep.mubr.f32.mxu1 %v5020_v33 }
 0x511   : > { %v16045_v54 = vmul.f32 %v15971_v9, %v4475_v41  ;;  %v4423_v55 = vadd.f32 %v15845_v8, %v4221_v53  ;;  %v4761_v50 = vpop.permute.xlu1 %4760 }
 0x512   : > { %4908 = vst [vmem:[#allocation2 + $0xf8] sm:$0xff] %v16041_v20  ;;  %v4478_v59 = vmax.f32 %v4424_v45, 0.0  ;;  %v5021_v46 = vld [vmem:[#allocation2 + $0xc9] sm:$0xff]  ;;  %v5022_v63 = vld [vmem:[#allocation2 + $0xd1] sm:$0xff] }
 0x513   : > { %4907 = vst [vmem:[#allocation2 + $0xf0] sm:$0xff] %v16045_v54  ;;  %v4477_v39 = vmax.f32 %v4423_v55, 0.0  ;;  %v11552_v18 = vpop.f32.mrb[34].mxu0  ;;  %11649 = vmatmul.mubr.f32.gmra.mrb[24].mxu1 %v5021_v46 }
 0x514   : > { %v16051_v49 = vmul.f32 %v15986_v57, %v4478_v59  ;;  %v4426_v22 = vadd.f32 %v11552_v18, %v15845_v8  ;;  %v4231_v9 = vpop.f32.mrb[35].mxu0  ;;  %11651 = vmatprep.mubr.f32.mxu1 %v5022_v63 }
 0x515   : > { %v16055_v11 = vmul.f32 %v15989_v4, %v4477_v39  ;;  %v4425_v10 = vadd.f32 %v15845_v8, %v4231_v9 }
 0x516   : > { %4910 = vst [vmem:[#allocation2 + $0x108] sm:$0xff] %v16051_v49  ;;  %v4480_v27 = vmax.f32 %v4426_v22, 0.0  ;;  %v5023_v15 = vld [vmem:[#allocation2 + $0xd9] sm:$0xff]  ;;  %v5024_v52 = vld [vmem:[#allocation2 + $0xe1] sm:$0xff] }
 0x517   : > { %4909 = vst [vmem:[#allocation2 + $0x100] sm:$0xff] %v16055_v11  ;;  %v4479_v51 = vmax.f32 %v4425_v10, 0.0  ;;  %v11555_v57 = vpop.f32.mrb[36].mxu0  ;;  %11652 = vmatmul.mubr.f32.gmra.mrb[26].mxu1 %v5023_v15  ;;  %v4766_v10 = vpop.permute.xlu0 %4765 }
 0x518   : > { %v16061_v33 = vmul.f32 %v16006_v14, %v4480_v27  ;;  %v4428_v4 = vadd.f32 %v11555_v57, %v15845_v8  ;;  %v4241_v41 = vpop.f32.mrb[37].mxu0  ;;  %11654 = vmatprep.mubr.f32.mxu1 %v5024_v52 }
 0x519   : > { %v16065_v36 = vmul.f32 %v16012_v6, %v4479_v51  ;;  %v4427_v45 = vadd.f32 %v15845_v8, %v4241_v41  ;;  %v4771_v6 = vpop.permute.xlu1 %4770 }
 0x51a   : > { %4912 = vst [vmem:[#allocation2 + $0x118] sm:$0xff] %v16061_v33  ;;  %v4482_v53 = vmax.f32 %v4428_v4, 0.0  ;;  %v5025_v55 = vld [vmem:[#allocation2 + $0xe9] sm:$0xff]  ;;  %v5026_v59 = vld [vmem:[#allocation2 + $0xf1] sm:$0xff] }
 0x51b   : > { %4911 = vst [vmem:[#allocation2 + $0x110] sm:$0xff] %v16065_v36  ;;  %v4481_v46 = vmax.f32 %v4427_v45, 0.0  ;;  %v11558_v63 = vpop.f32.mrb[38].mxu0  ;;  %11655 = vmatmul.mubr.f32.gmra.mrb[28].mxu1 %v5025_v55 }
 0x51c   : > { %v16071_v14 = vmul.f32 %v16025_v47, %v4482_v53  ;;  %v4430_v39 = vadd.f32 %v11558_v63, %v15845_v8  ;;  %v4251_v18 = vpop.f32.mrb[39].mxu0  ;;  %11657 = vmatprep.mubr.f32.mxu1 %v5026_v59 }
 0x51d   : > { %v16075_v22 = vmul.f32 %v16028_v43, %v4481_v46  ;;  %v4429_v9 = vadd.f32 %v15845_v8, %v4251_v18  ;;  %v4781_v46 = vpop.permute.xlu1 %4780 }
 0x51e   : > { %4914 = vst [vmem:[#allocation2 + $0x128] sm:$0xff] %v16071_v14  ;;  %v4484_v27 = vmax.f32 %v4430_v39, 0.0  ;;  %v5027_v15 = vld [vmem:[#allocation2 + $0xf9] sm:$0xff]  ;;  %v5028_v52 = vld [vmem:[#allocation2 + $0x101] sm:$0xff] }
 0x51f   : > { %4913 = vst [vmem:[#allocation2 + $0x120] sm:$0xff] %v16075_v22  ;;  %v4483_v47 = vmax.f32 %v4429_v9, 0.0  ;;  %v11561_v51 = vpop.f32.mrb[40].mxu0  ;;  %11658 = vmatmul.mubr.f32.gmra.mrb[30].mxu1 %v5027_v15 }
 0x520   : > { %v16080_v57 = vmul.f32 %v4751_v7, %v4484_v27  ;;  %v4432_v4 = vadd.f32 %v11561_v51, %v15845_v8  ;;  %v4261_v41 = vpop.f32.mrb[41].mxu0  ;;  %11660 = vmatprep.mubr.f32.mxu1 %v5028_v52  ;;  %v4776_v7 = vpop.permute.xlu0 %4775 }
 0x521   : > { %v16083_v43 = vmul.f32 %v4746_v21, %v4483_v47  ;;  %v4431_v45 = vadd.f32 %v15845_v8, %v4261_v41 }
 0x522   : > { %4916 = vst [vmem:[#allocation2 + $0x138] sm:$0xff] %v16080_v57  ;;  %v4486_v53 = vmax.f32 %v4432_v4, 0.0  ;;  %v5029_v55 = vld [vmem:[#allocation2 + $0x109] sm:$0xff]  ;;  %v5030_v59 = vld [vmem:[#allocation2 + $0x111] sm:$0xff] }
 0x523   : > { %4915 = vst [vmem:[#allocation2 + $0x130] sm:$0xff] %v16083_v43  ;;  %v4485_v63 = vmax.f32 %v4431_v45, 0.0  ;;  %v11564_v39 = vpop.f32.mrb[42].mxu0  ;;  %11661 = vmatmul.mubr.f32.gmra.mrb[32].mxu1 %v5029_v55 }
 0x524   : > { %v16088_v18 = vmul.f32 %v4761_v50, %v4486_v53  ;;  %v4434_v9 = vadd.f32 %v11564_v39, %v15845_v8  ;;  %v4271_v21 = vpop.f32.mrb[43].mxu0  ;;  %11663 = vmatprep.mubr.f32.mxu1 %v5030_v59 }
 0x525   : > { %v16091_v27 = vmul.f32 %v4756_v40, %v4485_v63  ;;  %v4433_v15 = vadd.f32 %v15845_v8, %v4271_v21  ;;  %v4791_v40 = vpop.permute.xlu1 %4790  ;;  %v4786_v63 = vpop.permute.xlu0 %4785 }
 0x526   : > { %4918 = vst [vmem:[#allocation2 + $0x148] sm:$0xff] %v16088_v18  ;;  %v4488_v52 = vmax.f32 %v4434_v9, 0.0  ;;  %v5031_v47 = vld [vmem:[#allocation2 + $0x119] sm:$0xff]  ;;  %v5032_v51 = vld [vmem:[#allocation2 + $0x121] sm:$0xff] }
 0x527   : > { %4917 = vst [vmem:[#allocation2 + $0x140] sm:$0xff] %v16091_v27  ;;  %v4487_v4 = vmax.f32 %v4433_v15, 0.0  ;;  %v11567_v41 = vpop.f32.mrb[44].mxu0  ;;  %11664 = vmatmul.mubr.f32.gmra.mrb[34].mxu1 %v5031_v47 }
 0x528   : > { %v16096_v50 = vmul.f32 %v4771_v6, %v4488_v52  ;;  %v4436_v45 = vadd.f32 %v11567_v41, %v15845_v8  ;;  %v4281_v53 = vpop.f32.mrb[45].mxu0  ;;  %11666 = vmatprep.mubr.f32.mxu1 %v5032_v51 }
 0x529   : > { %v16099_v55 = vmul.f32 %v4766_v10, %v4487_v4  ;;  %v4435_v59 = vadd.f32 %v15845_v8, %v4281_v53 }
 0x52a   : > { %17226 = vst [vmem:[#allocation13_spill] sm:$0xff] %v16096_v50  ;;  %4920 = vst [vmem:[#allocation2 + $0x158] sm:$0xff] %v16096_v50  ;;  %v4490_v39 = vmax.f32 %v4436_v45, 0.0  ;;  %v5033_v9 = vld [vmem:[#allocation2 + $0x129] sm:$0xff]  ;;  %v5034_v21 = vld [vmem:[#allocation2 + $0x131] sm:$0xff]  ;;  %v4801_v50 = vpop.permute.xlu1 %4800 }
 0x52b   : > { %4919 = vst [vmem:[#allocation2 + $0x150] sm:$0xff] %v16099_v55  ;;  %v4489_v15 = vmax.f32 %v4435_v59, 0.0  ;;  %v11570_v6 = vpop.f32.mrb[46].mxu0  ;;  %11667 = vmatmul.mubr.f32.gmra.mrb[36].mxu1 %v5033_v9 }
 0x52c   : > { %v16104_v52 = vmul.f32 %v4781_v46, %v4490_v39  ;;  %v4438_v47 = vadd.f32 %v11570_v6, %v15845_v8  ;;  %v4291_v51 = vpop.f32.mrb[47].mxu0  ;;  %11669 = vmatprep.mubr.f32.mxu1 %v5034_v21  ;;  %v4796_v46 = vpop.permute.xlu0 %4795 }
 0x52d   : > { %v16107_v10 = vmul.f32 %v4776_v7, %v4489_v15  ;;  %v4437_v4 = vadd.f32 %v15845_v8, %v4291_v51 }
 0x52e   : > { %17227 = vst [vmem:[#allocation14_spill] sm:$0xff] %v16104_v52  ;;  %4922 = vst [vmem:[#allocation2 + $0x168] sm:$0xff] %v16104_v52  ;;  %v4492_v41 = vmax.f32 %v4438_v47, 0.0  ;;  %v5035_v45 = vld [vmem:[#allocation2 + $0x139] sm:$0xff]  ;;  %v5036_v53 = vld [vmem:[#allocation2 + $0x141] sm:$0xff] }
 0x52f   : > { %4921 = vst [vmem:[#allocation2 + $0x160] sm:$0xff] %v16107_v10  ;;  %v4491_v59 = vmax.f32 %v4437_v4, 0.0  ;;  %v11573_v9 = vpop.f32.mrb[48].mxu0  ;;  %11670 = vmatmul.mubr.f32.gmra.mrb[38].mxu1 %v5035_v45 }
 0x530   : > { %v16112_v39 = vmul.f32 %v4791_v40, %v4492_v41  ;;  %v4440_v21 = vadd.f32 %v11573_v9, %v15845_v8  ;;  %v4301_v7 = vpop.f32.mrb[49].mxu0  ;;  %11672 = vmatprep.mubr.f32.mxu1 %v5036_v53 }
 0x531   : > { %v16115_v15 = vmul.f32 %v4786_v63, %v4491_v59  ;;  %v4439_v6 = vadd.f32 %v15845_v8, %v4301_v7  ;;  %v4811_v63 = vpop.permute.xlu1 %4810  ;;  %v4806_v7 = vpop.permute.xlu0 %4805 }
 0x532   : > { %17228 = vst [vmem:[#allocation15_spill] sm:$0xff] %v16112_v39  ;;  %4924 = vst [vmem:[#allocation2 + $0x178] sm:$0xff] %v16112_v39  ;;  %v4494_v47 = vmax.f32 %v4440_v21, 0.0  ;;  %v5037_v51 = vld [vmem:[#allocation2 + $0x149] sm:$0xff]  ;;  %v5038_v52 = vld [vmem:[#allocation2 + $0x151] sm:$0xff] }
 0x533   : > { %17229 = vst [vmem:[#allocation16_spill] sm:$0xff] %v16115_v15  ;;  %4923 = vst [vmem:[#allocation2 + $0x170] sm:$0xff] %v16115_v15  ;;  %v4493_v4 = vmax.f32 %v4439_v6, 0.0  ;;  %v11576_v45 = vpop.f32.mrb[50].mxu0  ;;  %11673 = vmatmul.mubr.f32.gmra.mrb[40].mxu1 %v5037_v51 }
 0x534   : > { %v16120_v40 = vmul.f32 %v4801_v50, %v4494_v47  ;;  %v4442_v41 = vadd.f32 %v11576_v45, %v15845_v8  ;;  %v4311_v9 = vpop.f32.mrb[51].mxu0  ;;  %11675 = vmatprep.mubr.f32.mxu1 %v5038_v52 }
 0x535   : > { %v16123_v53 = vmul.f32 %v4796_v46, %v4493_v4  ;;  %v4441_v59 = vadd.f32 %v15845_v8, %v4311_v9 }
 0x536   : > { %17230 = vst [vmem:[#allocation17_spill] sm:$0xff] %v16120_v40  ;;  %4926 = vst [vmem:[#allocation2 + $0x188] sm:$0xff] %v16120_v40  ;;  %v4496_v21 = vmax.f32 %v4442_v41, 0.0  ;;  %v5039_v39 = vld [vmem:[#allocation2 + $0x159] sm:$0xff]  ;;  %v5040_v15 = vld [vmem:[#allocation2 + $0x161] sm:$0xff]  ;;  %v4821_v40 = vpop.permute.xlu1 %4820 }
 0x537   : > { %17231 = vst [vmem:[#allocation18_spill] sm:$0xff] %v16123_v53  ;;  %4925 = vst [vmem:[#allocation2 + $0x180] sm:$0xff] %v16123_v53  ;;  %v4495_v6 = vmax.f32 %v4441_v59, 0.0  ;;  %v11579_v50 = vpop.f32.mrb[52].mxu0  ;;  %11676 = vmatmul.mubr.f32.gmra.mrb[42].mxu1 %v5039_v39  ;;  %v4816_v59 = vpop.permute.xlu0 %4815 }
 0x538   : > { %v4874_v47 = vmul.f32 %v4811_v63, %v4496_v21  ;;  %v4444_v51 = vadd.f32 %v11579_v50, %v15845_v8  ;;  %v4321_v52 = vpop.f32.mrb[53].mxu0  ;;  %11678 = vmatprep.mubr.f32.mxu1 %v5040_v15  ;;  %v5722_v15 = vld [vmem:[#allocation8 + $0x110] sm:$0xff]  ;;  %v5725_v50 = vld [vmem:[#allocation8 + $0x128] sm:$0xff] }
 0x539   : > { %v16129_v46 = vmul.f32 %v4806_v7, %v4495_v6  ;;  %v4443_v4 = vadd.f32 %v15845_v8, %v4321_v52  ;;  %v5723_v7 = vld [vmem:[#allocation8 + $0x118] sm:$0xff]  ;;  %v5724_v6 = vld [vmem:[#allocation8 + $0x120] sm:$0xff]  ;;  %v5729_v52 = vld [vmem:[#allocation8 + $0x148] sm:$0xff] }
 0x53a   : > { %4928 = vst [vmem:[#allocation2 + $0x198] sm:$0xff] %v4874_v47  ;;  %v4498_v45 = vmax.f32 %v4444_v51, 0.0  ;;  %v5041_v9 = vld [vmem:[#allocation2 + $0x169] sm:$0xff]  ;;  %v5042_v41 = vld [vmem:[#allocation2 + $0x171] sm:$0xff]  ;;  %v12976_v8 = vpack.c.bf16 %v5723_v7, %v5722_v15  ;;  %v5727_v47 = vld [vmem:[#allocation8 + $0x138] sm:$0xff] }
 0x53b   : > { %4927 = vst [vmem:[#allocation2 + $0x190] sm:$0xff] %v16129_v46  ;;  %v4497_v53 = vmax.f32 %v4443_v4, 0.0  ;;  %11679 = vmatmul.mubr.f32.gmra.mrb[44].mxu1 %v5041_v9  ;;  %v5728_v51 = vld [vmem:[#allocation8 + $0x140] sm:$0xff]  ;;  %v5733_v4 = vld [vmem:[#allocation8 + $0x168] sm:$0xff] }
 0x53c   : > { %v4876_v39 = vmul.f32 %v4821_v40, %v4498_v45  ;;  %11681 = vmatprep.mubr.f32.mxu1 %v5042_v41  ;;  %v12980_v40 = vpack.c.bf16 %v5725_v50, %v5724_v6  ;;  %v5735_v45 = vld [vmem:[#allocation8 + $0x178] sm:$0xff]  ;;  %v6139_v9 = vld [vmem:[#allocation8 + $0x188] sm:$0xff]  ;;  %v6152_v6 = vld [vmem:[#allocation8 + $0x1f0] sm:$0xff] }
 0x53d   : > { %v4875_v63 = vmul.f32 %v4816_v59, %v4497_v53  ;;  %v5726_v53 = vld [vmem:[#allocation8 + $0x130] sm:$0xff]  ;;  %v16197_v41 = vld [vmem:[#allocation2 + $0x42] sm:$0xff] }
 0x53e   : > { %4930 = vst [vmem:[#allocation2 + $0x1a8] sm:$0xff] %v4876_v39  ;;  %v5043_v21 = vld [vmem:[#allocation2 + $0x179] sm:$0xff]  ;;  %v16200_v39 = vld [vmem:[#allocation2 + $0x4a] sm:$0xff] }
 0x53f   : > { %4929 = vst [vmem:[#allocation2 + $0x1a0] sm:$0xff] %v4875_v63  ;;  %11682 = vmatmul.mubr.f32.gmra.mrb[46].mxu1 %v5043_v21  ;;  %v6150_v63 = vld [vmem:[#allocation8 + $0x1e0] sm:$0xff]  ;;  %v6151_v21 = vld [vmem:[#allocation8 + $0x1e8] sm:$0xff]  ;;  %v6153_v50 = vld [vmem:[#allocation8 + $0x1f8] sm:$0xff] }
 0x540   : > { %11716 = vmatprep.mubr.f32.mxu1 %v15858_v16  ;;  %v12984_v16 = vpack.c.bf16 %v5727_v47, %v5726_v53  ;;  %v16203_v15 = vld [vmem:[#allocation2 + $0x52] sm:$0xff]  ;;  %v13028_v7 = vpack.c.bf16 %v6151_v21, %v6150_v63  ;;  %v13032_v53 = vpack.c.bf16 %v6153_v50, %v6152_v6  ;;  %v16212_v47 = vld [vmem:[#allocation2 + $0x6a] sm:$0xff]  ;;  %v6559_v50 = vld [vmem:[#allocation8 + $0x218] sm:$0xff] }
 0x541   : > { %v16311_v63 = vld [vmem:[#allocation2 + $0x16a] sm:$0xff]  ;;  %v16314_v21 = vld [vmem:[#allocation2 + $0x172] sm:$0xff] }
 0x542   : > { %17241 = vst [vmem:[#allocation24_spill] sm:$0xff] %v16311_v63  ;;  %17242 = vst [vmem:[#allocation25_spill] sm:$0xff] %v16314_v21  ;;  %v6558_v6 = vld [vmem:[#allocation8 + $0x210] sm:$0xff] }
 0x543   : > { %11717 = vmatmul.mubr.f32.vlgmr.msra.gmra.mrb[0].mxu1 %v15853_v1  ;;  %v12988_v1 = vpack.c.bf16 %v5729_v52, %v5728_v51  ;;  %v6557_v51 = vld [vmem:[#allocation8 + $0x208] sm:$0xff] }
 0x544   : > { %11719 = vmatprep.mubr.f32.mxu1 %v15868_v25  ;;  %12975 = vmatpush3.bf16.msra.mxu1 %v15983_v3  ;;  %v5730_v25 = vld [vmem:[#allocation8 + $0x150] sm:$0xff]  ;;  %v5731_v3 = vld [vmem:[#allocation8 + $0x158] sm:$0xff] }
 0x545   : > { %12977 = vmatprep.subr.bf16.mxu1 %v12976_v8  ;;  %v16215_v52 = vld [vmem:[#allocation2 + $0x72] sm:$0xff] }
 0x547   : > { %11720 = vmatmul.mubr.f32.gmra.mrb[2].mxu1 %v15865_v23  ;;  %v12992_v23 = vpack.c.bf16 %v5731_v3, %v5730_v25  ;;  %v16220_v25 = vld [vmem:[#allocation2 + $0x7a] sm:$0xff]  ;;  %v16223_v3 = vld [vmem:[#allocation2 + $0x82] sm:$0xff] }
 0x548   : > { %11722 = vmatprep.mubr.f32.mxu1 %v15880_v26  ;;  %12979 = vmatpush3.bf16.msra.mxu1 %v12976_v8  ;;  %v5732_v26 = vld [vmem:[#allocation8 + $0x160] sm:$0xff]  ;;  %v16206_v8 = vld [vmem:[#allocation2 + $0x5a] sm:$0xff] }
 0x549   : > { %12981 = vmatprep.subr.bf16.mxu1 %v12980_v40 }
 0x54b   : > { %11723 = vmatmul.mubr.f32.gmra.mrb[4].mxu1 %v15877_v32  ;;  %v12996_v32 = vpack.c.bf16 %v5733_v4, %v5732_v26  ;;  %v16230_v26 = vld [vmem:[#allocation2 + $0x92] sm:$0xff]  ;;  %v16233_v4 = vld [vmem:[#allocation2 + $0x9a] sm:$0xff] }
 0x54c   : > { %11725 = vmatprep.mubr.f32.mxu1 %v15891_v17  ;;  %12983 = vmatpush3.bf16.msra.mxu1 %v12980_v40  ;;  %v5734_v17 = vld [vmem:[#allocation8 + $0x170] sm:$0xff]  ;;  %v16209_v40 = vld [vmem:[#allocation2 + $0x62] sm:$0xff] }
 0x54d   : > { %12985 = vmatprep.subr.bf16.mxu1 %v12984_v16 }
 0x54f   : > { %11726 = vmatmul.mubr.f32.gmra.mrb[6].mxu1 %v15885_v42  ;;  %v13000_v42 = vpack.c.bf16 %v5735_v45, %v5734_v17  ;;  %v16239_v17 = vld [vmem:[#allocation2 + $0xaa] sm:$0xff]  ;;  %v16242_v45 = vld [vmem:[#allocation2 + $0xb2] sm:$0xff] }
 0x550   : > { %11728 = vmatprep.mubr.f32.mxu1 %v15904_v60  ;;  %12987 = vmatpush3.bf16.msra.mxu1 %v12984_v16  ;;  %v6138_v60 = vld [vmem:[#allocation8 + $0x180] sm:$0xff] }
 0x551   : > { %12989 = vmatprep.subr.bf16.mxu1 %v12988_v1  ;;  %v6556_v16 = vld [vmem:[#allocation8 + $0x200] sm:$0xff] }
 0x553   : > { %11729 = vmatmul.mubr.f32.gmra.mrb[8].mxu1 %v15899_v34  ;;  %v13004_v34 = vpack.c.bf16 %v6139_v9, %v6138_v60  ;;  %v16248_v60 = vld [vmem:[#allocation2 + $0xc2] sm:$0xff]  ;;  %v16251_v9 = vld [vmem:[#allocation2 + $0xca] sm:$0xff] }
 0x554   : > { %11731 = vmatprep.mubr.f32.mxu1 %v15918_v24  ;;  %12991 = vmatpush3.bf16.msra.mxu1 %v12988_v1  ;;  %v17233_v24 = vld [vmem:[#allocation14_spill] sm:$0xff]  ;;  %v16218_v1 = vpack.c.bf16 %v6557_v51, %v6556_v16  ;;  %v13040_v16 = vpack.c.bf16 %v6559_v50, %v6558_v6  ;;  %v6090_v51 = vld [vmem:[#allocation2 + $0x20] sm:$0xff] }
 0x555   : > { %12993 = vmatprep.subr.bf16.mxu1 %v12992_v23  ;;  %v16327_v50 = vld [vmem:[#allocation2 + $0x40] sm:$0xff] }
 0x556   : > { %17245 = vst [vmem:[#allocation28_spill] sm:$0xff] %v16327_v50 }
 0x557   : > { %11732 = vmatmul.mubr.f32.gmra.mrb[10].mxu1 %v15914_v37  ;;  %v17232_v37 = vld [vmem:[#allocation13_spill] sm:$0xff] }
 0x558   : > { %11734 = vmatprep.mubr.f32.mxu1 %v15930_v56  ;;  %12995 = vmatpush3.bf16.msra.mxu1 %v12992_v23  ;;  %v6140_v56 = vld [vmem:[#allocation8 + $0x190] sm:$0xff]  ;;  %v16227_v23 = vld [vmem:[#allocation2 + $0x8a] sm:$0xff] }
 0x559   : > { %12997 = vmatprep.subr.bf16.mxu1 %v12996_v32 }
 0x55b   : > { %11735 = vmatmul.mubr.f32.gmra.mrb[12].mxu1 %v15924_v31  ;;  %v17234_v31 = vld [vmem:[#allocation16_spill] sm:$0xff] }
 0x55c   : > { %11737 = vmatprep.mubr.f32.mxu1 %v15942_v62  ;;  %12999 = vmatpush3.bf16.msra.mxu1 %v12996_v32  ;;  %v17235_v62 = vld [vmem:[#allocation15_spill] sm:$0xff]  ;;  %v16236_v32 = vld [vmem:[#allocation2 + $0xa2] sm:$0xff] }
 0x55d   : > { %13001 = vmatprep.subr.bf16.mxu1 %v13000_v42 }
 0x55f   : > { %11738 = vmatmul.mubr.f32.gmra.mrb[14].mxu1 %v15938_v61  ;;  %v6141_v61 = vld [vmem:[#allocation8 + $0x198] sm:$0xff] }
 0x560   : > { %11740 = vmatprep.mubr.f32.mxu1 %v15956_v28  ;;  %13003 = vmatpush3.bf16.msra.mxu1 %v13000_v42  ;;  %v13008_v28 = vpack.c.bf16 %v6141_v61, %v6140_v56  ;;  %v16245_v42 = vld [vmem:[#allocation2 + $0xba] sm:$0xff]  ;;  %v16260_v61 = vld [vmem:[#allocation2 + $0xe2] sm:$0xff] }
 0x561   : > { %13005 = vmatprep.subr.bf16.mxu1 %v13004_v34  ;;  %v16257_v56 = vld [vmem:[#allocation2 + $0xda] sm:$0xff] }
 0x563   : > { %11741 = vmatmul.mubr.f32.gmra.mrb[16].mxu1 %v15952_v44  ;;  %v5671_v44 = vld [vmem:[#allocation2 + $0x2] sm:$0xff] }
 0x564   : > { %11743 = vmatprep.mubr.f32.mxu1 %v15968_v38  ;;  %v6142_v38 = vld [vmem:[#allocation8 + $0x1a0] sm:$0xff] }
 0x567   : > { %11744 = vmatmul.mubr.f32.gmra.mrb[18].mxu1 %v15962_v35  ;;  %v5672_v35 = vld [vmem:[#allocation2 + $0xa] sm:$0xff] }
 0x568   : > { %11746 = vmatprep.mubr.f32.mxu1 %v15980_v13  ;;  %v5673_v13 = vld [vmem:[#allocation2 + $0x12] sm:$0xff] }
 0x56b   : > { %11747 = vmatmul.mubr.f32.gmra.mrb[20].mxu1 %v15976_v19  ;;  %v6143_v19 = vld [vmem:[#allocation8 + $0x1a8] sm:$0xff] }
 0x56c   : > { %11749 = vmatprep.mubr.f32.mxu1 %v15996_v48  ;;  %v16182_v48 = vld [vmem:[#allocation2 + $0x1a] sm:$0xff] }
 0x56f   : > { %11750 = vmatmul.mubr.f32.gmra.mrb[22].mxu1 %v15992_v29  ;;  %v13012_v29 = vpack.c.bf16 %v6143_v19, %v6142_v38  ;;  %v16272_v38 = vld [vmem:[#allocation2 + $0x102] sm:$0xff]  ;;  %v16275_v19 = vld [vmem:[#allocation2 + $0x10a] sm:$0xff] }
 0x570   : > { %11752 = vmatprep.mubr.f32.mxu1 %v16009_v58  ;;  %v6145_v58 = vld [vmem:[#allocation8 + $0x1b8] sm:$0xff] }
 0x573   : > { %11753 = vmatmul.mubr.f32.gmra.mrb[24].mxu1 %v16003_v12  ;;  %v6144_v12 = vld [vmem:[#allocation8 + $0x1b0] sm:$0xff] }
 0x574   : > { %11755 = vmatprep.mubr.f32.mxu1 %v16021_v5  ;;  %v13016_v5 = vpack.c.bf16 %v6145_v58, %v6144_v12  ;;  %v16284_v12 = vld [vmem:[#allocation2 + $0x122] sm:$0xff]  ;;  %v16287_v58 = vld [vmem:[#allocation2 + $0x12a] sm:$0xff] }
 0x577   : > { %11756 = vmatmul.mubr.f32.gmra.mrb[26].mxu1 %v16017_v0  ;;  %v16185_v0 = vld [vmem:[#allocation2 + $0x22] sm:$0xff] }
 0x578   : > { %11758 = vmatprep.mubr.f32.mxu1 %v16035_v2  ;;  %v6146_v2 = vld [vmem:[#allocation8 + $0x1c0] sm:$0xff] }
 0x57b   : > { %11759 = vmatmul.mubr.f32.gmra.mrb[28].mxu1 %v16031_v30  ;;  %v16188_v30 = vld [vmem:[#allocation2 + $0x2a] sm:$0xff] }
 0x57c   : > { %11761 = vmatprep.mubr.f32.mxu1 %v16045_v54  ;;  %v16191_v54 = vld [vmem:[#allocation2 + $0x32] sm:$0xff] }
 0x57f   : > { %11762 = vmatmul.mubr.f32.gmra.mrb[30].mxu1 %v16041_v20  ;;  %v6147_v20 = vld [vmem:[#allocation8 + $0x1c8] sm:$0xff] }
 0x580   : > { %11764 = vmatprep.mubr.f32.mxu1 %v16055_v11  ;;  %v16194_v11 = vld [vmem:[#allocation2 + $0x3a] sm:$0xff] }
 0x583   : > { %11765 = vmatmul.mubr.f32.gmra.mrb[32].mxu1 %v16051_v49  ;;  %v13020_v49 = vpack.c.bf16 %v6147_v20, %v6146_v2  ;;  %v16293_v2 = vld [vmem:[#allocation2 + $0x13a] sm:$0xff]  ;;  %v16296_v20 = vld [vmem:[#allocation2 + $0x142] sm:$0xff] }
 0x584   : > { %11767 = vmatprep.mubr.f32.mxu1 %v16065_v36  ;;  %17236 = vst [vmem:[#allocation19_spill] sm:$0xff] %v16296_v20 }
 0x587   : > { %11768 = vmatmul.mubr.f32.gmra.mrb[34].mxu1 %v16061_v33  ;;  %v6148_v33 = vld [vmem:[#allocation8 + $0x1d0] sm:$0xff] }
 0x588   : > { %11770 = vmatprep.mubr.f32.mxu1 %v16075_v22 }
 0x58b   : > { %11771 = vmatmul.mubr.f32.gmra.mrb[36].mxu1 %v16071_v14  ;;  %v6149_v14 = vld [vmem:[#allocation8 + $0x1d8] sm:$0xff] }
 0x58c   : > { %11773 = vmatprep.mubr.f32.mxu1 %v16083_v43  ;;  %v13024_v59 = vpack.c.bf16 %v6149_v14, %v6148_v33  ;;  %v16302_v33 = vld [vmem:[#allocation2 + $0x152] sm:$0xff]  ;;  %v16305_v14 = vld [vmem:[#allocation2 + $0x15a] sm:$0xff] }
 0x58d   : > { %17238 = vst [vmem:[#allocation21_spill] sm:$0xff] %v16302_v33  ;;  %17239 = vst [vmem:[#allocation22_spill] sm:$0xff] %v16305_v14 }
 0x58f   : > { %11774 = vmatmul.mubr.f32.gmra.mrb[38].mxu1 %v16080_v57 }
 0x590   : > { %11776 = vmatprep.mubr.f32.mxu1 %v16091_v27 }
 0x593   : > { %11777 = vmatmul.mubr.f32.gmra.mrb[40].mxu1 %v16088_v18 }
 0x594   : > { %11779 = vmatprep.mubr.f32.mxu1 %v16099_v55 }
 0x597   : > { %11780 = vmatmul.mubr.f32.gmra.mrb[42].mxu1 %v17232_v37 }
 0x598   : > { %11782 = vmatprep.mubr.f32.mxu1 %v16107_v10 }
 0x59b   : > { %11783 = vmatmul.mubr.f32.gmra.mrb[44].mxu1 %v17233_v24 }
 0x59c   : > { %11785 = vmatprep.mubr.f32.mxu1 %v17234_v31 }
 0x59f   : > { %11786 = vmatmul.mubr.f32.gmra.mrb[46].mxu1 %v17235_v62 }
 0x5a0   : > { %11820 = vmatprep.mubr.f32.mxu1 %v5671_v44  ;;  %v16263_v44 = vld [vmem:[#allocation2 + $0xea] sm:$0xff] }
 0x5a3   : > { %11821 = vmatmul.mubr.f32.vlgmr.msra.gmra.mrb[0].mxu1 %v5672_v35  ;;  %v16269_v35 = vld [vmem:[#allocation2 + $0xfa] sm:$0xff] }
 0x5a4   : > { %11823 = vmatprep.mubr.f32.mxu1 %v5673_v13  ;;  %13007 = vmatpush3.bf16.msra.mxu1 %v13004_v34  ;;  %v16254_v34 = vld [vmem:[#allocation2 + $0xd2] sm:$0xff] }
 0x5a5   : > { %13009 = vmatprep.subr.bf16.mxu1 %v13008_v28  ;;  %v16278_v13 = vld [vmem:[#allocation2 + $0x112] sm:$0xff] }
 0x5a7   : > { %11824 = vmatmul.mubr.f32.gmra.mrb[2].mxu1 %v16182_v48 }
 0x5a8   : > { %11826 = vmatprep.mubr.f32.mxu1 %v16185_v0  ;;  %13011 = vmatpush3.bf16.msra.mxu1 %v13008_v28  ;;  %v16266_v28 = vld [vmem:[#allocation2 + $0xf2] sm:$0xff] }
 0x5a9   : > { %13013 = vmatprep.subr.bf16.mxu1 %v13012_v29 }
 0x5ab   : > { %11827 = vmatmul.mubr.f32.gmra.mrb[4].mxu1 %v16188_v30 }
 0x5ac   : > { %11829 = vmatprep.mubr.f32.mxu1 %v16191_v54  ;;  %13015 = vmatpush3.bf16.msra.mxu1 %v13012_v29  ;;  %v16281_v29 = vld [vmem:[#allocation2 + $0x11a] sm:$0xff] }
 0x5ad   : > { %13017 = vmatprep.subr.bf16.mxu1 %v13016_v5 }
 0x5af   : > { %11830 = vmatmul.mubr.f32.gmra.mrb[6].mxu1 %v16194_v11 }
 0x5b0   : > { %11832 = vmatprep.mubr.f32.mxu1 %v16197_v41  ;;  %13019 = vmatpush3.bf16.msra.mxu1 %v13016_v5  ;;  %v16290_v5 = vld [vmem:[#allocation2 + $0x132] sm:$0xff] }
 0x5b1   : > { %13021 = vmatprep.subr.bf16.mxu1 %v13020_v49 }
 0x5b3   : > { %11833 = vmatmul.mubr.f32.gmra.mrb[8].mxu1 %v16200_v39 }
 0x5b4   : > { %11835 = vmatprep.mubr.f32.mxu1 %v16203_v15  ;;  %13023 = vmatpush3.bf16.msra.mxu1 %v13020_v49  ;;  %v16299_v49 = vld [vmem:[#allocation2 + $0x14a] sm:$0xff] }
 0x5b5   : > { %13025 = vmatprep.subr.bf16.mxu1 %v13024_v59  ;;  %17237 = vst [vmem:[#allocation20_spill] sm:$0xff] %v16299_v49 }
 0x5b7   : > { %11836 = vmatmul.mubr.f32.gmra.mrb[10].mxu1 %v16206_v8 }
 0x5b8   : > { %11838 = vmatprep.mubr.f32.mxu1 %v16209_v40  ;;  %13027 = vmatpush3.bf16.msra.mxu1 %v13024_v59  ;;  %v16308_v59 = vld [vmem:[#allocation2 + $0x162] sm:$0xff] }
 0x5b9   : > { %13029 = vmatprep.subr.bf16.mxu1 %v13028_v7  ;;  %17240 = vst [vmem:[#allocation23_spill] sm:$0xff] %v16308_v59 }
 0x5bb   : > { %11839 = vmatmul.mubr.f32.gmra.mrb[12].mxu1 %v16212_v47 }
 0x5bc   : > { %11841 = vmatprep.mubr.f32.mxu1 %v16215_v52  ;;  %13031 = vmatpush3.bf16.msra.mxu1 %v13028_v7  ;;  %v16317_v7 = vld [vmem:[#allocation2 + $0x17a] sm:$0xff] }
 0x5bd   : > { %13033 = vmatprep.subr.bf16.mxu1 %v13032_v53  ;;  %17243 = vst [vmem:[#allocation26_spill] sm:$0xff] %v16317_v7 }
 0x5bf   : > { %11842 = vmatmul.mubr.f32.gmra.mrb[14].mxu1 %v16220_v25 }
 0x5c0   : > { %11844 = vmatprep.mubr.f32.mxu1 %v16223_v3  ;;  %13035 = vmatpush3.bf16.msra.mxu1 %v13032_v53  ;;  %v6089_v53 = vld [vmem:[#allocation2 + $0x18] sm:$0xff] }
 0x5c1   : > { %13037 = vmatprep.subr.bf16.mxu1 %v16218_v1 }
 0x5c3   : > { %11845 = vmatmul.mubr.f32.gmra.mrb[16].mxu1 %v16227_v23 }
 0x5c4   : > { %11847 = vmatprep.mubr.f32.mxu1 %v16230_v26 }
 0x5c7   : > { %11848 = vmatmul.mubr.f32.gmra.mrb[18].mxu1 %v16233_v4 }
 0x5c8   : > { %11850 = vmatprep.mubr.f32.mxu1 %v16236_v32 }
 0x5cb   : > { %11851 = vmatmul.mubr.f32.gmra.mrb[20].mxu1 %v16239_v17 }
 0x5cc   : > { %11853 = vmatprep.mubr.f32.mxu1 %v16242_v45 }
 0x5cf   : > { %11854 = vmatmul.mubr.f32.gmra.mrb[22].mxu1 %v16245_v42 }
 0x5d0   : > { %11856 = vmatprep.mubr.f32.mxu1 %v16248_v60 }
 0x5d3   : > { %11857 = vmatmul.mubr.f32.gmra.mrb[24].mxu1 %v16251_v9 }
 0x5d4   : > { %11859 = vmatprep.mubr.f32.mxu1 %v16254_v34 }
 0x5d7   : > { %11860 = vmatmul.mubr.f32.gmra.mrb[26].mxu1 %v16257_v56 }
 0x5d8   : > { %11862 = vmatprep.mubr.f32.mxu1 %v16260_v61 }
 0x5db   : > { %11863 = vmatmul.mubr.f32.gmra.mrb[28].mxu1 %v16263_v44 }
 0x5dc   : > { %11865 = vmatprep.mubr.f32.mxu1 %v16266_v28 }
 0x5df   : > { %11866 = vmatmul.mubr.f32.gmra.mrb[30].mxu1 %v16269_v35 }
 0x5e0   : > { %11868 = vmatprep.mubr.f32.mxu1 %v16272_v38 }
 0x5e3   : > { %11869 = vmatmul.mubr.f32.gmra.mrb[32].mxu1 %v16275_v19 }
 0x5e4   : > { %11871 = vmatprep.mubr.f32.mxu1 %v16278_v13 }
 0x5e7   : > { %11872 = vmatmul.mubr.f32.gmra.mrb[34].mxu1 %v16281_v29 }
 0x5e8   : > { %11874 = vmatprep.mubr.f32.mxu1 %v16284_v12 }
 0x5eb   : > { %11875 = vmatmul.mubr.f32.gmra.mrb[36].mxu1 %v16287_v58 }
 0x5ec   : > { %11877 = vmatprep.mubr.f32.mxu1 %v16290_v5 }
 0x5ef   : > { %11878 = vmatmul.mubr.f32.gmra.mrb[38].mxu1 %v16293_v2 }
 0x5f0   : > { %11880 = vmatprep.mubr.f32.mxu1 %v16296_v20  ;;  %v6563_v20 = vld [vmem:[#allocation8 + $0x238] sm:$0xff] }
 0x5f3   : > { %11881 = vmatmul.mubr.f32.gmra.mrb[40].mxu1 %v16299_v49  ;;  %v6562_v49 = vld [vmem:[#allocation8 + $0x230] sm:$0xff] }
 0x5f4   : > { %11883 = vmatprep.mubr.f32.mxu1 %v16302_v33  ;;  %v6091_v33 = vld [vmem:[#allocation2 + $0x28] sm:$0xff]  ;;  %v13048_v6 = vpack.c.bf16 %v6563_v20, %v6562_v49  ;;  %v16336_v20 = vld [vmem:[#allocation2 + $0x58] sm:$0xff] }
 0x5f5   : > { %17248 = vst [vmem:[#allocation31_spill] sm:$0xff] %v16336_v20 }
 0x5f7   : > { %11884 = vmatmul.mubr.f32.gmra.mrb[42].mxu1 %v16305_v14  ;;  %v6560_v14 = vld [vmem:[#allocation8 + $0x220] sm:$0xff] }
 0x5f8   : > { %11886 = vmatprep.mubr.f32.mxu1 %v16308_v59  ;;  %v6561_v59 = vld [vmem:[#allocation8 + $0x228] sm:$0xff] }
 0x5fb   : > { %11887 = vmatmul.mubr.f32.gmra.mrb[44].mxu1 %v16311_v63  ;;  %v13044_v63 = vpack.c.bf16 %v6561_v59, %v6560_v14  ;;  %v16333_v59 = vld [vmem:[#allocation2 + $0x50] sm:$0xff] }
 0x5fc   : > { %11889 = vmatprep.mubr.f32.mxu1 %v16314_v21  ;;  %v16321_v21 = vld [vmem:[#allocation2 + $0x30] sm:$0xff]  ;;  %17247 = vst [vmem:[#allocation30_spill] sm:$0xff] %v16333_v59 }
 0x5ff   : > { %11890 = vmatmul.mubr.f32.gmra.mrb[46].mxu1 %v16317_v7  ;;  %v16324_v7 = vld [vmem:[#allocation2 + $0x38] sm:$0xff] }
 0x600   : > { %11924 = vmatprep.mubr.f32.mxu1 %v6089_v53  ;;  %17244 = vst [vmem:[#allocation27_spill] sm:$0xff] %v16324_v7  ;;  %v6565_v53 = vld [vmem:[#allocation8 + $0x248] sm:$0xff] }
 0x603   : > { %11925 = vmatmul.mubr.f32.vlgmr.msra.gmra.mrb[0].mxu1 %v6090_v51  ;;  %v6566_v51 = vld [vmem:[#allocation8 + $0x250] sm:$0xff] }
 0x604   : > { %11927 = vmatprep.mubr.f32.mxu1 %v6091_v33  ;;  %13039 = vmatpush3.bf16.msra.mxu1 %v16218_v1  ;;  %v6564_v33 = vld [vmem:[#allocation8 + $0x240] sm:$0xff] }
 0x605   : > { %13041 = vmatprep.subr.bf16.mxu1 %v13040_v16  ;;  %v16330_v1 = vld [vmem:[#allocation2 + $0x48] sm:$0xff]  ;;  %v13052_v14 = vpack.c.bf16 %v6565_v53, %v6564_v33  ;;  %v16345_v53 = vld [vmem:[#allocation2 + $0x70] sm:$0xff] }
 0x606   : > { %17246 = vst [vmem:[#allocation29_spill] sm:$0xff] %v16330_v1 }
 0x607   : > { %11928 = vmatmul.mubr.f32.gmra.mrb[2].mxu1 %v16321_v21 }
 0x608   : > { %11930 = vmatprep.mubr.f32.mxu1 %v16324_v7  ;;  %13043 = vmatpush3.bf16.msra.mxu1 %v13040_v16  ;;  %v6567_v7 = vld [vmem:[#allocation8 + $0x258] sm:$0xff] }
 0x609   : > { %13045 = vmatprep.subr.bf16.mxu1 %v13044_v63  ;;  %v13056_v49 = vpack.c.bf16 %v6567_v7, %v6566_v51  ;;  %v16339_v16 = vld [vmem:[#allocation2 + $0x60] sm:$0xff]  ;;  %v16348_v7 = vld [vmem:[#allocation2 + $0x78] sm:$0xff] }
 0x60a   : > { %17249 = vst [vmem:[#allocation32_spill] sm:$0xff] %v16339_v16  ;;  %v16351_v51 = vld [vmem:[#allocation2 + $0x80] sm:$0xff] }
 0x60b   : > { %11931 = vmatmul.mubr.f32.gmra.mrb[4].mxu1 %v16327_v50  ;;  %v6568_v50 = vld [vmem:[#allocation8 + $0x260] sm:$0xff] }
 0x60c   : > { %11933 = vmatprep.mubr.f32.mxu1 %v16330_v1  ;;  %13047 = vmatpush3.bf16.msra.mxu1 %v13044_v63  ;;  %v6569_v1 = vld [vmem:[#allocation8 + $0x268] sm:$0xff]  ;;  %v16342_v63 = vld [vmem:[#allocation2 + $0x68] sm:$0xff] }
 0x60d   : > { %13049 = vmatprep.subr.bf16.mxu1 %v13048_v6  ;;  %17250 = vst [vmem:[#allocation33_spill] sm:$0xff] %v16342_v63  ;;  %v13060_v33 = vpack.c.bf16 %v6569_v1, %v6568_v50  ;;  %v16354_v50 = vld [vmem:[#allocation2 + $0x88] sm:$0xff] }
 0x60f   : > { %11934 = vmatmul.mubr.f32.gmra.mrb[6].mxu1 %v16333_v59  ;;  %v6570_v59 = vld [vmem:[#allocation8 + $0x270] sm:$0xff] }
 0x610   : > { %11936 = vmatprep.mubr.f32.mxu1 %v16336_v20  ;;  %13051 = vmatpush3.bf16.msra.mxu1 %v13048_v6  ;;  %v6571_v20 = vld [vmem:[#allocation8 + $0x278] sm:$0xff] }
 0x611   : > { %13053 = vmatprep.subr.bf16.mxu1 %v13052_v14  ;;  %v13064_v6 = vpack.c.bf16 %v6571_v20, %v6570_v59  ;;  %v16366_v59 = vld [vmem:[#allocation2 + $0xa0] sm:$0xff]  ;;  %v16369_v20 = vld [vmem:[#allocation2 + $0xa8] sm:$0xff] }
 0x612   : > { %17251 = vst [vmem:[#allocation34_spill] sm:$0xff] %v16366_v59  ;;  %17252 = vst [vmem:[#allocation35_spill] sm:$0xff] %v16369_v20 }
 0x613   : > { %11937 = vmatmul.mubr.f32.gmra.mrb[8].mxu1 %v16339_v16  ;;  %v6974_v16 = vld [vmem:[#allocation8 + $0x280] sm:$0xff] }
 0x614   : > { %11939 = vmatprep.mubr.f32.mxu1 %v16342_v63  ;;  %13055 = vmatpush3.bf16.msra.mxu1 %v13052_v14  ;;  %v6975_v63 = vld [vmem:[#allocation8 + $0x288] sm:$0xff] }
 0x615   : > { %13057 = vmatprep.subr.bf16.mxu1 %v13056_v49  ;;  %v16357_v1 = vpack.c.bf16 %v6975_v63, %v6974_v16  ;;  %v16359_v14 = vld [vmem:[#allocation2 + $0x90] sm:$0xff]  ;;  %v16375_v63 = vld [vmem:[#allocation2 + $0xb8] sm:$0xff] }
 0x616   : > { %v16372_v16 = vld [vmem:[#allocation2 + $0xb0] sm:$0xff]  ;;  %17254 = vst [vmem:[#allocation37_spill] sm:$0xff] %v16375_v63 }
 0x617   : > { %11940 = vmatmul.mubr.f32.gmra.mrb[10].mxu1 %v16345_v53  ;;  %17253 = vst [vmem:[#allocation36_spill] sm:$0xff] %v16372_v16 }
 0x618   : > { %11942 = vmatprep.mubr.f32.mxu1 %v16348_v7  ;;  %13059 = vmatpush3.bf16.msra.mxu1 %v13056_v49  ;;  %v16362_v49 = vld [vmem:[#allocation2 + $0x98] sm:$0xff] }
 0x619   : > { %13061 = vmatprep.subr.bf16.mxu1 %v13060_v33 }
 0x61b   : > { %11943 = vmatmul.mubr.f32.gmra.mrb[12].mxu1 %v16351_v51 }
 0x61c   : > { %11945 = vmatprep.mubr.f32.mxu1 %v16354_v50  ;;  %13063 = vmatpush3.bf16.msra.mxu1 %v13060_v33  ;;  %v16378_v33 = vld [vmem:[#allocation2 + $0xc0] sm:$0xff] }
 0x61d   : > { %13065 = vmatprep.subr.bf16.mxu1 %v13064_v6  ;;  %17255 = vst [vmem:[#allocation38_spill] sm:$0xff] %v16378_v33 }
 0x61f   : > { %11946 = vmatmul.mubr.f32.gmra.mrb[14].mxu1 %v16359_v14 }
 0x620   : > { %11948 = vmatprep.mubr.f32.mxu1 %v16362_v49  ;;  %13067 = vmatpush3.bf16.msra.mxu1 %v13064_v6  ;;  %v16381_v6 = vld [vmem:[#allocation2 + $0xc8] sm:$0xff] }
 0x621   : > { %13069 = vmatprep.subr.bf16.mxu1 %v16357_v1  ;;  %17256 = vst [vmem:[#allocation39_spill] sm:$0xff] %v16381_v6 }
 0x623   : > { %11949 = vmatmul.mubr.f32.gmra.mrb[16].mxu1 %v16366_v59  ;;  %v16384_v59 = vld [vmem:[#allocation2 + $0xd0] sm:$0xff] }
 0x624   : > { %11951 = vmatprep.mubr.f32.mxu1 %v16369_v20  ;;  %17257 = vst [vmem:[#allocation40_spill] sm:$0xff] %v16384_v59  ;;  %v16387_v20 = vld [vmem:[#allocation2 + $0xd8] sm:$0xff] }
 0x625   : > { %17258 = vst [vmem:[#allocation41_spill] sm:$0xff] %v16387_v20 }
 0x627   : > { %11952 = vmatmul.mubr.f32.gmra.mrb[18].mxu1 %v16372_v16  ;;  %v16390_v16 = vld [vmem:[#allocation2 + $0xe0] sm:$0xff] }
 0x628   : > { %11954 = vmatprep.mubr.f32.mxu1 %v16375_v63  ;;  %17259 = vst [vmem:[#allocation42_spill] sm:$0xff] %v16390_v16  ;;  %v16393_v63 = vld [vmem:[#allocation2 + $0xe8] sm:$0xff] }
 0x62b   : > { %11955 = vmatmul.mubr.f32.gmra.mrb[20].mxu1 %v16378_v33  ;;  %v16396_v33 = vld [vmem:[#allocation2 + $0xf0] sm:$0xff] }
 0x62c   : > { %11957 = vmatprep.mubr.f32.mxu1 %v16381_v6  ;;  %17260 = vst [vmem:[#allocation43_spill] sm:$0xff] %v16396_v33  ;;  %v16399_v6 = vld [vmem:[#allocation2 + $0xf8] sm:$0xff] }
 0x62f   : > { %11958 = vmatmul.mubr.f32.gmra.mrb[22].mxu1 %v16384_v59  ;;  %v16402_v59 = vld [vmem:[#allocation2 + $0x100] sm:$0xff] }
 0x630   : > { %11960 = vmatprep.mubr.f32.mxu1 %v16387_v20  ;;  %v16405_v20 = vld [vmem:[#allocation2 + $0x108] sm:$0xff] }
 0x633   : > { %11961 = vmatmul.mubr.f32.gmra.mrb[24].mxu1 %v16390_v16  ;;  %v16409_v16 = vld [vmem:[#allocation2 + $0x118] sm:$0xff] }
 0x634   : > { %11963 = vmatprep.mubr.f32.mxu1 %v16393_v63 }
 0x637   : > { %11964 = vmatmul.mubr.f32.gmra.mrb[26].mxu1 %v16396_v33  ;;  %v16413_v33 = vld [vmem:[#allocation2 + $0x128] sm:$0xff] }
 0x638   : > { %11966 = vmatprep.mubr.f32.mxu1 %v16399_v6 }
 0x63b   : > { %11967 = vmatmul.mubr.f32.gmra.mrb[28].mxu1 %v16402_v59 }
 0x63c   : > { %11969 = vmatprep.mubr.f32.mxu1 %v16405_v20 }
 0x63f   : > { %11970 = vmatmul.mubr.f32.gmra.mrb[30].mxu1 %v16065_v36  ;;  %v17261_v36 = vld [vmem:[#allocation18_spill] sm:$0xff] }
 0x640   : > { %11972 = vmatprep.mubr.f32.mxu1 %v16409_v16 }
 0x643   : > { %11973 = vmatmul.mubr.f32.gmra.mrb[32].mxu1 %v16075_v22  ;;  %v17262_v22 = vld [vmem:[#allocation17_spill] sm:$0xff] }
 0x644   : > { %11975 = vmatprep.mubr.f32.mxu1 %v16413_v33 }
 0x647   : > { %11976 = vmatmul.mubr.f32.gmra.mrb[34].mxu1 %v16083_v43  ;;  %v6977_v43 = vld [vmem:[#allocation8 + $0x298] sm:$0xff] }
 0x648   : > { %11978 = vmatprep.mubr.f32.mxu1 %v16080_v57  ;;  %v6976_v57 = vld [vmem:[#allocation8 + $0x290] sm:$0xff] }
 0x64b   : > { %11979 = vmatmul.mubr.f32.gmra.mrb[36].mxu1 %v16091_v27  ;;  %v13072_v27 = vpack.c.bf16 %v6977_v43, %v6976_v57  ;;  %v16436_v43 = vld [vmem:[#allocation2 + $0x41] sm:$0xff] }
 0x64c   : > { %11981 = vmatprep.mubr.f32.mxu1 %v16088_v18  ;;  %v6507_v18 = vld [vmem:[#allocation2 + $0x19] sm:$0xff]  ;;  %17264 = vst [vmem:[#allocation45_spill] sm:$0xff] %v16436_v43 }
 0x64f   : > { %11982 = vmatmul.mubr.f32.gmra.mrb[38].mxu1 %v16099_v55  ;;  %v6508_v55 = vld [vmem:[#allocation2 + $0x21] sm:$0xff] }
 0x650   : > { %11984 = vmatprep.mubr.f32.mxu1 %v17232_v37  ;;  %v6978_v37 = vld [vmem:[#allocation8 + $0x2a0] sm:$0xff] }
 0x653   : > { %11985 = vmatmul.mubr.f32.gmra.mrb[40].mxu1 %v16107_v10  ;;  %v6979_v10 = vld [vmem:[#allocation8 + $0x2a8] sm:$0xff] }
 0x654   : > { %11987 = vmatprep.mubr.f32.mxu1 %v17233_v24  ;;  %v6509_v24 = vld [vmem:[#allocation2 + $0x29] sm:$0xff] }
 0x657   : > { %11988 = vmatmul.mubr.f32.gmra.mrb[42].mxu1 %v17234_v31  ;;  %v13076_v31 = vpack.c.bf16 %v6979_v10, %v6978_v37  ;;  %v16442_v10 = vld [vmem:[#allocation2 + $0x51] sm:$0xff] }
 0x658   : > { %11990 = vmatprep.mubr.f32.mxu1 %v17235_v62  ;;  %v16430_v62 = vld [vmem:[#allocation2 + $0x31] sm:$0xff]  ;;  %17266 = vst [vmem:[#allocation47_spill] sm:$0xff] %v16442_v10 }
 0x65b   : > { %11991 = vmatmul.mubr.f32.gmra.mrb[44].mxu1 %v17261_v36  ;;  %v6980_v36 = vld [vmem:[#allocation8 + $0x2b0] sm:$0xff] }
 0x65c   : > { %11993 = vmatprep.mubr.f32.mxu1 %v17262_v22  ;;  %v6981_v22 = vld [vmem:[#allocation8 + $0x2b8] sm:$0xff] }
 0x65d   : > { %v13080_v57 = vpack.c.bf16 %v6981_v22, %v6980_v36  ;;  %v16448_v22 = vld [vmem:[#allocation2 + $0x61] sm:$0xff] }
 0x65e   : > { %17268 = vst [vmem:[#allocation49_spill] sm:$0xff] %v16448_v22 }
 0x65f   : > { %11994 = vmatmul.mubr.f32.gmra.mrb[46].mxu1 %v16129_v46  ;;  %v16433_v46 = vld [vmem:[#allocation2 + $0x39] sm:$0xff] }
 0x660   : > { %12028 = vmatprep.mubr.f32.mxu1 %v6507_v18  ;;  %17263 = vst [vmem:[#allocation44_spill] sm:$0xff] %v16433_v46  ;;  %v6982_v18 = vld [vmem:[#allocation8 + $0x2c0] sm:$0xff] }
 0x663   : > { %12029 = vmatmul.mubr.f32.vlgmr.msra.gmra.mrb[0].mxu1 %v6508_v55  ;;  %v6983_v55 = vld [vmem:[#allocation8 + $0x2c8] sm:$0xff] }
 0x664   : > { %12031 = vmatprep.mubr.f32.mxu1 %v6509_v24  ;;  %13071 = vmatpush3.bf16.msra.mxu1 %v16357_v1  ;;  %v16439_v1 = vld [vmem:[#allocation2 + $0x49] sm:$0xff]  ;;  %v13084_v37 = vpack.c.bf16 %v6983_v55, %v6982_v18  ;;  %v6984_v24 = vld [vmem:[#allocation8 + $0x2d0] sm:$0xff] }
 0x665   : > { %13073 = vmatprep.subr.bf16.mxu1 %v13072_v27  ;;  %17265 = vst [vmem:[#allocation46_spill] sm:$0xff] %v16439_v1  ;;  %v16454_v55 = vld [vmem:[#allocation2 + $0x71] sm:$0xff] }
 0x667   : > { %12032 = vmatmul.mubr.f32.gmra.mrb[2].mxu1 %v16430_v62 }
 0x668   : > { %12034 = vmatprep.mubr.f32.mxu1 %v16433_v46  ;;  %13075 = vmatpush3.bf16.msra.mxu1 %v13072_v27  ;;  %v6985_v46 = vld [vmem:[#allocation8 + $0x2d8] sm:$0xff] }
 0x669   : > { %13077 = vmatprep.subr.bf16.mxu1 %v13076_v31  ;;  %v16445_v27 = vld [vmem:[#allocation2 + $0x59] sm:$0xff]  ;;  %v13088_v36 = vpack.c.bf16 %v6985_v46, %v6984_v24  ;;  %v16460_v24 = vld [vmem:[#allocation2 + $0x81] sm:$0xff] }
 0x66a   : > { %17267 = vst [vmem:[#allocation48_spill] sm:$0xff] %v16445_v27  ;;  %v16457_v46 = vld [vmem:[#allocation2 + $0x79] sm:$0xff] }
 0x66b   : > { %12035 = vmatmul.mubr.f32.gmra.mrb[4].mxu1 %v16436_v43  ;;  %v6986_v43 = vld [vmem:[#allocation8 + $0x2e0] sm:$0xff] }
 0x66c   : > { %12037 = vmatprep.mubr.f32.mxu1 %v16439_v1  ;;  %13079 = vmatpush3.bf16.msra.mxu1 %v13076_v31  ;;  %v6987_v1 = vld [vmem:[#allocation8 + $0x2e8] sm:$0xff] }
 0x66d   : > { %13081 = vmatprep.subr.bf16.mxu1 %v13080_v57  ;;  %v16451_v31 = vld [vmem:[#allocation2 + $0x69] sm:$0xff]  ;;  %v13092_v18 = vpack.c.bf16 %v6987_v1, %v6986_v43 }
 0x66e   : > { %17269 = vst [vmem:[#allocation50_spill] sm:$0xff] %v16451_v31  ;;  %v16463_v43 = vld [vmem:[#allocation2 + $0x89] sm:$0xff] }
 0x66f   : > { %12038 = vmatmul.mubr.f32.gmra.mrb[6].mxu1 %v16442_v10  ;;  %v6988_v10 = vld [vmem:[#allocation8 + $0x2f0] sm:$0xff]  ;;  %17270 = vst [vmem:[#allocation51_spill] sm:$0xff] %v16463_v43 }
 0x670   : > { %12040 = vmatprep.mubr.f32.mxu1 %v16445_v27  ;;  %13083 = vmatpush3.bf16.msra.mxu1 %v13080_v57  ;;  %v6989_v27 = vld [vmem:[#allocation8 + $0x2f8] sm:$0xff] }
 0x671   : > { %13085 = vmatprep.subr.bf16.mxu1 %v13084_v37  ;;  %v13096_v57 = vpack.c.bf16 %v6989_v27, %v6988_v10  ;;  %v16475_v10 = vld [vmem:[#allocation2 + $0xa1] sm:$0xff]  ;;  %v16478_v27 = vld [vmem:[#allocation2 + $0xa9] sm:$0xff] }
 0x672   : > { %17273 = vst [vmem:[#allocation54_spill] sm:$0xff] %v16475_v10  ;;  %17274 = vst [vmem:[#allocation55_spill] sm:$0xff] %v16478_v27 }
 0x673   : > { %12041 = vmatmul.mubr.f32.gmra.mrb[8].mxu1 %v16448_v22  ;;  %v7392_v22 = vld [vmem:[#allocation8 + $0x300] sm:$0xff] }
 0x674   : > { %12043 = vmatprep.mubr.f32.mxu1 %v16451_v31  ;;  %13087 = vmatpush3.bf16.msra.mxu1 %v13084_v37  ;;  %v7393_v31 = vld [vmem:[#allocation8 + $0x308] sm:$0xff] }
 0x675   : > { %13089 = vmatprep.subr.bf16.mxu1 %v13088_v36  ;;  %v16466_v1 = vpack.c.bf16 %v7393_v31, %v7392_v22  ;;  %v16468_v37 = vld [vmem:[#allocation2 + $0x91] sm:$0xff]  ;;  %v16484_v31 = vld [vmem:[#allocation2 + $0xb9] sm:$0xff] }
 0x676   : > { %17271 = vst [vmem:[#allocation52_spill] sm:$0xff] %v16468_v37  ;;  %v16481_v22 = vld [vmem:[#allocation2 + $0xb1] sm:$0xff]  ;;  %17276 = vst [vmem:[#allocation57_spill] sm:$0xff] %v16484_v31 }
 0x677   : > { %12044 = vmatmul.mubr.f32.gmra.mrb[10].mxu1 %v16454_v55  ;;  %17275 = vst [vmem:[#allocation56_spill] sm:$0xff] %v16481_v22 }
 0x678   : > { %12046 = vmatprep.mubr.f32.mxu1 %v16457_v46  ;;  %13091 = vmatpush3.bf16.msra.mxu1 %v13088_v36  ;;  %v16471_v36 = vld [vmem:[#allocation2 + $0x99] sm:$0xff] }
 0x679   : > { %13093 = vmatprep.subr.bf16.mxu1 %v13092_v18  ;;  %17272 = vst [vmem:[#allocation53_spill] sm:$0xff] %v16471_v36 }
 0x67b   : > { %12047 = vmatmul.mubr.f32.gmra.mrb[12].mxu1 %v16460_v24 }
 0x67c   : > { %12049 = vmatprep.mubr.f32.mxu1 %v16463_v43  ;;  %13095 = vmatpush3.bf16.msra.mxu1 %v13092_v18  ;;  %v16487_v18 = vld [vmem:[#allocation2 + $0xc1] sm:$0xff]  ;;  %v7397_v43 = vld [vmem:[#allocation8 + $0x328] sm:$0xff] }
 0x67d   : > { %13097 = vmatprep.subr.bf16.mxu1 %v13096_v57  ;;  %17277 = vst [vmem:[#allocation58_spill] sm:$0xff] %v16487_v18 }
 0x67f   : > { %12050 = vmatmul.mubr.f32.gmra.mrb[14].mxu1 %v16468_v37  ;;  %v7396_v37 = vld [vmem:[#allocation8 + $0x320] sm:$0xff] }
 0x680   : > { %12052 = vmatprep.mubr.f32.mxu1 %v16471_v36  ;;  %13099 = vmatpush3.bf16.msra.mxu1 %v13096_v57  ;;  %v16490_v57 = vld [vmem:[#allocation2 + $0xc9] sm:$0xff]  ;;  %v7394_v36 = vld [vmem:[#allocation8 + $0x310] sm:$0xff] }
 0x681   : > { %13101 = vmatprep.subr.bf16.mxu1 %v16466_v1  ;;  %17278 = vst [vmem:[#allocation59_spill] sm:$0xff] %v16490_v57 }
 0x683   : > { %12053 = vmatmul.mubr.f32.gmra.mrb[16].mxu1 %v16475_v10  ;;  %v16493_v10 = vld [vmem:[#allocation2 + $0xd1] sm:$0xff] }
 0x684   : > { %12055 = vmatprep.mubr.f32.mxu1 %v16478_v27  ;;  %17279 = vst [vmem:[#allocation60_spill] sm:$0xff] %v16493_v10  ;;  %v16496_v27 = vld [vmem:[#allocation2 + $0xd9] sm:$0xff] }
 0x685   : > { %17280 = vst [vmem:[#allocation61_spill] sm:$0xff] %v16496_v27 }
 0x687   : > { %12056 = vmatmul.mubr.f32.gmra.mrb[18].mxu1 %v16481_v22  ;;  %v16499_v22 = vld [vmem:[#allocation2 + $0xe1] sm:$0xff] }
 0x688   : > { %12058 = vmatprep.mubr.f32.mxu1 %v16484_v31  ;;  %17281 = vst [vmem:[#allocation62_spill] sm:$0xff] %v16499_v22  ;;  %v16502_v31 = vld [vmem:[#allocation2 + $0xe9] sm:$0xff] }
 0x689   : > { %17282 = vst [vmem:[#allocation63_spill] sm:$0xff] %v16502_v31 }
 0x68b   : > { %12059 = vmatmul.mubr.f32.gmra.mrb[20].mxu1 %v16487_v18  ;;  %v16505_v18 = vld [vmem:[#allocation2 + $0xf1] sm:$0xff] }
 0x68c   : > { %12061 = vmatprep.mubr.f32.mxu1 %v16490_v57  ;;  %17283 = vst [vmem:[#allocation64_spill] sm:$0xff] %v16505_v18  ;;  %v16508_v57 = vld [vmem:[#allocation2 + $0xf9] sm:$0xff] }
 0x68d   : > { %17284 = vst [vmem:[#allocation65_spill] sm:$0xff] %v16508_v57 }
 0x68f   : > { %12062 = vmatmul.mubr.f32.gmra.mrb[22].mxu1 %v16493_v10  ;;  %v16511_v10 = vld [vmem:[#allocation2 + $0x101] sm:$0xff] }
 0x690   : > { %12064 = vmatprep.mubr.f32.mxu1 %v16496_v27  ;;  %17285 = vst [vmem:[#allocation66_spill] sm:$0xff] %v16511_v10  ;;  %v16514_v27 = vld [vmem:[#allocation2 + $0x109] sm:$0xff] }
 0x691   : > { %17286 = vst [vmem:[#allocation67_spill] sm:$0xff] %v16514_v27 }
 0x693   : > { %12065 = vmatmul.mubr.f32.gmra.mrb[24].mxu1 %v16499_v22  ;;  %v16517_v22 = vld [vmem:[#allocation2 + $0x111] sm:$0xff] }
 0x694   : > { %12067 = vmatprep.mubr.f32.mxu1 %v16502_v31  ;;  %17287 = vst [vmem:[#allocation68_spill] sm:$0xff] %v16517_v22  ;;  %v16520_v31 = vld [vmem:[#allocation2 + $0x119] sm:$0xff] }
 0x695   : > { %17288 = vst [vmem:[#allocation13_spill] sm:$0xff] %v16520_v31 }
 0x697   : > { %12068 = vmatmul.mubr.f32.gmra.mrb[26].mxu1 %v16505_v18  ;;  %v16523_v18 = vld [vmem:[#allocation2 + $0x121] sm:$0xff] }
 0x698   : > { %12070 = vmatprep.mubr.f32.mxu1 %v16508_v57  ;;  %17289 = vst [vmem:[#allocation14_spill] sm:$0xff] %v16523_v18  ;;  %v16526_v57 = vld [vmem:[#allocation2 + $0x129] sm:$0xff] }
 0x699   : > { %17290 = vst [vmem:[#allocation16_spill] sm:$0xff] %v16526_v57 }
 0x69b   : > { %12071 = vmatmul.mubr.f32.gmra.mrb[28].mxu1 %v16511_v10  ;;  %v16529_v10 = vld [vmem:[#allocation2 + $0x131] sm:$0xff] }
 0x69c   : > { %12073 = vmatprep.mubr.f32.mxu1 %v16514_v27  ;;  %17291 = vst [vmem:[#allocation15_spill] sm:$0xff] %v16529_v10  ;;  %v16532_v27 = vld [vmem:[#allocation2 + $0x139] sm:$0xff] }
 0x69d   : > { %17292 = vst [vmem:[#allocation18_spill] sm:$0xff] %v16532_v27 }
 0x69f   : > { %12074 = vmatmul.mubr.f32.gmra.mrb[30].mxu1 %v16517_v22  ;;  %v16535_v22 = vld [vmem:[#allocation2 + $0x141] sm:$0xff] }
 0x6a0   : > { %12076 = vmatprep.mubr.f32.mxu1 %v16520_v31  ;;  %17293 = vst [vmem:[#allocation17_spill] sm:$0xff] %v16535_v22  ;;  %v16538_v31 = vld [vmem:[#allocation2 + $0x149] sm:$0xff] }
 0x6a1   : > { %17294 = vst [vmem:[#allocation69_spill] sm:$0xff] %v16538_v31 }
 0x6a3   : > { %12077 = vmatmul.mubr.f32.gmra.mrb[32].mxu1 %v16523_v18  ;;  %v16541_v18 = vld [vmem:[#allocation2 + $0x151] sm:$0xff] }
 0x6a4   : > { %12079 = vmatprep.mubr.f32.mxu1 %v16526_v57  ;;  %17295 = vst [vmem:[#allocation70_spill] sm:$0xff] %v16541_v18  ;;  %v16544_v57 = vld [vmem:[#allocation2 + $0x159] sm:$0xff] }
 0x6a5   : > { %17296 = vst [vmem:[#allocation71_spill] sm:$0xff] %v16544_v57 }
 0x6a7   : > { %12080 = vmatmul.mubr.f32.gmra.mrb[34].mxu1 %v16529_v10  ;;  %v16547_v10 = vld [vmem:[#allocation2 + $0x161] sm:$0xff] }
 0x6a8   : > { %12082 = vmatprep.mubr.f32.mxu1 %v16532_v27  ;;  %17297 = vst [vmem:[#allocation72_spill] sm:$0xff] %v16547_v10  ;;  %v16550_v27 = vld [vmem:[#allocation2 + $0x169] sm:$0xff] }
 0x6a9   : > { %17298 = vst [vmem:[#allocation73_spill] sm:$0xff] %v16550_v27 }
 0x6ab   : > { %12083 = vmatmul.mubr.f32.gmra.mrb[36].mxu1 %v16535_v22  ;;  %v16553_v22 = vld [vmem:[#allocation2 + $0x171] sm:$0xff] }
 0x6ac   : > { %12085 = vmatprep.mubr.f32.mxu1 %v16538_v31  ;;  %17299 = vst [vmem:[#allocation74_spill] sm:$0xff] %v16553_v22  ;;  %v16556_v31 = vld [vmem:[#allocation2 + $0x179] sm:$0xff] }
 0x6ad   : > { %17300 = vst [vmem:[#allocation75_spill] sm:$0xff] %v16556_v31 }
 0x6af   : > { %12086 = vmatmul.mubr.f32.gmra.mrb[38].mxu1 %v16541_v18  ;;  %v16559_v18 = vld [vmem:[#allocation2 + $0x181] sm:$0xff] }
 0x6b0   : > { %12088 = vmatprep.mubr.f32.mxu1 %v16544_v57  ;;  %17301 = vst [vmem:[#allocation76_spill] sm:$0xff] %v16559_v18  ;;  %v16562_v57 = vld [vmem:[#allocation2 + $0x189] sm:$0xff] }
 0x6b1   : > { %17302 = vst [vmem:[#allocation77_spill] sm:$0xff] %v16562_v57 }
 0x6b3   : > { %12089 = vmatmul.mubr.f32.gmra.mrb[40].mxu1 %v16547_v10  ;;  %v16565_v10 = vld [vmem:[#allocation2 + $0x191] sm:$0xff] }
 0x6b4   : > { %12091 = vmatprep.mubr.f32.mxu1 %v16550_v27  ;;  %v7395_v27 = vld [vmem:[#allocation8 + $0x318] sm:$0xff] }
 0x6b7   : > { %12092 = vmatmul.mubr.f32.gmra.mrb[42].mxu1 %v16553_v22  ;;  %v13104_v22 = vpack.c.bf16 %v7395_v27, %v7394_v36  ;;  %v7400_v36 = vld [vmem:[#allocation8 + $0x340] sm:$0xff]  ;;  %v7401_v27 = vld [vmem:[#allocation8 + $0x348] sm:$0xff] }
 0x6b8   : > { %12094 = vmatprep.mubr.f32.mxu1 %v16556_v31  ;;  %v7399_v31 = vld [vmem:[#allocation8 + $0x338] sm:$0xff] }
 0x6bb   : > { %12095 = vmatmul.mubr.f32.gmra.mrb[44].mxu1 %v16559_v18  ;;  %v13108_v18 = vpack.c.bf16 %v7397_v43, %v7396_v37  ;;  %v7403_v43 = vld [vmem:[#allocation8 + $0x358] sm:$0xff] }
 0x6bc   : > { %12097 = vmatprep.mubr.f32.mxu1 %v16562_v57  ;;  %v7398_v57 = vld [vmem:[#allocation8 + $0x330] sm:$0xff]  ;;  %v7407_v37 = vld [vmem:[#allocation8 + $0x378] sm:$0xff] }
 0x6bf   : > { %12098 = vmatmul.mubr.f32.gmra.mrb[46].mxu1 %v16565_v10 }
 0x6c0   : > { %12132 = vmatprep.mubr.f32.mxu1 %v16182_v48  ;;  %v13112_v48 = vpack.c.bf16 %v7399_v31, %v7398_v57  ;;  %v7821_v57 = vld [vmem:[#allocation8 + $0x3d8] sm:$0xff] }
 0x6c3   : > { %12133 = vmatmul.mubr.f32.vlgmr.msra.gmra.mrb[0].mxu1 %v16185_v0  ;;  %v13116_v0 = vpack.c.bf16 %v7401_v27, %v7400_v36  ;;  %v7822_v27 = vld [vmem:[#allocation8 + $0x3e0] sm:$0xff] }
 0x6c4   : > { %12135 = vmatprep.mubr.f32.mxu1 %v16188_v30  ;;  %13103 = vmatpush3.bf16.msra.mxu1 %v16466_v1  ;;  %v7402_v30 = vld [vmem:[#allocation8 + $0x350] sm:$0xff]  ;;  %v7405_v1 = vld [vmem:[#allocation8 + $0x368] sm:$0xff] }
 0x6c5   : > { %13105 = vmatprep.subr.bf16.mxu1 %v13104_v22 }
 0x6c7   : > { %12136 = vmatmul.mubr.f32.gmra.mrb[2].mxu1 %v16191_v54  ;;  %v13120_v54 = vpack.c.bf16 %v7403_v43, %v7402_v30  ;;  %v7824_v43 = vld [vmem:[#allocation8 + $0x3f0] sm:$0xff] }
 0x6c8   : > { %12138 = vmatprep.mubr.f32.mxu1 %v16194_v11  ;;  %13107 = vmatpush3.bf16.msra.mxu1 %v13104_v22  ;;  %v7404_v11 = vld [vmem:[#allocation8 + $0x360] sm:$0xff]  ;;  %v7811_v22 = vld [vmem:[#allocation8 + $0x388] sm:$0xff] }
 0x6c9   : > { %13109 = vmatprep.subr.bf16.mxu1 %v13108_v18 }
 0x6cb   : > { %12139 = vmatmul.mubr.f32.gmra.mrb[4].mxu1 %v16197_v41  ;;  %v13124_v41 = vpack.c.bf16 %v7405_v1, %v7404_v11  ;;  %v8228_v11 = vld [vmem:[#allocation8 + $0x400] sm:$0xff]  ;;  %v8229_v1 = vld [vmem:[#allocation8 + $0x408] sm:$0xff] }
 0x6cc   : > { %12141 = vmatprep.mubr.f32.mxu1 %v16200_v39  ;;  %13111 = vmatpush3.bf16.msra.mxu1 %v13108_v18  ;;  %v7406_v39 = vld [vmem:[#allocation8 + $0x370] sm:$0xff] }
 0x6cd   : > { %13113 = vmatprep.subr.bf16.mxu1 %v13112_v48  ;;  %v7820_v18 = vld [vmem:[#allocation8 + $0x3d0] sm:$0xff] }
 0x6ce   : > { %v13152_v36 = vpack.c.bf16 %v7821_v57, %v7820_v18  ;;  %v17333_v18 = vld [vmem:[#allocation49_spill] sm:$0xff] }
 0x6cf   : > { %12142 = vmatmul.mubr.f32.gmra.mrb[6].mxu1 %v16203_v15  ;;  %v13128_v15 = vpack.c.bf16 %v7407_v37, %v7406_v39  ;;  %v17320_v39 = vld [vmem:[#allocation36_spill] sm:$0xff]  ;;  %v17323_v37 = vld [vmem:[#allocation39_spill] sm:$0xff] }
 0x6d0   : > { %12144 = vmatprep.mubr.f32.mxu1 %v16206_v8  ;;  %13115 = vmatpush3.bf16.msra.mxu1 %v13112_v48  ;;  %v7810_v8 = vld [vmem:[#allocation8 + $0x380] sm:$0xff] }
 0x6d1   : > { %13117 = vmatprep.subr.bf16.mxu1 %v13116_v0  ;;  %v17317_v48 = vld [vmem:[#allocation33_spill] sm:$0xff] }
 0x6d3   : > { %12145 = vmatmul.mubr.f32.gmra.mrb[8].mxu1 %v16209_v40  ;;  %v13132_v40 = vpack.c.bf16 %v7811_v22, %v7810_v8  ;;  %v17326_v8 = vld [vmem:[#allocation42_spill] sm:$0xff]  ;;  %v17327_v22 = vld [vmem:[#allocation43_spill] sm:$0xff] }
 0x6d4   : > { %12147 = vmatprep.mubr.f32.mxu1 %v16212_v47  ;;  %13119 = vmatpush3.bf16.msra.mxu1 %v13116_v0  ;;  %v17303_v47 = vld [vmem:[#allocation19_spill] sm:$0xff]  ;;  %v7823_v0 = vld [vmem:[#allocation8 + $0x3e8] sm:$0xff] }
 0x6d5   : > { %13121 = vmatprep.subr.bf16.mxu1 %v13120_v54  ;;  %v13156_v30 = vpack.c.bf16 %v7823_v0, %v7822_v27  ;;  %v17334_v27 = vld [vmem:[#allocation50_spill] sm:$0xff] }
 0x6d7   : > { %12148 = vmatmul.mubr.f32.gmra.mrb[10].mxu1 %v16215_v52  ;;  %v17304_v52 = vld [vmem:[#allocation20_spill] sm:$0xff] }
 0x6d8   : > { %12150 = vmatprep.mubr.f32.mxu1 %v16220_v25  ;;  %13123 = vmatpush3.bf16.msra.mxu1 %v13120_v54  ;;  %v17305_v25 = vld [vmem:[#allocation21_spill] sm:$0xff]  ;;  %v7825_v54 = vld [vmem:[#allocation8 + $0x3f8] sm:$0xff] }
 0x6d9   : > { %13125 = vmatprep.subr.bf16.mxu1 %v13124_v41 }
 0x6db   : > { %12151 = vmatmul.mubr.f32.gmra.mrb[12].mxu1 %v16223_v3  ;;  %v17306_v3 = vld [vmem:[#allocation22_spill] sm:$0xff] }
 0x6dc   : > { %12153 = vmatprep.mubr.f32.mxu1 %v16227_v23  ;;  %13127 = vmatpush3.bf16.msra.mxu1 %v13124_v41  ;;  %v17307_v23 = vld [vmem:[#allocation23_spill] sm:$0xff]  ;;  %v17318_v41 = vld [vmem:[#allocation34_spill] sm:$0xff] }
 0x6dd   : > { %13129 = vmatprep.subr.bf16.mxu1 %v13128_v15 }
 0x6df   : > { %12154 = vmatmul.mubr.f32.gmra.mrb[14].mxu1 %v16230_v26  ;;  %v17308_v26 = vld [vmem:[#allocation24_spill] sm:$0xff] }
 0x6e0   : > { %12156 = vmatprep.mubr.f32.mxu1 %v16233_v4  ;;  %13131 = vmatpush3.bf16.msra.mxu1 %v13128_v15  ;;  %v17309_v4 = vld [vmem:[#allocation25_spill] sm:$0xff]  ;;  %v17324_v15 = vld [vmem:[#allocation40_spill] sm:$0xff] }
 0x6e1   : > { %13133 = vmatprep.subr.bf16.mxu1 %v13132_v40 }
 0x6e3   : > { %12157 = vmatmul.mubr.f32.gmra.mrb[16].mxu1 %v16236_v32  ;;  %v17310_v32 = vld [vmem:[#allocation26_spill] sm:$0xff] }
 0x6e4   : > { %12159 = vmatprep.mubr.f32.mxu1 %v16239_v17  ;;  %v16614_v17 = vld [vmem:[#allocation2 + $0x182] sm:$0xff] }
 0x6e7   : > { %12160 = vmatmul.mubr.f32.gmra.mrb[18].mxu1 %v16242_v45  ;;  %v16617_v45 = vld [vmem:[#allocation2 + $0x18a] sm:$0xff] }
 0x6e8   : > { %12162 = vmatprep.mubr.f32.mxu1 %v16245_v42  ;;  %v16620_v42 = vld [vmem:[#allocation2 + $0x192] sm:$0xff] }
 0x6eb   : > { %12163 = vmatmul.mubr.f32.gmra.mrb[20].mxu1 %v16248_v60  ;;  %v7812_v60 = vld [vmem:[#allocation8 + $0x390] sm:$0xff] }
 0x6ec   : > { %12165 = vmatprep.mubr.f32.mxu1 %v16251_v9  ;;  %v7813_v9 = vld [vmem:[#allocation8 + $0x398] sm:$0xff] }
 0x6ef   : > { %12166 = vmatmul.mubr.f32.gmra.mrb[22].mxu1 %v16254_v34  ;;  %v13136_v34 = vpack.c.bf16 %v7813_v9, %v7812_v60  ;;  %v7388_v60 = vld [vmem:[#allocation2 + $0x198] sm:$0xff]  ;;  %v7389_v9 = vld [vmem:[#allocation2 + $0x1a0] sm:$0xff] }
 0x6f0   : > { %12168 = vmatprep.mubr.f32.mxu1 %v16257_v56  ;;  %v7814_v56 = vld [vmem:[#allocation8 + $0x3a0] sm:$0xff] }
 0x6f3   : > { %12169 = vmatmul.mubr.f32.gmra.mrb[24].mxu1 %v16260_v61  ;;  %v7815_v61 = vld [vmem:[#allocation8 + $0x3a8] sm:$0xff] }
 0x6f4   : > { %12171 = vmatprep.mubr.f32.mxu1 %v16263_v44  ;;  %v17311_v44 = vld [vmem:[#allocation27_spill] sm:$0xff] }
 0x6f7   : > { %12172 = vmatmul.mubr.f32.gmra.mrb[26].mxu1 %v16266_v28  ;;  %v17312_v28 = vld [vmem:[#allocation28_spill] sm:$0xff] }
 0x6f8   : > { %12174 = vmatprep.mubr.f32.mxu1 %v16269_v35  ;;  %v13140_v35 = vpack.c.bf16 %v7815_v61, %v7814_v56  ;;  %v8230_v56 = vld [vmem:[#allocation8 + $0x410] sm:$0xff]  ;;  %v8231_v61 = vld [vmem:[#allocation8 + $0x418] sm:$0xff] }
 0x6fb   : > { %12175 = vmatmul.mubr.f32.gmra.mrb[28].mxu1 %v16272_v38  ;;  %v7816_v38 = vld [vmem:[#allocation8 + $0x3b0] sm:$0xff] }
 0x6fc   : > { %12177 = vmatprep.mubr.f32.mxu1 %v16275_v19  ;;  %v7817_v19 = vld [vmem:[#allocation8 + $0x3b8] sm:$0xff] }
 0x6ff   : > { %12178 = vmatmul.mubr.f32.gmra.mrb[30].mxu1 %v16278_v13  ;;  %v17313_v13 = vld [vmem:[#allocation29_spill] sm:$0xff] }
 0x700   : > { %12180 = vmatprep.mubr.f32.mxu1 %v16281_v29  ;;  %v17314_v29 = vld [vmem:[#allocation30_spill] sm:$0xff] }
 0x703   : > { %12181 = vmatmul.mubr.f32.gmra.mrb[32].mxu1 %v16284_v12  ;;  %v13144_v12 = vpack.c.bf16 %v7817_v19, %v7816_v38  ;;  %v17328_v38 = vld [vmem:[#allocation44_spill] sm:$0xff]  ;;  %v17329_v19 = vld [vmem:[#allocation45_spill] sm:$0xff] }
 0x704   : > { %12183 = vmatprep.mubr.f32.mxu1 %v16287_v58  ;;  %v7818_v58 = vld [vmem:[#allocation8 + $0x3c0] sm:$0xff] }
 0x707   : > { %12184 = vmatmul.mubr.f32.gmra.mrb[34].mxu1 %v16290_v5  ;;  %v7819_v5 = vld [vmem:[#allocation8 + $0x3c8] sm:$0xff] }
 0x708   : > { %12186 = vmatprep.mubr.f32.mxu1 %v16293_v2  ;;  %v17315_v2 = vld [vmem:[#allocation31_spill] sm:$0xff]  ;;  %v13148_v31 = vpack.c.bf16 %v7819_v5, %v7818_v58  ;;  %v17330_v58 = vld [vmem:[#allocation46_spill] sm:$0xff] }
 0x709   : > { %v17331_v5 = vld [vmem:[#allocation47_spill] sm:$0xff] }
 0x70b   : > { %12187 = vmatmul.mubr.f32.gmra.mrb[36].mxu1 %v17303_v47  ;;  %v7373_v47 = vld [vmem:[#allocation2 + $0x120] sm:$0xff] }
 0x70c   : > { %12189 = vmatprep.mubr.f32.mxu1 %v17304_v52  ;;  %v7375_v52 = vld [vmem:[#allocation2 + $0x130] sm:$0xff] }
 0x70f   : > { %12190 = vmatmul.mubr.f32.gmra.mrb[38].mxu1 %v17305_v25  ;;  %v7376_v25 = vld [vmem:[#allocation2 + $0x138] sm:$0xff] }
 0x710   : > { %12192 = vmatprep.mubr.f32.mxu1 %v17306_v3  ;;  %v7378_v3 = vld [vmem:[#allocation2 + $0x148] sm:$0xff] }
 0x713   : > { %12193 = vmatmul.mubr.f32.gmra.mrb[40].mxu1 %v17307_v23  ;;  %v7382_v23 = vld [vmem:[#allocation2 + $0x168] sm:$0xff] }
 0x714   : > { %12195 = vmatprep.mubr.f32.mxu1 %v17308_v26  ;;  %v7384_v26 = vld [vmem:[#allocation2 + $0x178] sm:$0xff] }
 0x717   : > { %12196 = vmatmul.mubr.f32.gmra.mrb[42].mxu1 %v17309_v4  ;;  %v7386_v4 = vld [vmem:[#allocation2 + $0x188] sm:$0xff] }
 0x718   : > { %12198 = vmatprep.mubr.f32.mxu1 %v17310_v32  ;;  %v7387_v32 = vld [vmem:[#allocation2 + $0x190] sm:$0xff] }
 0x71b   : > { %12199 = vmatmul.mubr.f32.gmra.mrb[44].mxu1 %v16614_v17 }
 0x71c   : > { %12201 = vmatprep.mubr.f32.mxu1 %v16617_v45 }
 0x71f   : > { %12202 = vmatmul.mubr.f32.gmra.mrb[46].mxu1 %v16620_v42 }
 0x720   : > { %12236 = vmatprep.mubr.f32.mxu1 %v16321_v21  ;;  %v17316_v21 = vld [vmem:[#allocation32_spill] sm:$0xff] }
 0x723   : > { %12237 = vmatmul.mubr.f32.vlgmr.msra.gmra.mrb[0].mxu1 %v17311_v44  ;;  %v13168_v44 = vpack.c.bf16 %v8231_v61, %v8230_v56  ;;  %v17364_v56 = vld [vmem:[#allocation74_spill] sm:$0xff]  ;;  %v17365_v61 = vld [vmem:[#allocation75_spill] sm:$0xff] }
 0x724   : > { %12239 = vmatprep.mubr.f32.mxu1 %v17312_v28  ;;  %13135 = vmatpush3.bf16.msra.mxu1 %v13132_v40  ;;  %v7371_v40 = vld [vmem:[#allocation2 + $0x110] sm:$0xff]  ;;  %v8232_v28 = vld [vmem:[#allocation8 + $0x420] sm:$0xff] }
 0x725   : > { %13137 = vmatprep.subr.bf16.mxu1 %v13136_v34 }
 0x727   : > { %12240 = vmatmul.mubr.f32.gmra.mrb[2].mxu1 %v17313_v13 }
 0x728   : > { %12242 = vmatprep.mubr.f32.mxu1 %v17314_v29  ;;  %13139 = vmatpush3.bf16.msra.mxu1 %v13136_v34  ;;  %v7390_v34 = vld [vmem:[#allocation2 + $0x1a8] sm:$0xff]  ;;  %v8234_v29 = vld [vmem:[#allocation8 + $0x430] sm:$0xff] }
 0x729   : > { %13141 = vmatprep.subr.bf16.mxu1 %v13140_v35 }
 0x72b   : > { %12243 = vmatmul.mubr.f32.gmra.mrb[4].mxu1 %v17315_v2 }
 0x72c   : > { %12245 = vmatprep.mubr.f32.mxu1 %v17316_v21  ;;  %13143 = vmatpush3.bf16.msra.mxu1 %v13140_v35  ;;  %v8233_v35 = vld [vmem:[#allocation8 + $0x428] sm:$0xff] }
 0x72d   : > { %13145 = vmatprep.subr.bf16.mxu1 %v13144_v12  ;;  %v13172_v13 = vpack.c.bf16 %v8233_v35, %v8232_v28  ;;  %v8237_v21 = vld [vmem:[#allocation8 + $0x448] sm:$0xff]  ;;  %v17367_v28 = vld [vmem:[#allocation77_spill] sm:$0xff]  ;;  %v7806_v35 = vld [vmem:[#allocation2 + $0x199] sm:$0xff] }
 0x72f   : > { %12246 = vmatmul.mubr.f32.gmra.mrb[6].mxu1 %v17317_v48  ;;  %v8238_v48 = vld [vmem:[#allocation8 + $0x450] sm:$0xff] }
 0x730   : > { %12248 = vmatprep.mubr.f32.mxu1 %v16345_v53  ;;  %13147 = vmatpush3.bf16.msra.mxu1 %v13144_v12  ;;  %v13160_v53 = vpack.c.bf16 %v7825_v54, %v7824_v43  ;;  %v8235_v12 = vld [vmem:[#allocation8 + $0x438] sm:$0xff]  ;;  %v8241_v43 = vld [vmem:[#allocation8 + $0x468] sm:$0xff] }
 0x731   : > { %13149 = vmatprep.subr.bf16.mxu1 %v13148_v31  ;;  %v13176_v2 = vpack.c.bf16 %v8235_v12, %v8234_v29  ;;  %v8703_v29 = vld [vmem:[%s16959_s6 + $0x18] sm:$0xff] }
 0x732   : > { %v8179_v12 = vld [vmem:[#allocation2 + $0x32] sm:$0xff] }
 0x733   : > { %12249 = vmatmul.mubr.f32.gmra.mrb[8].mxu1 %v16348_v7  ;;  %v13164_v7 = vpack.c.bf16 %v8229_v1, %v8228_v11  ;;  %v8243_v11 = vld [vmem:[#allocation8 + $0x478] sm:$0xff]  ;;  %v17335_v1 = vld [vmem:[#allocation51_spill] sm:$0xff] }
 0x734   : > { %12251 = vmatprep.mubr.f32.mxu1 %v16351_v51  ;;  %13151 = vmatpush3.bf16.msra.mxu1 %v13148_v31  ;;  %v17319_v51 = vld [vmem:[#allocation35_spill] sm:$0xff]  ;;  %v17332_v31 = vld [vmem:[#allocation48_spill] sm:$0xff] }
 0x735   : > { %13153 = vmatprep.subr.bf16.mxu1 %v13152_v36 }
 0x737   : > { %12252 = vmatmul.mubr.f32.gmra.mrb[10].mxu1 %v16354_v50  ;;  %v17321_v50 = vld [vmem:[#allocation37_spill] sm:$0xff] }
 0x738   : > { %12254 = vmatprep.mubr.f32.mxu1 %v16359_v14  ;;  %13155 = vmatpush3.bf16.msra.mxu1 %v13152_v36  ;;  %v17322_v14 = vld [vmem:[#allocation38_spill] sm:$0xff]  ;;  %v8239_v36 = vld [vmem:[#allocation8 + $0x458] sm:$0xff] }
 0x739   : > { %13157 = vmatprep.subr.bf16.mxu1 %v13156_v30  ;;  %v13184_v0 = vpack.c.bf16 %v8239_v36, %v8238_v48  ;;  %v8183_v48 = vld [vmem:[#allocation2 + $0x52] sm:$0xff] }
 0x73b   : > { %12255 = vmatmul.mubr.f32.gmra.mrb[12].mxu1 %v16362_v49  ;;  %v17325_v49 = vld [vmem:[#allocation41_spill] sm:$0xff] }
 0x73c   : > { %12257 = vmatprep.mubr.f32.mxu1 %v17318_v41  ;;  %13159 = vmatpush3.bf16.msra.mxu1 %v13156_v30  ;;  %v8240_v30 = vld [vmem:[#allocation8 + $0x460] sm:$0xff]  ;;  %v17336_v41 = vld [vmem:[#allocation52_spill] sm:$0xff] }
 0x73d   : > { %13161 = vmatprep.subr.bf16.mxu1 %v13160_v53  ;;  %v13188_v54 = vpack.c.bf16 %v8241_v43, %v8240_v30  ;;  %v8709_v30 = vld [vmem:[%s16959_s6 + $0x48] sm:$0xff] }
 0x73e   : > { %v8185_v43 = vld [vmem:[#allocation2 + $0x62] sm:$0xff] }
 0x73f   : > { %12258 = vmatmul.mubr.f32.gmra.mrb[14].mxu1 %v17319_v51  ;;  %v17338_v51 = vld [vmem:[#allocation54_spill] sm:$0xff] }
 0x740   : > { %12260 = vmatprep.mubr.f32.mxu1 %v17320_v39  ;;  %13163 = vmatpush3.bf16.msra.mxu1 %v13160_v53  ;;  %v8242_v53 = vld [vmem:[#allocation8 + $0x470] sm:$0xff] }
 0x741   : > { %13165 = vmatprep.subr.bf16.mxu1 %v13164_v7 }
 0x743   : > { %12261 = vmatmul.mubr.f32.gmra.mrb[16].mxu1 %v17321_v50  ;;  %v17339_v50 = vld [vmem:[#allocation55_spill] sm:$0xff] }
 0x744   : > { %12263 = vmatprep.mubr.f32.mxu1 %v17322_v14  ;;  %v17340_v14 = vld [vmem:[#allocation56_spill] sm:$0xff] }
 0x747   : > { %12264 = vmatmul.mubr.f32.gmra.mrb[18].mxu1 %v17323_v37  ;;  %v17341_v37 = vld [vmem:[#allocation57_spill] sm:$0xff] }
 0x748   : > { %12266 = vmatprep.mubr.f32.mxu1 %v17324_v15  ;;  %v17342_v15 = vld [vmem:[#allocation58_spill] sm:$0xff] }
 0x74b   : > { %12267 = vmatmul.mubr.f32.gmra.mrb[20].mxu1 %v17325_v49  ;;  %v17343_v49 = vld [vmem:[#allocation59_spill] sm:$0xff] }
 0x74c   : > { %12269 = vmatprep.mubr.f32.mxu1 %v17326_v8  ;;  %v17344_v8 = vld [vmem:[#allocation60_spill] sm:$0xff] }
 0x74f   : > { %12270 = vmatmul.mubr.f32.gmra.mrb[22].mxu1 %v16393_v63  ;;  %v7377_v63 = vld [vmem:[#allocation2 + $0x140] sm:$0xff] }
 0x750   : > { %12272 = vmatprep.mubr.f32.mxu1 %v17327_v22  ;;  %v17345_v22 = vld [vmem:[#allocation61_spill] sm:$0xff] }
 0x753   : > { %12273 = vmatmul.mubr.f32.gmra.mrb[24].mxu1 %v16399_v6  ;;  %v7379_v6 = vld [vmem:[#allocation2 + $0x150] sm:$0xff] }
 0x754   : > { %12275 = vmatprep.mubr.f32.mxu1 %v16402_v59  ;;  %v7380_v59 = vld [vmem:[#allocation2 + $0x158] sm:$0xff] }
 0x757   : > { %12276 = vmatmul.mubr.f32.gmra.mrb[26].mxu1 %v16405_v20  ;;  %v7381_v20 = vld [vmem:[#allocation2 + $0x160] sm:$0xff] }
 0x758   : > { %12278 = vmatprep.mubr.f32.mxu1 %v7371_v40  ;;  %v17346_v40 = vld [vmem:[#allocation62_spill] sm:$0xff] }
 0x75b   : > { %12279 = vmatmul.mubr.f32.gmra.mrb[28].mxu1 %v16409_v16  ;;  %v7383_v16 = vld [vmem:[#allocation2 + $0x170] sm:$0xff] }
 0x75c   : > { %12281 = vmatprep.mubr.f32.mxu1 %v7373_v47  ;;  %v17347_v47 = vld [vmem:[#allocation63_spill] sm:$0xff] }
 0x75f   : > { %12282 = vmatmul.mubr.f32.gmra.mrb[30].mxu1 %v16413_v33  ;;  %v7385_v33 = vld [vmem:[#allocation2 + $0x180] sm:$0xff] }
 0x760   : > { %12284 = vmatprep.mubr.f32.mxu1 %v7375_v52  ;;  %v17348_v52 = vld [vmem:[#allocation64_spill] sm:$0xff] }
 0x763   : > { %12285 = vmatmul.mubr.f32.gmra.mrb[32].mxu1 %v7376_v25  ;;  %v17349_v25 = vld [vmem:[#allocation65_spill] sm:$0xff] }
 0x764   : > { %12287 = vmatprep.mubr.f32.mxu1 %v7377_v63  ;;  %v17350_v63 = vld [vmem:[#allocation66_spill] sm:$0xff] }
 0x767   : > { %12288 = vmatmul.mubr.f32.gmra.mrb[34].mxu1 %v7378_v3  ;;  %v17351_v3 = vld [vmem:[#allocation67_spill] sm:$0xff] }
 0x768   : > { %12290 = vmatprep.mubr.f32.mxu1 %v7379_v6  ;;  %v17352_v6 = vld [vmem:[#allocation68_spill] sm:$0xff] }
 0x76b   : > { %12291 = vmatmul.mubr.f32.gmra.mrb[36].mxu1 %v7380_v59  ;;  %v17353_v59 = vld [vmem:[#allocation13_spill] sm:$0xff] }
 0x76c   : > { %12293 = vmatprep.mubr.f32.mxu1 %v7381_v20  ;;  %v17354_v20 = vld [vmem:[#allocation14_spill] sm:$0xff] }
 0x76f   : > { %12294 = vmatmul.mubr.f32.gmra.mrb[38].mxu1 %v7382_v23  ;;  %v17355_v23 = vld [vmem:[#allocation16_spill] sm:$0xff] }
 0x770   : > { %12296 = vmatprep.mubr.f32.mxu1 %v7383_v16  ;;  %v17356_v16 = vld [vmem:[#allocation15_spill] sm:$0xff] }
 0x773   : > { %12297 = vmatmul.mubr.f32.gmra.mrb[40].mxu1 %v7384_v26  ;;  %v17357_v26 = vld [vmem:[#allocation18_spill] sm:$0xff] }
 0x774   : > { %12299 = vmatprep.mubr.f32.mxu1 %v7385_v33  ;;  %v17358_v33 = vld [vmem:[#allocation17_spill] sm:$0xff] }
 0x777   : > { %12300 = vmatmul.mubr.f32.gmra.mrb[42].mxu1 %v7386_v4  ;;  %v17359_v4 = vld [vmem:[#allocation69_spill] sm:$0xff] }
 0x778   : > { %12302 = vmatprep.mubr.f32.mxu1 %v7387_v32  ;;  %v17360_v32 = vld [vmem:[#allocation70_spill] sm:$0xff] }
 0x77b   : > { %12303 = vmatmul.mubr.f32.gmra.mrb[44].mxu1 %v7388_v60  ;;  %v17361_v60 = vld [vmem:[#allocation71_spill] sm:$0xff] }
 0x77c   : > { %12305 = vmatprep.mubr.f32.mxu1 %v7389_v9  ;;  %v17362_v9 = vld [vmem:[#allocation72_spill] sm:$0xff] }
 0x77f   : > { %12306 = vmatmul.mubr.f32.gmra.mrb[46].mxu1 %v7390_v34  ;;  %v17363_v34 = vld [vmem:[#allocation73_spill] sm:$0xff] }
 0x780   : > { %12340 = vmatprep.mubr.f32.mxu1 %v16430_v62  ;;  %v8236_v62 = vld [vmem:[#allocation8 + $0x440] sm:$0xff] }
 0x781   : > { %v13180_v57 = vpack.c.bf16 %v8237_v21, %v8236_v62  ;;  %v8181_v62 = vld [vmem:[#allocation2 + $0x42] sm:$0xff] }
 0x783   : > { %12341 = vmatmul.mubr.f32.vlgmr.msra.gmra.mrb[0].mxu1 %v17328_v38  ;;  %v7807_v38 = vld [vmem:[#allocation2 + $0x1a1] sm:$0xff] }
 0x784   : > { %12343 = vmatprep.mubr.f32.mxu1 %v17329_v19  ;;  %13167 = vmatpush3.bf16.msra.mxu1 %v13164_v7  ;;  %v8700_v7 = vld [vmem:[%s16959_s6] sm:$0xff]  ;;  %v7808_v19 = vld [vmem:[#allocation2 + $0x1a9] sm:$0xff] }
 0x785   : > { %13169 = vmatprep.subr.bf16.mxu1 %v13168_v44 }
 0x787   : > { %12344 = vmatmul.mubr.f32.gmra.mrb[2].mxu1 %v17330_v58 }
 0x788   : > { %12346 = vmatprep.mubr.f32.mxu1 %v17331_v5  ;;  %13171 = vmatpush3.bf16.msra.mxu1 %v13168_v44  ;;  %v17366_v44 = vld [vmem:[#allocation76_spill] sm:$0xff] }
 0x789   : > { %13173 = vmatprep.subr.bf16.mxu1 %v13172_v13  ;;  %v8180_v5 = vld [vmem:[#allocation2 + $0x3a] sm:$0xff] }
 0x78b   : > { %12347 = vmatmul.mubr.f32.gmra.mrb[4].mxu1 %v17332_v31  ;;  %v8182_v31 = vld [vmem:[#allocation2 + $0x4a] sm:$0xff] }
 0x78c   : > { %12349 = vmatprep.mubr.f32.mxu1 %v17333_v18  ;;  %13175 = vmatpush3.bf16.msra.mxu1 %v13172_v13  ;;  %v8702_v13 = vld [vmem:[%s16959_s6 + $0x10] sm:$0xff] }
 0x78d   : > { %13177 = vmatprep.subr.bf16.mxu1 %v13176_v2  ;;  %v13200_v58 = vpack.c.bf16 %v8703_v29, %v8702_v13  ;;  %v8706_v18 = vld [vmem:[%s16959_s6 + $0x30] sm:$0xff]  ;;  %v8220_v29 = vld [vmem:[#allocation2 + $0x17a] sm:$0xff] }
 0x78e   : > { %v8219_v13 = vld [vmem:[#allocation2 + $0x172] sm:$0xff] }
 0x78f   : > { %12350 = vmatmul.mubr.f32.gmra.mrb[6].mxu1 %v17334_v27  ;;  %v8184_v27 = vld [vmem:[#allocation2 + $0x5a] sm:$0xff] }
 0x790   : > { %12352 = vmatprep.mubr.f32.mxu1 %v16454_v55  ;;  %13179 = vmatpush3.bf16.msra.mxu1 %v13176_v2  ;;  %v13192_v55 = vpack.c.bf16 %v8243_v11, %v8242_v53  ;;  %v8705_v2 = vld [vmem:[%s16959_s6 + $0x28] sm:$0xff]  ;;  %v8710_v11 = vld [vmem:[%s16959_s6 + $0x50] sm:$0xff] }
 0x791   : > { %13181 = vmatprep.subr.bf16.mxu1 %v13180_v57  ;;  %v8186_v53 = vld [vmem:[#allocation2 + $0x6a] sm:$0xff] }
 0x793   : > { %12353 = vmatmul.mubr.f32.gmra.mrb[8].mxu1 %v16457_v46  ;;  %v8701_v46 = vld [vmem:[%s16959_s6 + $0x8] sm:$0xff] }
 0x794   : > { %12355 = vmatprep.mubr.f32.mxu1 %v16460_v24  ;;  %13183 = vmatpush3.bf16.msra.mxu1 %v13180_v57  ;;  %v17337_v24 = vld [vmem:[#allocation53_spill] sm:$0xff]  ;;  %v13196_v39 = vpack.c.bf16 %v8701_v46, %v8700_v7  ;;  %v8707_v57 = vld [vmem:[%s16959_s6 + $0x38] sm:$0xff]  ;;  %v8712_v46 = vld [vmem:[%s16959_s6 + $0x60] sm:$0xff] }
 0x795   : > { %13185 = vmatprep.subr.bf16.mxu1 %v13184_v0  ;;  %v13208_v36 = vpack.c.bf16 %v8707_v57, %v8706_v18  ;;  %v8188_v7 = vld [vmem:[#allocation2 + $0x7a] sm:$0xff]  ;;  %v8660_v18 = vld [vmem:[%s14666_s24 + $0x72] sm:$0xff] }
 0x796   : > { %v8661_v57 = vld [vmem:[%s14666_s24 + $0x7a] sm:$0xff] }
 0x797   : > { %12356 = vmatmul.mubr.f32.gmra.mrb[10].mxu1 %v17335_v1  ;;  %v8711_v1 = vld [vmem:[%s16959_s6 + $0x58] sm:$0xff] }
 0x798   : > { %12358 = vmatprep.mubr.f32.mxu1 %v17336_v41  ;;  %13187 = vmatpush3.bf16.msra.mxu1 %v13184_v0  ;;  %v8708_v0 = vld [vmem:[%s16959_s6 + $0x40] sm:$0xff]  ;;  %v8187_v41 = vld [vmem:[#allocation2 + $0x72] sm:$0xff] }
 0x799   : > { %13189 = vmatprep.subr.bf16.mxu1 %v13188_v54 }
 0x79b   : > { %12359 = vmatmul.mubr.f32.gmra.mrb[12].mxu1 %v17337_v24  ;;  %v8713_v24 = vld [vmem:[%s16959_s6 + $0x68] sm:$0xff] }
 0x79c   : > { %12361 = vmatprep.mubr.f32.mxu1 %v17338_v51  ;;  %13191 = vmatpush3.bf16.msra.mxu1 %v13188_v54  ;;  %v13212_v54 = vpack.c.bf16 %v8709_v30, %v8708_v0  ;;  %v8189_v51 = vld [vmem:[#allocation2 + $0x82] sm:$0xff]  ;;  %v8665_v0 = vld [vmem:[%s14666_s24 + $0x9a] sm:$0xff] }
 0x79d   : > { %13193 = vmatprep.subr.bf16.mxu1 %v13192_v55  ;;  %v8666_v30 = vld [vmem:[%s14666_s24 + $0xa2] sm:$0xff] }
 0x79f   : > { %12362 = vmatmul.mubr.f32.gmra.mrb[14].mxu1 %v17339_v50  ;;  %v8190_v50 = vld [vmem:[#allocation2 + $0x8a] sm:$0xff] }
 0x7a0   : > { %12364 = vmatprep.mubr.f32.mxu1 %v17340_v14  ;;  %13195 = vmatpush3.bf16.msra.mxu1 %v13192_v55  ;;  %v13216_v55 = vpack.c.bf16 %v8711_v1, %v8710_v11  ;;  %v8714_v14 = vld [vmem:[%s16959_s6 + $0x70] sm:$0xff]  ;;  %v8670_v11 = vld [vmem:[%s14666_s24 + $0xc2] sm:$0xff] }
 0x7a1   : > { %13197 = vmatprep.subr.bf16.mxu1 %v13196_v39  ;;  %v8671_v1 = vld [vmem:[%s14666_s24 + $0xca] sm:$0xff] }
 0x7a3   : > { %12365 = vmatmul.mubr.f32.gmra.mrb[16].mxu1 %v17341_v37  ;;  %v8715_v37 = vld [vmem:[%s16959_s6 + $0x78] sm:$0xff] }
 0x7a4   : > { %12367 = vmatprep.mubr.f32.mxu1 %v17342_v15  ;;  %v8191_v15 = vld [vmem:[#allocation2 + $0x92] sm:$0xff] }
 0x7a7   : > { %12368 = vmatmul.mubr.f32.gmra.mrb[18].mxu1 %v17343_v49  ;;  %v13224_v49 = vpack.c.bf16 %v8715_v37, %v8714_v14  ;;  %v8680_v14 = vld [vmem:[%s14666_s24 + $0x112] sm:$0xff]  ;;  %v8681_v37 = vld [vmem:[%s14666_s24 + $0x11a] sm:$0xff] }
 0x7a8   : > { %12370 = vmatprep.mubr.f32.mxu1 %v17344_v8  ;;  %v8192_v8 = vld [vmem:[#allocation2 + $0x9a] sm:$0xff] }
 0x7ab   : > { %12371 = vmatmul.mubr.f32.gmra.mrb[20].mxu1 %v17345_v22  ;;  %v8193_v22 = vld [vmem:[#allocation2 + $0xa2] sm:$0xff] }
 0x7ac   : > { %12373 = vmatprep.mubr.f32.mxu1 %v17346_v40  ;;  %v8194_v40 = vld [vmem:[#allocation2 + $0xaa] sm:$0xff] }
 0x7af   : > { %12374 = vmatmul.mubr.f32.gmra.mrb[22].mxu1 %v17347_v47  ;;  %v8195_v47 = vld [vmem:[#allocation2 + $0xb2] sm:$0xff] }
 0x7b0   : > { %12376 = vmatprep.mubr.f32.mxu1 %v17348_v52  ;;  %v8196_v52 = vld [vmem:[#allocation2 + $0xba] sm:$0xff] }
 0x7b3   : > { %12377 = vmatmul.mubr.f32.gmra.mrb[24].mxu1 %v17349_v25  ;;  %v8197_v25 = vld [vmem:[#allocation2 + $0xc2] sm:$0xff] }
 0x7b4   : > { %12379 = vmatprep.mubr.f32.mxu1 %v17350_v63  ;;  %v8198_v63 = vld [vmem:[#allocation2 + $0xca] sm:$0xff] }
 0x7b7   : > { %12380 = vmatmul.mubr.f32.gmra.mrb[26].mxu1 %v17351_v3  ;;  %v8199_v3 = vld [vmem:[#allocation2 + $0xd2] sm:$0xff] }
 0x7b8   : > { %12382 = vmatprep.mubr.f32.mxu1 %v17352_v6  ;;  %v8200_v6 = vld [vmem:[#allocation2 + $0xda] sm:$0xff] }
 0x7bb   : > { %12383 = vmatmul.mubr.f32.gmra.mrb[28].mxu1 %v17353_v59  ;;  %v8201_v59 = vld [vmem:[#allocation2 + $0xe2] sm:$0xff] }
 0x7bc   : > { %12385 = vmatprep.mubr.f32.mxu1 %v17354_v20  ;;  %v8202_v20 = vld [vmem:[#allocation2 + $0xea] sm:$0xff] }
 0x7bf   : > { %12386 = vmatmul.mubr.f32.gmra.mrb[30].mxu1 %v17355_v23  ;;  %v8203_v23 = vld [vmem:[#allocation2 + $0xf2] sm:$0xff] }
 0x7c0   : > { %12388 = vmatprep.mubr.f32.mxu1 %v17356_v16  ;;  %v8204_v16 = vld [vmem:[#allocation2 + $0xfa] sm:$0xff] }
 0x7c3   : > { %12389 = vmatmul.mubr.f32.gmra.mrb[32].mxu1 %v17357_v26  ;;  %v8205_v26 = vld [vmem:[#allocation2 + $0x102] sm:$0xff] }
 0x7c4   : > { %12391 = vmatprep.mubr.f32.mxu1 %v17358_v33  ;;  %v8206_v33 = vld [vmem:[#allocation2 + $0x10a] sm:$0xff] }
 0x7c7   : > { %12392 = vmatmul.mubr.f32.gmra.mrb[34].mxu1 %v17359_v4  ;;  %v8207_v4 = vld [vmem:[#allocation2 + $0x112] sm:$0xff] }
 0x7c8   : > { %12394 = vmatprep.mubr.f32.mxu1 %v17360_v32  ;;  %v8208_v32 = vld [vmem:[#allocation2 + $0x11a] sm:$0xff] }
 0x7cb   : > { %12395 = vmatmul.mubr.f32.gmra.mrb[36].mxu1 %v17361_v60  ;;  %v8209_v60 = vld [vmem:[#allocation2 + $0x122] sm:$0xff] }
 0x7cc   : > { %12397 = vmatprep.mubr.f32.mxu1 %v17362_v9  ;;  %v8210_v9 = vld [vmem:[#allocation2 + $0x12a] sm:$0xff] }
 0x7cf   : > { %12398 = vmatmul.mubr.f32.gmra.mrb[38].mxu1 %v17363_v34  ;;  %v8211_v34 = vld [vmem:[#allocation2 + $0x132] sm:$0xff] }
 0x7d0   : > { %12400 = vmatprep.mubr.f32.mxu1 %v17364_v56  ;;  %v8212_v56 = vld [vmem:[#allocation2 + $0x13a] sm:$0xff] }
 0x7d3   : > { %12401 = vmatmul.mubr.f32.gmra.mrb[40].mxu1 %v17365_v61  ;;  %v8213_v61 = vld [vmem:[#allocation2 + $0x142] sm:$0xff] }
 0x7d4   : > { %12403 = vmatprep.mubr.f32.mxu1 %v17366_v44  ;;  %v8214_v44 = vld [vmem:[#allocation2 + $0x14a] sm:$0xff] }
 0x7d7   : > { %12404 = vmatmul.mubr.f32.gmra.mrb[42].mxu1 %v17367_v28  ;;  %v8215_v28 = vld [vmem:[#allocation2 + $0x152] sm:$0xff] }
 0x7d8   : > { %12406 = vmatprep.mubr.f32.mxu1 %v16565_v10  ;;  %v8704_v10 = vld [vmem:[%s16959_s6 + $0x20] sm:$0xff] }
 0x7d9   : > { %v13204_v21 = vpack.c.bf16 %v8705_v2, %v8704_v10  ;;  %v8226_v10 = vld [vmem:[#allocation2 + $0x1aa] sm:$0xff]  ;;  %v8653_v2 = vld [vmem:[%s14666_s24 + $0x3a] sm:$0xff] }
 0x7db   : > { %12407 = vmatmul.mubr.f32.gmra.mrb[44].mxu1 %v7806_v35  ;;  %v8216_v35 = vld [vmem:[#allocation2 + $0x15a] sm:$0xff] }
 0x7dc   : > { %12409 = vmatprep.mubr.f32.mxu1 %v7807_v38  ;;  %v8217_v38 = vld [vmem:[#allocation2 + $0x162] sm:$0xff] }
 0x7df   : > { %12410 = vmatmul.mubr.f32.gmra.mrb[46].mxu1 %v7808_v19  ;;  %v8218_v19 = vld [vmem:[#allocation2 + $0x16a] sm:$0xff] }
 0x7e0   : > { %12444 = vmatprep.mubr.f32.mxu1 %v8179_v12  ;;  %v8224_v12 = vld [vmem:[#allocation2 + $0x19a] sm:$0xff] }
 0x7e3   : > { %12445 = vmatmul.mubr.f32.vlgmr.msra.gmra.mrb[0].mxu1 %v8180_v5  ;;  %v8652_v5 = vld [vmem:[%s14666_s24 + $0x32] sm:$0xff] }
 0x7e4   : > { %12447 = vmatprep.mubr.f32.mxu1 %v8181_v62  ;;  %13199 = vmatpush3.bf16.msra.mxu1 %v13196_v39  ;;  %v13220_v39 = vpack.c.bf16 %v8713_v24, %v8712_v46  ;;  %v8657_v62 = vld [vmem:[%s14666_s24 + $0x5a] sm:$0xff]  ;;  %v8675_v46 = vld [vmem:[%s14666_s24 + $0xea] sm:$0xff]  ;;  %v8676_v24 = vld [vmem:[%s14666_s24 + $0xf2] sm:$0xff] }
 0x7e5   : > { %13201 = vmatprep.subr.bf16.mxu1 %v13200_v58 }
 0x7e7   : > { %12448 = vmatmul.mubr.f32.gmra.mrb[2].mxu1 %v8182_v31  ;;  %v8659_v31 = vld [vmem:[%s14666_s24 + $0x6a] sm:$0xff] }
 0x7e8   : > { %12450 = vmatprep.mubr.f32.mxu1 %v8183_v48  ;;  %13203 = vmatpush3.bf16.msra.mxu1 %v13200_v58  ;;  %v8225_v58 = vld [vmem:[#allocation2 + $0x1a2] sm:$0xff] }
 0x7e9   : > { %13205 = vmatprep.subr.bf16.mxu1 %v13204_v21  ;;  %v8662_v48 = vld [vmem:[%s14666_s24 + $0x82] sm:$0xff] }
 0x7eb   : > { %12451 = vmatmul.mubr.f32.gmra.mrb[4].mxu1 %v8184_v27  ;;  %v8664_v27 = vld [vmem:[%s14666_s24 + $0x92] sm:$0xff] }
 0x7ec   : > { %12453 = vmatprep.mubr.f32.mxu1 %v8185_v43  ;;  %13207 = vmatpush3.bf16.msra.mxu1 %v13204_v21  ;;  %v8658_v21 = vld [vmem:[%s14666_s24 + $0x62] sm:$0xff]  ;;  %v8667_v43 = vld [vmem:[%s14666_s24 + $0xaa] sm:$0xff] }
 0x7ed   : > { %13209 = vmatprep.subr.bf16.mxu1 %v13208_v36 }
 0x7ef   : > { %12454 = vmatmul.mubr.f32.gmra.mrb[6].mxu1 %v8186_v53  ;;  %v8669_v53 = vld [vmem:[%s14666_s24 + $0xba] sm:$0xff] }
 0x7f0   : > { %12456 = vmatprep.mubr.f32.mxu1 %v8187_v41  ;;  %13211 = vmatpush3.bf16.msra.mxu1 %v13208_v36  ;;  %v8663_v36 = vld [vmem:[%s14666_s24 + $0x8a] sm:$0xff]  ;;  %v8672_v41 = vld [vmem:[%s14666_s24 + $0xd2] sm:$0xff] }
 0x7f1   : > { %13213 = vmatprep.subr.bf16.mxu1 %v13212_v54 }
 0x7f3   : > { %12457 = vmatmul.mubr.f32.gmra.mrb[8].mxu1 %v8188_v7  ;;  %v8674_v7 = vld [vmem:[%s14666_s24 + $0xe2] sm:$0xff] }
 0x7f4   : > { %12459 = vmatprep.mubr.f32.mxu1 %v8189_v51  ;;  %13215 = vmatpush3.bf16.msra.mxu1 %v13212_v54  ;;  %v8668_v54 = vld [vmem:[%s14666_s24 + $0xb2] sm:$0xff]  ;;  %v8677_v51 = vld [vmem:[%s14666_s24 + $0xfa] sm:$0xff] }
 0x7f5   : > { %13217 = vmatprep.subr.bf16.mxu1 %v13216_v55 }
 0x7f7   : > { %12460 = vmatmul.mubr.f32.gmra.mrb[10].mxu1 %v8190_v50  ;;  %v8679_v50 = vld [vmem:[%s14666_s24 + $0x10a] sm:$0xff] }
 0x7f8   : > { %12462 = vmatprep.mubr.f32.mxu1 %v8191_v15  ;;  %13219 = vmatpush3.bf16.msra.mxu1 %v13216_v55  ;;  %v8673_v55 = vld [vmem:[%s14666_s24 + $0xda] sm:$0xff]  ;;  %v8682_v15 = vld [vmem:[%s14666_s24 + $0x122] sm:$0xff] }
 0x7f9   : > { %13221 = vmatprep.subr.bf16.mxu1 %v13220_v39 }
 0x7fb   : > { %12463 = vmatmul.mubr.f32.gmra.mrb[12].mxu1 %v8192_v8  ;;  %v8684_v8 = vld [vmem:[%s14666_s24 + $0x132] sm:$0xff] }
 0x7fc   : > { %12465 = vmatprep.mubr.f32.mxu1 %v8193_v22  ;;  %13223 = vmatpush3.bf16.msra.mxu1 %v13220_v39  ;;  %v8678_v39 = vld [vmem:[%s14666_s24 + $0x102] sm:$0xff]  ;;  %v8685_v22 = vld [vmem:[%s14666_s24 + $0x13a] sm:$0xff] }
 0x7fd   : > { %13225 = vmatprep.subr.bf16.mxu1 %v13224_v49 }
 0x7ff   : > { %12466 = vmatmul.mubr.f32.gmra.mrb[14].mxu1 %v8194_v40  ;;  %v8686_v40 = vld [vmem:[%s14666_s24 + $0x142] sm:$0xff] }
 0x800   : > { %12468 = vmatprep.mubr.f32.mxu1 %v8195_v47  ;;  %13227 = vmatpush3.bf16.msra.mxu1 %v13224_v49  ;;  %v8683_v49 = vld [vmem:[%s14666_s24 + $0x12a] sm:$0xff] }
 0x801   : > { %v8687_v47 = vld [vmem:[%s14666_s24 + $0x14a] sm:$0xff] }
 0x803   : > { %12469 = vmatmul.mubr.f32.gmra.mrb[16].mxu1 %v8196_v52  ;;  %v8688_v52 = vld [vmem:[%s14666_s24 + $0x152] sm:$0xff] }
 0x804   : > { %12471 = vmatprep.mubr.f32.mxu1 %v8197_v25  ;;  %v8689_v25 = vld [vmem:[%s14666_s24 + $0x15a] sm:$0xff] }
 0x807   : > { %12472 = vmatmul.mubr.f32.gmra.mrb[18].mxu1 %v8198_v63  ;;  %v8690_v63 = vld [vmem:[%s14666_s24 + $0x162] sm:$0xff] }
 0x808   : > { %12474 = vmatprep.mubr.f32.mxu1 %v8199_v3  ;;  %v8691_v3 = vld [vmem:[%s14666_s24 + $0x16a] sm:$0xff] }
 0x80b   : > { %12475 = vmatmul.mubr.f32.gmra.mrb[20].mxu1 %v8200_v6  ;;  %v8692_v6 = vld [vmem:[%s14666_s24 + $0x172] sm:$0xff] }
 0x80c   : > { %12477 = vmatprep.mubr.f32.mxu1 %v8201_v59  ;;  %v8693_v59 = vld [vmem:[%s14666_s24 + $0x17a] sm:$0xff] }
 0x80f   : > { %12478 = vmatmul.mubr.f32.gmra.mrb[22].mxu1 %v8202_v20  ;;  %v8694_v20 = vld [vmem:[%s14666_s24 + $0x182] sm:$0xff] }
 0x810   : > { %12480 = vmatprep.mubr.f32.mxu1 %v8203_v23  ;;  %v8695_v23 = vld [vmem:[%s14666_s24 + $0x18a] sm:$0xff] }
 0x813   : > { %12481 = vmatmul.mubr.f32.gmra.mrb[24].mxu1 %v8204_v16  ;;  %v8696_v16 = vld [vmem:[%s14666_s24 + $0x192] sm:$0xff] }
 0x814   : > { %12483 = vmatprep.mubr.f32.mxu1 %v8205_v26  ;;  %v8697_v26 = vld [vmem:[%s14666_s24 + $0x19a] sm:$0xff] }
 0x817   : > { %12484 = vmatmul.mubr.f32.gmra.mrb[26].mxu1 %v8206_v33  ;;  %v8698_v33 = vld [vmem:[%s14666_s24 + $0x1a2] sm:$0xff] }
 0x818   : > { %12486 = vmatprep.mubr.f32.mxu1 %v8207_v4  ;;  %v8699_v4 = vld [vmem:[%s14666_s24 + $0x1aa] sm:$0xff] }
 0x81b   : > { %12487 = vmatmul.mubr.f32.gmra.mrb[28].mxu1 %v8208_v32  ;;  %v9288_v32 = vld [vmem:[%s16958_s5] ss:$0 sm:$0xff] }
 0x81c   : > { %12489 = vmatprep.mubr.f32.mxu1 %v8209_v60  ;;  %v9289_v60 = vld [vmem:[%s16960_s7] ss:$0 sm:$0xff] }
 0x81f   : > { %12490 = vmatmul.mubr.f32.gmra.mrb[30].mxu1 %v8210_v9 }
 0x820   : > { %12492 = vmatprep.mubr.f32.mxu1 %v8211_v34 }
 0x823   : > { %12493 = vmatmul.mubr.f32.gmra.mrb[32].mxu1 %v8212_v56  ;;  %v16804_v56 = vadd.f32 %v9289_v60, %v9288_v32 }
 0x824   : > { %12495 = vmatprep.mubr.f32.mxu1 %v8213_v61 }
 0x827   : > { %12496 = vmatmul.mubr.f32.gmra.mrb[34].mxu1 %v8214_v44 }
 0x828   : > { %12498 = vmatprep.mubr.f32.mxu1 %v8215_v28 }
 0x82b   : > { %12499 = vmatmul.mubr.f32.gmra.mrb[36].mxu1 %v8216_v35 }
 0x82c   : > { %12501 = vmatprep.mubr.f32.mxu1 %v8217_v38 }
 0x82f   : > { %12502 = vmatmul.mubr.f32.gmra.mrb[38].mxu1 %v8218_v19 }
 0x830   : > { %12504 = vmatprep.mubr.f32.mxu1 %v8219_v13 }
 0x833   : > { %12505 = vmatmul.mubr.f32.gmra.mrb[40].mxu1 %v8220_v29 }
 0x834   : > { %12507 = vmatprep.mubr.f32.mxu1 %v16614_v17  ;;  %v8654_v17 = vld [vmem:[%s14666_s24 + $0x42] sm:$0xff] }
 0x837   : > { %12508 = vmatmul.mubr.f32.gmra.mrb[42].mxu1 %v16617_v45  ;;  %v8655_v45 = vld [vmem:[%s14666_s24 + $0x4a] sm:$0xff] }
 0x838   : > { %12510 = vmatprep.mubr.f32.mxu1 %v16620_v42  ;;  %v8656_v42 = vld [vmem:[%s14666_s24 + $0x52] sm:$0xff]  ;;  %s16808_s24 = scalar_lea.vmem [#allocation9], %s14191_s26 }
 0x839   : > { %s9186_s21 = sshll.u32 %s16808_s24, 4  ;;  %s16907_s21 = int_to_ptr.vmem [resolvable:$true] %s9186_s21 }
 0x83a   : > { %s14354_s4 = scalar_lea.vmem %s16907_s21, 6144  ;;  %p14361_p7 = scmp.lt.s32.totalorder %s16907_s21, %s14359_s15 }
 0x83b   : > { %12511 = vmatmul.mubr.f32.gmra.mrb[44].mxu1 %v8224_v12  ;;  %p14355_p11 = scmp.ne.s32.totalorder %s16907_s21, %s14354_s4  ;;  %p14362_p9 = scmp.lt.s32.totalorder %s14360_s17, %s14354_s4 }
 0x83c   : > { %12513 = vmatprep.mubr.f32.mxu1 %v8225_v58 }
 0x83d   : > { %p14356_p2 = pnand %p14355_p11, %p17368_p0  ;;  %p14363_p12 = por %p14362_p9, %p14361_p7 }
 0x83f   : > { %12514 = vmatmul.mubr.f32.gmra.mrb[46].mxu1 %v8226_v10  ;;  %p14357_p3 = pneg %p14356_p2 }
 0x840   : > { %12548 = vmatprep.mubr.f32.mxu1 %v8652_v5 }
 0x841   : > { %p14364_p1 = pnand %p14363_p12, %p14357_p3 }
 0x843   : > { %12549 = vmatmul.mubr.f32.vlgmr.msra.gmra.mrb[0].mxu1 %v8653_v2 }
 0x844   : > { %12551 = vmatprep.mubr.f32.mxu1 %v8654_v17 }
 0x847   : > { %12552 = vmatmul.mubr.f32.gmra.mrb[2].mxu1 %v8655_v45 }
 0x848   : > { %12554 = vmatprep.mubr.f32.mxu1 %v8656_v42 }
 0x84b   : > { %12555 = vmatmul.mubr.f32.gmra.mrb[4].mxu1 %v8657_v62 }
 0x84c   : > { %12557 = vmatprep.mubr.f32.mxu1 %v8658_v21 }
 0x84f   : > { %12558 = vmatmul.mubr.f32.gmra.mrb[6].mxu1 %v8659_v31 }
 0x850   : > { %12560 = vmatprep.mubr.f32.mxu1 %v8660_v18 }
 0x853   : > { %12561 = vmatmul.mubr.f32.gmra.mrb[8].mxu1 %v8661_v57 }
 0x854   : > { %12563 = vmatprep.mubr.f32.mxu1 %v8662_v48 }
 0x857   : > { %12564 = vmatmul.mubr.f32.gmra.mrb[10].mxu1 %v8663_v36 }
 0x858   : > { %12566 = vmatprep.mubr.f32.mxu1 %v8664_v27 }
 0x85b   : > { %12567 = vmatmul.mubr.f32.gmra.mrb[12].mxu1 %v8665_v0 }
 0x85c   : > { %12569 = vmatprep.mubr.f32.mxu1 %v8666_v30 }
 0x85f   : > { %12570 = vmatmul.mubr.f32.gmra.mrb[14].mxu1 %v8667_v43 }
 0x860   : > { %12572 = vmatprep.mubr.f32.mxu1 %v8668_v54 }
 0x863   : > { %12573 = vmatmul.mubr.f32.gmra.mrb[16].mxu1 %v8669_v53 }
 0x864   : > { %12575 = vmatprep.mubr.f32.mxu1 %v8670_v11 }
 0x867   : > { %12576 = vmatmul.mubr.f32.gmra.mrb[18].mxu1 %v8671_v1 }
 0x868   : > { %12578 = vmatprep.mubr.f32.mxu1 %v8672_v41 }
 0x86b   : > { %12579 = vmatmul.mubr.f32.gmra.mrb[20].mxu1 %v8673_v55 }
 0x86c   : > { %12581 = vmatprep.mubr.f32.mxu1 %v8674_v7 }
 0x86f   : > { %12582 = vmatmul.mubr.f32.gmra.mrb[22].mxu1 %v8675_v46 }
 0x870   : > { %12584 = vmatprep.mubr.f32.mxu1 %v8676_v24 }
 0x873   : > { %12585 = vmatmul.mubr.f32.gmra.mrb[24].mxu1 %v8677_v51 }
 0x874   : > { %12587 = vmatprep.mubr.f32.mxu1 %v8678_v39 }
 0x877   : > { %12588 = vmatmul.mubr.f32.gmra.mrb[26].mxu1 %v8679_v50 }
 0x878   : > { %12590 = vmatprep.mubr.f32.mxu1 %v8680_v14 }
 0x87b   : > { %12591 = vmatmul.mubr.f32.gmra.mrb[28].mxu1 %v8681_v37 }
 0x87c   : > { %12593 = vmatprep.mubr.f32.mxu1 %v8682_v15 }
 0x87f   : > { %12594 = vmatmul.mubr.f32.gmra.mrb[30].mxu1 %v8683_v49 }
 0x880   : > { %12596 = vmatprep.mubr.f32.mxu1 %v8684_v8 }
 0x883   : > { %12597 = vmatmul.mubr.f32.gmra.mrb[32].mxu1 %v8685_v22 }
 0x884   : > { %12599 = vmatprep.mubr.f32.mxu1 %v8686_v40 }
 0x887   : > { %12600 = vmatmul.mubr.f32.gmra.mrb[34].mxu1 %v8687_v47 }
 0x888   : > { %12602 = vmatprep.mubr.f32.mxu1 %v8688_v52 }
 0x88b   : > { %12603 = vmatmul.mubr.f32.gmra.mrb[36].mxu1 %v8689_v25 }
 0x88c   : > { %12605 = vmatprep.mubr.f32.mxu1 %v8690_v63 }
 0x88f   : > { %12606 = vmatmul.mubr.f32.gmra.mrb[38].mxu1 %v8691_v3 }
 0x890   : > { %12608 = vmatprep.mubr.f32.mxu1 %v8692_v6 }
 0x893   : > { %12609 = vmatmul.mubr.f32.gmra.mrb[40].mxu1 %v8693_v59 }
 0x894   : > { %12611 = vmatprep.mubr.f32.mxu1 %v8694_v20 }
 0x897   : > { %12612 = vmatmul.mubr.f32.gmra.mrb[42].mxu1 %v8695_v23 }
 0x898   : > { %12614 = vmatprep.mubr.f32.mxu1 %v8696_v16 }
 0x89b   : > { %12615 = vmatmul.mubr.f32.gmra.mrb[44].mxu1 %v8697_v26 }
 0x89c   : > { %12617 = vmatprep.mubr.f32.mxu1 %v8698_v33 }
 0x89f   : > { %12618 = vmatmul.mubr.f32.gmra.mrb[46].mxu1 %v8699_v4 }
 0x916   : > { %v12550_v9 = vpop.f32.mrb[0].mxu1 }
 0x917   : > { %v13228_v34 = vadd.f32 %v12550_v9, %v9288_v32  ;;  %v8789_v61 = vpop.f32.mrb[1].mxu1 }
 0x918   : > { %v13230_v44 = vadd.f32 %v9288_v32, %v8789_v61 }
 0x919   : > { %v13229_v28 = vadd.f32 %v13228_v34, %v9289_v60 }
 0x91a   : > { %v13231_v35 = vadd.f32 %v13230_v44, %v9289_v60  ;;  %v12553_v38 = vpop.f32.mrb[2].mxu1 }
 0x91b   : > { %v9077_v19 = vmax.f32 %v13229_v28, 0.0  ;;  %v13233_v13 = vadd.f32 %v16804_v56, %v12553_v38  ;;  %v8799_v29 = vpop.f32.mrb[3].mxu1 }
 0x91c   : > { %v9076_v12 = vmax.f32 %v13231_v35, 0.0  ;;  %v13235_v58 = vadd.f32 %v16804_v56, %v8799_v29 }
 0x91d   : > { %9125 = vst [vmem:[%s16808_s24 + $0x8] sm:$0xff] %v9077_v19  ;;  %v9079_v5 = vmax.f32 %v13233_v13, 0.0 }
 0x91e   : > { %9124 = vst [vmem:[%s16808_s24] sm:$0xff] %v9076_v12  ;;  %v9078_v10 = vmax.f32 %v13235_v58, 0.0  ;;  %v12556_v2 = vpop.f32.mrb[4].mxu1 }
 0x91f   : > { %9127 = vst [vmem:[%s16808_s24 + $0x18] sm:$0xff] %v9079_v5  ;;  %v13237_v17 = vadd.f32 %v16804_v56, %v12556_v2  ;;  %v8809_v45 = vpop.f32.mrb[5].mxu1 }
 0x920   : > { %9126 = vst [vmem:[%s16808_s24 + $0x10] sm:$0xff] %v9078_v10  ;;  %v13239_v42 = vadd.f32 %v16804_v56, %v8809_v45 }
 0x921   : > { %v9081_v62 = vmax.f32 %v13237_v17, 0.0 }
 0x922   : > { %v9080_v21 = vmax.f32 %v13239_v42, 0.0  ;;  %v12559_v31 = vpop.f32.mrb[6].mxu1 }
 0x923   : > { %9129 = vst [vmem:[%s16808_s24 + $0x28] sm:$0xff] %v9081_v62  ;;  %v13241_v18 = vadd.f32 %v16804_v56, %v12559_v31  ;;  %v8819_v57 = vpop.f32.mrb[7].mxu1 }
 0x924   : > { %9128 = vst [vmem:[%s16808_s24 + $0x20] sm:$0xff] %v9080_v21  ;;  %v13243_v48 = vadd.f32 %v16804_v56, %v8819_v57 }
 0x925   : > { %v9083_v36 = vmax.f32 %v13241_v18, 0.0 }
 0x926   : > { %v9082_v27 = vmax.f32 %v13243_v48, 0.0  ;;  %v12562_v0 = vpop.f32.mrb[8].mxu1 }
 0x927   : > { %9131 = vst [vmem:[%s16808_s24 + $0x38] sm:$0xff] %v9083_v36  ;;  %v13245_v30 = vadd.f32 %v16804_v56, %v12562_v0  ;;  %v8829_v43 = vpop.f32.mrb[9].mxu1 }
 0x928   : > { %9130 = vst [vmem:[%s16808_s24 + $0x30] sm:$0xff] %v9082_v27  ;;  %v13247_v54 = vadd.f32 %v16804_v56, %v8829_v43 }
 0x929   : > { %v9085_v53 = vmax.f32 %v13245_v30, 0.0 }
 0x92a   : > { %v9084_v11 = vmax.f32 %v13247_v54, 0.0  ;;  %v12565_v1 = vpop.f32.mrb[10].mxu1 }
 0x92b   : > { %9133 = vst [vmem:[%s16808_s24 + $0x48] sm:$0xff] %v9085_v53  ;;  %v13249_v41 = vadd.f32 %v16804_v56, %v12565_v1  ;;  %v8839_v55 = vpop.f32.mrb[11].mxu1 }
 0x92c   : > { %9132 = vst [vmem:[%s16808_s24 + $0x40] sm:$0xff] %v9084_v11  ;;  %v13251_v7 = vadd.f32 %v16804_v56, %v8839_v55 }
 0x92d   : > { %v9087_v46 = vmax.f32 %v13249_v41, 0.0 }
 0x92e   : > { %v9086_v24 = vmax.f32 %v13251_v7, 0.0  ;;  %v12568_v51 = vpop.f32.mrb[12].mxu1 }
 0x92f   : > { %9135 = vst [vmem:[%s16808_s24 + $0x58] sm:$0xff] %v9087_v46  ;;  %v13253_v39 = vadd.f32 %v16804_v56, %v12568_v51  ;;  %v8849_v50 = vpop.f32.mrb[13].mxu1 }
 0x930   : > { %9134 = vst [vmem:[%s16808_s24 + $0x50] sm:$0xff] %v9086_v24  ;;  %v13255_v14 = vadd.f32 %v16804_v56, %v8849_v50 }
 0x931   : > { %v9089_v37 = vmax.f32 %v13253_v39, 0.0 }
 0x932   : > { %v9088_v15 = vmax.f32 %v13255_v14, 0.0  ;;  %v12571_v49 = vpop.f32.mrb[14].mxu1 }
 0x933   : > { %9137 = vst [vmem:[%s16808_s24 + $0x68] sm:$0xff] %v9089_v37  ;;  %v13257_v8 = vadd.f32 %v16804_v56, %v12571_v49  ;;  %v8859_v22 = vpop.f32.mrb[15].mxu1 }
 0x934   : > { %9136 = vst [vmem:[%s16808_s24 + $0x60] sm:$0xff] %v9088_v15  ;;  %v13259_v40 = vadd.f32 %v16804_v56, %v8859_v22 }
 0x935   : > { %v9091_v47 = vmax.f32 %v13257_v8, 0.0 }
 0x936   : > { %v9090_v52 = vmax.f32 %v13259_v40, 0.0  ;;  %v12574_v25 = vpop.f32.mrb[16].mxu1 }
 0x937   : > { %9139 = vst [vmem:[%s16808_s24 + $0x78] sm:$0xff] %v9091_v47  ;;  %v13261_v63 = vadd.f32 %v16804_v56, %v12574_v25  ;;  %v8869_v3 = vpop.f32.mrb[17].mxu1 }
 0x938   : > { %9138 = vst [vmem:[%s16808_s24 + $0x70] sm:$0xff] %v9090_v52  ;;  %v13263_v6 = vadd.f32 %v16804_v56, %v8869_v3 }
 0x939   : > { %v9093_v59 = vmax.f32 %v13261_v63, 0.0 }
 0x93a   : > { %v9092_v20 = vmax.f32 %v13263_v6, 0.0  ;;  %v12577_v23 = vpop.f32.mrb[18].mxu1 }
 0x93b   : > { %9141 = vst [vmem:[%s16808_s24 + $0x88] sm:$0xff] %v9093_v59  ;;  %v13265_v16 = vadd.f32 %v16804_v56, %v12577_v23  ;;  %v8879_v26 = vpop.f32.mrb[19].mxu1 }
 0x93c   : > { %9140 = vst [vmem:[%s16808_s24 + $0x80] sm:$0xff] %v9092_v20  ;;  %v13267_v33 = vadd.f32 %v16804_v56, %v8879_v26 }
 0x93d   : > { %v9095_v4 = vmax.f32 %v13265_v16, 0.0 }
 0x93e   : > { %v9094_v32 = vmax.f32 %v13267_v33, 0.0  ;;  %v12580_v60 = vpop.f32.mrb[20].mxu1 }
 0x93f   : > { %9143 = vst [vmem:[%s16808_s24 + $0x98] sm:$0xff] %v9095_v4  ;;  %v13269_v9 = vadd.f32 %v16804_v56, %v12580_v60  ;;  %v8889_v34 = vpop.f32.mrb[21].mxu1 }
 0x940   : > { %9142 = vst [vmem:[%s16808_s24 + $0x90] sm:$0xff] %v9094_v32  ;;  %v13271_v61 = vadd.f32 %v16804_v56, %v8889_v34 }
 0x941   : > { %v9097_v44 = vmax.f32 %v13269_v9, 0.0 }
 0x942   : > { %v9096_v28 = vmax.f32 %v13271_v61, 0.0  ;;  %v12583_v35 = vpop.f32.mrb[22].mxu1 }
 0x943   : > { %9145 = vst [vmem:[%s16808_s24 + $0xa8] sm:$0xff] %v9097_v44  ;;  %v13273_v38 = vadd.f32 %v16804_v56, %v12583_v35  ;;  %v8899_v19 = vpop.f32.mrb[23].mxu1 }
 0x944   : > { %9144 = vst [vmem:[%s16808_s24 + $0xa0] sm:$0xff] %v9096_v28  ;;  %v13275_v13 = vadd.f32 %v16804_v56, %v8899_v19 }
 0x945   : > { %v9099_v29 = vmax.f32 %v13273_v38, 0.0 }
 0x946   : > { %v9098_v12 = vmax.f32 %v13275_v13, 0.0  ;;  %v12586_v58 = vpop.f32.mrb[24].mxu1 }
 0x947   : > { %9147 = vst [vmem:[%s16808_s24 + $0xb8] sm:$0xff] %v9099_v29  ;;  %v13277_v5 = vadd.f32 %v16804_v56, %v12586_v58  ;;  %v8909_v10 = vpop.f32.mrb[25].mxu1 }
 0x948   : > { %9146 = vst [vmem:[%s16808_s24 + $0xb0] sm:$0xff] %v9098_v12  ;;  %v13279_v2 = vadd.f32 %v16804_v56, %v8909_v10 }
 0x949   : > { %v9101_v17 = vmax.f32 %v13277_v5, 0.0 }
 0x94a   : > { %v9100_v45 = vmax.f32 %v13279_v2, 0.0  ;;  %v12589_v42 = vpop.f32.mrb[26].mxu1 }
 0x94b   : > { %9149 = vst [vmem:[%s16808_s24 + $0xc8] sm:$0xff] %v9101_v17  ;;  %v13281_v62 = vadd.f32 %v16804_v56, %v12589_v42  ;;  %v8919_v21 = vpop.f32.mrb[27].mxu1 }
 0x94c   : > { %9148 = vst [vmem:[%s16808_s24 + $0xc0] sm:$0xff] %v9100_v45  ;;  %v13283_v31 = vadd.f32 %v16804_v56, %v8919_v21 }
 0x94d   : > { %v9103_v18 = vmax.f32 %v13281_v62, 0.0 }
 0x94e   : > { %v9102_v57 = vmax.f32 %v13283_v31, 0.0  ;;  %v12592_v48 = vpop.f32.mrb[28].mxu1 }
 0x94f   : > { %9151 = vst [vmem:[%s16808_s24 + $0xd8] sm:$0xff] %v9103_v18  ;;  %v13285_v36 = vadd.f32 %v16804_v56, %v12592_v48  ;;  %v8929_v27 = vpop.f32.mrb[29].mxu1 }
 0x950   : > { %9150 = vst [vmem:[%s16808_s24 + $0xd0] sm:$0xff] %v9102_v57  ;;  %v13287_v0 = vadd.f32 %v16804_v56, %v8929_v27 }
 0x951   : > { %v9105_v30 = vmax.f32 %v13285_v36, 0.0 }
 0x952   : > { %v9104_v43 = vmax.f32 %v13287_v0, 0.0  ;;  %v12595_v54 = vpop.f32.mrb[30].mxu1 }
 0x953   : > { %9153 = vst [vmem:[%s16808_s24 + $0xe8] sm:$0xff] %v9105_v30  ;;  %v13289_v53 = vadd.f32 %v16804_v56, %v12595_v54  ;;  %v8939_v11 = vpop.f32.mrb[31].mxu1 }
 0x954   : > { %9152 = vst [vmem:[%s16808_s24 + $0xe0] sm:$0xff] %v9104_v43  ;;  %v13291_v1 = vadd.f32 %v16804_v56, %v8939_v11 }
 0x955   : > { %v9107_v41 = vmax.f32 %v13289_v53, 0.0 }
 0x956   : > { %v9106_v55 = vmax.f32 %v13291_v1, 0.0  ;;  %v12598_v7 = vpop.f32.mrb[32].mxu1 }
 0x957   : > { %9155 = vst [vmem:[%s16808_s24 + $0xf8] sm:$0xff] %v9107_v41  ;;  %v13293_v46 = vadd.f32 %v16804_v56, %v12598_v7  ;;  %v8949_v24 = vpop.f32.mrb[33].mxu1 }
 0x958   : > { %9154 = vst [vmem:[%s16808_s24 + $0xf0] sm:$0xff] %v9106_v55  ;;  %v13295_v51 = vadd.f32 %v16804_v56, %v8949_v24 }
 0x959   : > { %v9109_v39 = vmax.f32 %v13293_v46, 0.0 }
 0x95a   : > { %v9108_v50 = vmax.f32 %v13295_v51, 0.0  ;;  %v12601_v14 = vpop.f32.mrb[34].mxu1 }
 0x95b   : > { %9157 = vst [vmem:[%s16808_s24 + $0x108] sm:$0xff] %v9109_v39  ;;  %v13297_v37 = vadd.f32 %v16804_v56, %v12601_v14  ;;  %v8959_v15 = vpop.f32.mrb[35].mxu1 }
 0x95c   : > { %9156 = vst [vmem:[%s16808_s24 + $0x100] sm:$0xff] %v9108_v50  ;;  %v13299_v49 = vadd.f32 %v16804_v56, %v8959_v15 }
 0x95d   : > { %v9111_v8 = vmax.f32 %v13297_v37, 0.0 }
 0x95e   : > { %v9110_v22 = vmax.f32 %v13299_v49, 0.0  ;;  %v12604_v40 = vpop.f32.mrb[36].mxu1 }
 0x95f   : > { %9159 = vst [vmem:[%s16808_s24 + $0x118] sm:$0xff] %v9111_v8  ;;  %v13301_v47 = vadd.f32 %v16804_v56, %v12604_v40  ;;  %v8969_v52 = vpop.f32.mrb[37].mxu1 }
 0x960   : > { %9158 = vst [vmem:[%s16808_s24 + $0x110] sm:$0xff] %v9110_v22  ;;  %v13303_v25 = vadd.f32 %v16804_v56, %v8969_v52 }
 0x961   : > { %v9113_v63 = vmax.f32 %v13301_v47, 0.0 }
 0x962   : > { %v9112_v3 = vmax.f32 %v13303_v25, 0.0  ;;  %v12607_v6 = vpop.f32.mrb[38].mxu1 }
 0x963   : > { %9161 = vst [vmem:[%s16808_s24 + $0x128] sm:$0xff] %v9113_v63  ;;  %v13305_v59 = vadd.f32 %v16804_v56, %v12607_v6  ;;  %v8979_v20 = vpop.f32.mrb[39].mxu1 }
 0x964   : > { %9160 = vst [vmem:[%s16808_s24 + $0x120] sm:$0xff] %v9112_v3  ;;  %v13307_v23 = vadd.f32 %v16804_v56, %v8979_v20 }
 0x965   : > { %v9115_v16 = vmax.f32 %v13305_v59, 0.0 }
 0x966   : > { %v9114_v26 = vmax.f32 %v13307_v23, 0.0  ;;  %v12610_v33 = vpop.f32.mrb[40].mxu1 }
 0x967   : > { %9163 = vst [vmem:[%s16808_s24 + $0x138] sm:$0xff] %v9115_v16  ;;  %v13309_v4 = vadd.f32 %v16804_v56, %v12610_v33  ;;  %v8989_v32 = vpop.f32.mrb[41].mxu1 }
 0x968   : > { %9162 = vst [vmem:[%s16808_s24 + $0x130] sm:$0xff] %v9114_v26  ;;  %v13311_v60 = vadd.f32 %v16804_v56, %v8989_v32 }
 0x969   : > { %v9117_v9 = vmax.f32 %v13309_v4, 0.0 }
 0x96a   : > { %v9116_v34 = vmax.f32 %v13311_v60, 0.0  ;;  %v12613_v61 = vpop.f32.mrb[42].mxu1 }
 0x96b   : > { %9165 = vst [vmem:[%s16808_s24 + $0x148] sm:$0xff] %v9117_v9  ;;  %v13313_v44 = vadd.f32 %v16804_v56, %v12613_v61  ;;  %v8999_v28 = vpop.f32.mrb[43].mxu1 }
 0x96c   : > { %9164 = vst [vmem:[%s16808_s24 + $0x140] sm:$0xff] %v9116_v34  ;;  %v13315_v35 = vadd.f32 %v16804_v56, %v8999_v28 }
 0x96d   : > { %v9119_v38 = vmax.f32 %v13313_v44, 0.0 }
 0x96e   : > { %v9118_v19 = vmax.f32 %v13315_v35, 0.0  ;;  %v12616_v13 = vpop.f32.mrb[44].mxu1 }
 0x96f   : > { %9167 = vst [vmem:[%s16808_s24 + $0x158] sm:$0xff] %v9119_v38  ;;  %v13317_v29 = vadd.f32 %v16804_v56, %v12616_v13  ;;  %v9009_v12 = vpop.f32.mrb[45].mxu1 }
 0x970   : > { %9166 = vst [vmem:[%s16808_s24 + $0x150] sm:$0xff] %v9118_v19  ;;  %v13319_v58 = vadd.f32 %v16804_v56, %v9009_v12 }
 0x971   : > { %v9121_v5 = vmax.f32 %v13317_v29, 0.0 }
 0x972   : > { %v9120_v10 = vmax.f32 %v13319_v58, 0.0  ;;  %v12619_v2 = vpop.f32.mrb[46].mxu1 }
 0x973   : > { %9169 = vst [vmem:[%s16808_s24 + $0x168] sm:$0xff] %v9121_v5  ;;  %v13321_v17 = vadd.f32 %v16804_v56, %v12619_v2  ;;  %v9019_v45 = vpop.f32.mrb[47].mxu1 }
 0x974   : > { %9168 = vst [vmem:[%s16808_s24 + $0x160] sm:$0xff] %v9120_v10  ;;  %v13323_v42 = vadd.f32 %v16804_v56, %v9019_v45 }
 0x975   : > { %v9123_v62 = vmax.f32 %v13321_v17, 0.0 }
 0x976   : > { %v9122_v21 = vmax.f32 %v13323_v42, 0.0 }
 0x977   : > { %9171 = vst [vmem:[%s16808_s24 + $0x178] sm:$0xff] %v9123_v62 }
 0x978   : > { %9170 = vst [vmem:[%s16808_s24 + $0x170] sm:$0xff] %v9122_v21 }
 0x979   : > { %14367 = shalt.err (!%p14364_p1)
}
 0x97a   : > { %s14368_s11 = scalar_lea.hbm %s16905_s2, 6144  ;;  %s14372_s26 = scalar_lea.hbm %s16961_s8, 12288 }
 0x97b   : > { %p14369_p13 = scmp.ne.s32.totalorder %s16905_s2, %s14368_s11  ;;  %p14373_p4 = scmp.lt.u32.totalorder %s16905_s2, %s16961_s8 }
 0x97c   : > { %p14374_p5 = scmp.lt.u32.totalorder %s14372_s26, %s14368_s11  ;;  %p14376_p11 = scmp.lt.u32.totalorder %s14368_s11, %s16905_s2 }
 0x97d   : > { %p14370_p6 = pnand %p14369_p13, %p17368_p0 }
 0x97e   : > { %p14375_p8 = por %p14374_p5, %p14373_p4 }
 0x97f   : > { %p14371_p10 = pneg %p14370_p6 }
 0x980   : > { %p14377_p2 = por %p14376_p11, %p14375_p8 }
 0x982   : > { %p14378_p3 = pnand %p14377_p2, %p14371_p10 }
 0x984   : > { %14381 = shalt.err (!%p14378_p3)
}
 0x985   : > { %s14434_s25 = smov 128   ;;  %s14435_s20 = smov 8  }
 0x986   : > { %14203 = dma.vmem_to_hbm [thread:$0]  (%p17368_p0), %s16907_s21, 6144, %s16905_s2, %s9173_s9, %s14434_s25, %s14434_s25, %s14435_s20  }
 0x987 PF: > { %s9201_s4 = sand.u32 1, %s14412_s27   ;;  %p17369_p7 = scmp.ne.s32.totalorder %s17101_s12, 0 }
 0x988   : > { %p17370_p9 = scmp.ge.s32.totalorder %s14424_s30, 2  ;;  %s9202_s14 = scalar_lea.sflag [#allocation5], %s9201_s4 }
 0x98a   : > { %p14217_p12 = pnand %p17370_p9, %p17369_p7 }
 0x98c   : > { %14407 = dma.done.wait (!%p14217_p12), %s9202_s14, 6144  }
 0x98d   : > { %14409 = vsyncadd (!%p14217_p12), %s9202_s14, 4294961152  ;;  %p22_p1 = scmp.ge.s32.totalorder %s14597_s16, 4   ;;  %s17371_s27 = smov %s14416_s28 }
 0x98e   : > { %s17372_s28 = smov %s14420_s29  ;;  %s17373_s29 = smov %s14613_s23 }
 0x98f   : > { %s17374_s30 = smov %s14597_s16  ;;  %24 = sbr.rel (!%p22_p1) target bundleno = 9 (0x9), region = 121 }
 0x996   :  { %9207 = vsyncpa [#allocation4], 1 }
 0x997   :  { %9209 = vsyncpa [#allocation4 + $0x1], 1 }
 0x998   :  { %9210 = vsyncpa [#allocation7], 1 }
 0x999   :  { %9211 = vsyncpa [#allocation5], 1 }
 0x99a   :  { %9213 = vsyncpa [#allocation5 + $0x1], 1 }

</bundles_post_ra>
